<compile_context>
chip_gen: v7x
topology: tpu7x:2x2x1
jax: 0.10.0
libtpu: 0.0.40
codegen_flags: <defaults>
</compile_context>

<pallas_src>
import functools

import jax
import jax.numpy as jnp
from jax.experimental import pallas as pl
from jax.experimental.pallas import tpu as pltpu

D_IN = 144
HIDDEN = 256
FC_HIDDEN = 512
N_OUT = 3
HEAD_PAD = 128      # lane-dense head output width (real logits are [:, :N_OUT])
B_PAD = 8           # sublane-padded batch


def lstm_nn_kernel(x_ref, wih_ref, b_ref, b1_ref, b2_ref,      # VMEM inputs
                   whh_hbm, w1_hbm, w2_hbm,                    # HBM (pl.ANY) inputs
                   out_ref,                                    # VMEM output
                   whh_vmem, w1_vmem, w2_vmem, sem,            # scratch
                   *, T):
    H = whh_vmem.shape[0]
    Bp = out_ref.shape[0]

    # ---- kick off the weight DMAs; they overlap with the input projection below ----
    whh_cp = pltpu.make_async_copy(whh_hbm, whh_vmem, sem.at[0])
    w1_cp = pltpu.make_async_copy(w1_hbm, w1_vmem, sem.at[1])
    w2_cp = pltpu.make_async_copy(w2_hbm, w2_vmem, sem.at[2])
    whh_cp.start()
    w1_cp.start()
    w2_cp.start()

    # ---- hoisted input projection: one (T*Bp, D) @ (D, 4H) matmul, bias folded once ----
    gx = jnp.dot(x_ref[...].astype(jnp.bfloat16), wih_ref[...],
                 preferred_element_type=jnp.float32) + b_ref[...]        # (T*Bp, 4H) f32

    whh_cp.wait()
    whh = whh_vmem[...]                                                  # bf16 (H, 4H)

    h = jnp.zeros((Bp, H), jnp.float32)
    c = jnp.zeros((Bp, H), jnp.float32)

    # ---- fully unrolled recurrence: per step only h @ W_hh (MXU) + elementwise gates ----
    # Gate columns are pre-permuted at parameter-pack time from PyTorch (i, f, g, o)
    # to (i, f, o, g) so one sigmoid covers (Bp, 3H) and one tanh covers (Bp, H).
    # TODO(synk): on v6e/v7x W_hh could be held resident in the MXU across steps via
    # pltpu.matmul_push_rhs / matmul_acc_lhs / matmul_pop; kept as jnp.dot here for
    # portability (does not fit v5e's 4x128^2 geometry) and robustness.
    for t in range(T):
        gates = gx[t * Bp:(t + 1) * Bp, :] + jnp.dot(
            h.astype(jnp.bfloat16), whh, preferred_element_type=jnp.float32)  # (Bp, 4H)
        s = jax.nn.sigmoid(gates[:, :3 * H])
        i_g = s[:, 0 * H:1 * H]
        f_g = s[:, 1 * H:2 * H]
        o_g = s[:, 2 * H:3 * H]
        g_g = jnp.tanh(gates[:, 3 * H:4 * H])
        c = f_g * c + i_g * g_g
        h = o_g * jnp.tanh(c)

    # ---- MLP head on the last hidden state (== output[-1] of the PyTorch LSTM) ----
    # TODO(synk): F.dropout(p=0.5) is identity in eval mode; training-mode stochastic
    # dropout is intentionally not applied.
    w1_cp.wait()
    w2_cp.wait()
    h1 = jnp.dot(h.astype(jnp.bfloat16), w1_vmem[...],
                 preferred_element_type=jnp.float32) + b1_ref[...]       # (Bp, 512) f32
    h1 = jnp.maximum(h1, 0.0)
    out_ref[...] = jnp.dot(h1.astype(jnp.bfloat16), w2_vmem[...],
                           preferred_element_type=jnp.float32) + b2_ref[...]


def lstm_nn_forward(x_btd, params):
    """x_btd: (B, T, 144). Returns logits of shape (B, 3)."""
    B, T, D = x_btd.shape
    assert B <= B_PAD, "add a batch grid (dimension_semantics=('parallel',)) for B > 8"

    # Time-major + sublane-pad the batch so every per-step gate slab is one aligned
    # (8, 4H) tile. The (T,B,D) transpose / pad of a ~9 KiB array is free in XLA.
    x_tm = jnp.transpose(x_btd.astype(jnp.float32), (1, 0, 2))           # (T, B, D)
    x_tm = jnp.pad(x_tm, ((0, 0), (0, B_PAD - B), (0, 0)))               # (T, B_PAD, D)
    x_flat = x_tm.reshape(T * B_PAD, D)

    vmem = pl.BlockSpec(memory_space=pltpu.MemorySpace.VMEM)
    hbm = pl.BlockSpec(memory_space=pl.ANY)

    out_padded = pl.pallas_call(
        functools.partial(lstm_nn_kernel, T=T),
        out_shape=jax.ShapeDtypeStruct((B_PAD, HEAD_PAD), jnp.float32),
        in_specs=[vmem, vmem, vmem, vmem, vmem, hbm, hbm, hbm],
        out_specs=vmem,
        scratch_shapes=[
            pltpu.VMEM(params["w_hh_t"].shape, jnp.bfloat16),
            pltpu.VMEM(params["w1"].shape, jnp.bfloat16),
            pltpu.VMEM(params["w2"].shape, jnp.bfloat16),
            pltpu.SemaphoreType.DMA((3,)),
        ],
    )(x_flat,
      params["w_ih_t"], params["b_lstm"], params["b1"], params["b2"],
      params["w_hh_t"], params["w1"], params["w2"])

    # NOTE: PyTorch `x[-1].squeeze()` would drop the batch dim when B == 1;
    # this version always returns (B, 3).
    return out_padded[:B, :N_OUT]


def _reorder_gates(w_4h_cols):
    """Permute the last (4H) axis from PyTorch gate order (i, f, g, o) to (i, f, o, g)."""
    H = w_4h_cols.shape[-1] // 4
    return jnp.concatenate(
        [w_4h_cols[..., :2 * H], w_4h_cols[..., 3 * H:], w_4h_cols[..., 2 * H:3 * H]],
        axis=-1)


def init_params(key, d_in=D_IN, hidden=HIDDEN, fc_hidden=FC_HIDDEN, n_out=N_OUT):
    ks = jax.random.split(key, 8)
    k_lstm = 1.0 / jnp.sqrt(hidden)
    k_fc1 = 1.0 / jnp.sqrt(hidden)
    k_fc2 = 1.0 / jnp.sqrt(fc_hidden)
    u = lambda k, shape, s: jax.random.uniform(
        k, shape, jnp.float32, minval=-s, maxval=s)

    w_ih = u(ks[0], (4 * hidden, d_in), k_lstm)          # PyTorch (4H, D) layout
    w_hh = u(ks[1], (4 * hidden, hidden), k_lstm)
    b_ih = u(ks[2], (4 * hidden,), k_lstm)
    b_hh = u(ks[3], (4 * hidden,), k_lstm)

    w1 = u(ks[4], (fc_hidden, hidden), k_fc1)            # (512, H)
    b1 = u(ks[5], (fc_hidden,), k_fc1)
    w2 = u(ks[6], (n_out, fc_hidden), k_fc2)             # (3, 512)
    b2 = u(ks[7], (n_out,), k_fc2)

    # Bake the (i,f,g,o)->(i,f,o,g) gate-column permutation into the packed weights.
    w_ih_t = _reorder_gates(jnp.transpose(w_ih))                      # (D, 4H)
    w_hh_t = _reorder_gates(jnp.transpose(w_hh))                      # (H, 4H)
    b_lstm = _reorder_gates((b_ih + b_hh).reshape(1, 4 * hidden))     # (1, 4H)

    # Lane-pad the head from 3 -> HEAD_PAD output columns (zeros); sliced back to 3
    # in the wrapper so the kernel's final store is a full lane-dense tile.
    w2_pad = jnp.zeros((fc_hidden, HEAD_PAD), jnp.float32).at[:, :n_out].set(
        jnp.transpose(w2))
    b2_pad = jnp.zeros((1, HEAD_PAD), jnp.float32).at[0, :n_out].set(b2)

    return {
        # bf16 matmul weights (f32 MXU accumulation in-kernel); biases / state stay f32
        "w_ih_t": w_ih_t.astype(jnp.bfloat16),                   # (D, 4H)
        "w_hh_t": w_hh_t.astype(jnp.bfloat16),                   # (H, 4H)
        "b_lstm": b_lstm,                                        # (1, 4H) f32
        "w1": jnp.transpose(w1).astype(jnp.bfloat16),            # (H, 512)
        "b1": b1.reshape(1, fc_hidden),                          # (1, 512) f32
        "w2": w2_pad.astype(jnp.bfloat16),                       # (512, 128) bf16
        "b2": b2_pad,                                            # (1, 128) f32
    }


if __name__ == "__main__":
    key = jax.random.PRNGKey(0)
    k_x, k_p = jax.random.split(key)

    B, T = 2, 8                       # module default n_gru_hidden=256
    x = jax.random.normal(k_x, (B, T, D_IN), dtype=jnp.float32)
    params = init_params(k_p)

    out = jax.jit(lstm_nn_forward)(x, params)
    out = jax.block_until_ready(out)
    assert out.shape == (B, N_OUT), out.shape
    print("KERNEL_OK")
</pallas_src>

<mosaic_0001>
module attributes {stable_mosaic.version = 11 : i64} {
  func.func @lstm_nn_kernel(%arg0: memref<64x144xf32, #tpu.memory_space<vmem>>, %arg1: memref<144x1024xbf16, #tpu.memory_space<vmem>>, %arg2: memref<1x1024xf32, #tpu.memory_space<vmem>>, %arg3: memref<1x512xf32, #tpu.memory_space<vmem>>, %arg4: memref<1x128xf32, #tpu.memory_space<vmem>>, %arg5: memref<256x1024xbf16, #tpu.memory_space<any>>, %arg6: memref<256x512xbf16, #tpu.memory_space<any>>, %arg7: memref<512x128xbf16, #tpu.memory_space<any>>, %arg8: memref<8x128xf32, #tpu.memory_space<vmem>>, %arg9: memref<256x1024xbf16, #tpu.memory_space<vmem>>, %arg10: memref<256x512xbf16, #tpu.memory_space<vmem>>, %arg11: memref<512x128xbf16, #tpu.memory_space<vmem>>, %arg12: memref<3x!tpu.dma_semaphore, #tpu.memory_space<semaphore_mem>>) attributes {dimension_semantics = [], scalar_prefetch = 0 : i64, scratch_operands = 4 : i64, tpu.core_type = #tpu.core_type<tc>} {
    %c0_i32 = arith.constant 0 : i32
    %0 = tpu.memref_slice %arg12[%c0_i32] : memref<3x!tpu.dma_semaphore, #tpu.memory_space<semaphore_mem>> -> memref<1x!tpu.dma_semaphore, #tpu.memory_space<semaphore_mem>>
    %1 = tpu.memref_squeeze %0 : memref<1x!tpu.dma_semaphore, #tpu.memory_space<semaphore_mem>> -> memref<!tpu.dma_semaphore, #tpu.memory_space<semaphore_mem>>
    tpu.enqueue_dma source(%arg5 : memref<256x1024xbf16, #tpu.memory_space<any>>) target(%arg9 : memref<256x1024xbf16, #tpu.memory_space<vmem>>) target_semaphore(%1 : memref<!tpu.dma_semaphore, #tpu.memory_space<semaphore_mem>>)
    %c1_i32 = arith.constant 1 : i32
    %2 = tpu.memref_slice %arg12[%c1_i32] : memref<3x!tpu.dma_semaphore, #tpu.memory_space<semaphore_mem>> -> memref<1x!tpu.dma_semaphore, #tpu.memory_space<semaphore_mem>>
    %3 = tpu.memref_squeeze %2 : memref<1x!tpu.dma_semaphore, #tpu.memory_space<semaphore_mem>> -> memref<!tpu.dma_semaphore, #tpu.memory_space<semaphore_mem>>
    tpu.enqueue_dma source(%arg6 : memref<256x512xbf16, #tpu.memory_space<any>>) target(%arg10 : memref<256x512xbf16, #tpu.memory_space<vmem>>) target_semaphore(%3 : memref<!tpu.dma_semaphore, #tpu.memory_space<semaphore_mem>>)
    %c2_i32 = arith.constant 2 : i32
    %4 = tpu.memref_slice %arg12[%c2_i32] : memref<3x!tpu.dma_semaphore, #tpu.memory_space<semaphore_mem>> -> memref<1x!tpu.dma_semaphore, #tpu.memory_space<semaphore_mem>>
    %5 = tpu.memref_squeeze %4 : memref<1x!tpu.dma_semaphore, #tpu.memory_space<semaphore_mem>> -> memref<!tpu.dma_semaphore, #tpu.memory_space<semaphore_mem>>
    tpu.enqueue_dma source(%arg7 : memref<512x128xbf16, #tpu.memory_space<any>>) target(%arg11 : memref<512x128xbf16, #tpu.memory_space<vmem>>) target_semaphore(%5 : memref<!tpu.dma_semaphore, #tpu.memory_space<semaphore_mem>>)
    %c0 = arith.constant 0 : index
    %c0_0 = arith.constant 0 : index
    %6 = vector.load %arg0[%c0, %c0_0] : memref<64x144xf32, #tpu.memory_space<vmem>>, vector<64x144xf32>
    %7 = arith.truncf %6 : vector<64x144xf32> to vector<64x144xbf16>
    %c0_1 = arith.constant 0 : index
    %c0_2 = arith.constant 0 : index
    %8 = vector.load %arg1[%c0_1, %c0_2] : memref<144x1024xbf16, #tpu.memory_space<vmem>>, vector<144x1024xbf16>
    %cst = arith.constant dense<0.000000e+00> : vector<64x1024xf32>
    %9 = tpu.matmul %7, %8, %cst {dimension_numbers = #tpu.dot_dimension_numbers<[1], [0], [0], [1], [0, 0, 1, 1], [], []>} : vector<64x144xbf16>, vector<144x1024xbf16>, vector<64x1024xf32> -> vector<64x1024xf32>
    %c0_3 = arith.constant 0 : index
    %c0_4 = arith.constant 0 : index
    %10 = vector.load %arg2[%c0_3, %c0_4] : memref<1x1024xf32, #tpu.memory_space<vmem>>, vector<1x1024xf32>
    %11 = vector.broadcast %10 : vector<1x1024xf32> to vector<64x1024xf32>
    %12 = arith.addf %9, %11 : vector<64x1024xf32>
    %c0_i32_5 = arith.constant 0 : i32
    %13 = tpu.memref_slice %arg12[%c0_i32_5] : memref<3x!tpu.dma_semaphore, #tpu.memory_space<semaphore_mem>> -> memref<1x!tpu.dma_semaphore, #tpu.memory_space<semaphore_mem>>
    %14 = tpu.memref_squeeze %13 : memref<1x!tpu.dma_semaphore, #tpu.memory_space<semaphore_mem>> -> memref<!tpu.dma_semaphore, #tpu.memory_space<semaphore_mem>>
    tpu.wait_dma2 semaphore(%14 : memref<!tpu.dma_semaphore, #tpu.memory_space<semaphore_mem>>) src(%arg5 : memref<256x1024xbf16, #tpu.memory_space<any>>) dst(%arg9 : memref<256x1024xbf16, #tpu.memory_space<vmem>>)
    %c0_6 = arith.constant 0 : index
    %c0_7 = arith.constant 0 : index
    %15 = vector.load %arg9[%c0_6, %c0_7] : memref<256x1024xbf16, #tpu.memory_space<vmem>>, vector<256x1024xbf16>
    %cst_8 = arith.constant 0.000000e+00 : f32
    %16 = vector.broadcast %cst_8 : f32 to vector<8x256xf32>
    %cst_9 = arith.constant 0.000000e+00 : f32
    %17 = vector.broadcast %cst_9 : f32 to vector<8x256xf32>
    %18 = vector.extract_strided_slice %12 {offsets = [0, 0], sizes = [8, 1024], strides = [1, 1]} : vector<64x1024xf32> to vector<8x1024xf32>
    %19 = arith.truncf %16 : vector<8x256xf32> to vector<8x256xbf16>
    %cst_10 = arith.constant dense<0.000000e+00> : vector<8x1024xf32>
    %20 = tpu.matmul %19, %15, %cst_10 {dimension_numbers = #tpu.dot_dimension_numbers<[1], [0], [0], [1], [0, 0, 1, 1], [], []>} : vector<8x256xbf16>, vector<256x1024xbf16>, vector<8x1024xf32> -> vector<8x1024xf32>
    %21 = arith.addf %18, %20 : vector<8x1024xf32>
    %22 = vector.extract_strided_slice %21 {offsets = [0, 0], sizes = [8, 768], strides = [1, 1]} : vector<8x1024xf32> to vector<8x768xf32>
    %23 = arith.negf %22 : vector<8x768xf32>
    %24 = math.exp %23 : vector<8x768xf32>
    %cst_11 = arith.constant 1.000000e+00 : f32
    %25 = vector.broadcast %cst_11 : f32 to vector<8x768xf32>
    %26 = arith.addf %25, %24 : vector<8x768xf32>
    %27 = arith.divf %25, %26 : vector<8x768xf32>
    %28 = vector.extract_strided_slice %27 {offsets = [0, 0], sizes = [8, 256], strides = [1, 1]} : vector<8x768xf32> to vector<8x256xf32>
    %29 = vector.extract_strided_slice %27 {offsets = [0, 256], sizes = [8, 256], strides = [1, 1]} : vector<8x768xf32> to vector<8x256xf32>
    %30 = vector.extract_strided_slice %27 {offsets = [0, 512], sizes = [8, 256], strides = [1, 1]} : vector<8x768xf32> to vector<8x256xf32>
    %31 = vector.extract_strided_slice %21 {offsets = [0, 768], sizes = [8, 256], strides = [1, 1]} : vector<8x1024xf32> to vector<8x256xf32>
    %32 = math.tanh %31 : vector<8x256xf32>
    %33 = arith.mulf %29, %17 : vector<8x256xf32>
    %34 = arith.mulf %28, %32 : vector<8x256xf32>
    %35 = arith.addf %33, %34 : vector<8x256xf32>
    %36 = math.tanh %35 : vector<8x256xf32>
    %37 = arith.mulf %30, %36 : vector<8x256xf32>
    %38 = vector.extract_strided_slice %12 {offsets = [8, 0], sizes = [8, 1024], strides = [1, 1]} : vector<64x1024xf32> to vector<8x1024xf32>
    %39 = arith.truncf %37 : vector<8x256xf32> to vector<8x256xbf16>
    %cst_12 = arith.constant dense<0.000000e+00> : vector<8x1024xf32>
    %40 = tpu.matmul %39, %15, %cst_12 {dimension_numbers = #tpu.dot_dimension_numbers<[1], [0], [0], [1], [0, 0, 1, 1], [], []>} : vector<8x256xbf16>, vector<256x1024xbf16>, vector<8x1024xf32> -> vector<8x1024xf32>
    %41 = arith.addf %38, %40 : vector<8x1024xf32>
    %42 = vector.extract_strided_slice %41 {offsets = [0, 0], sizes = [8, 768], strides = [1, 1]} : vector<8x1024xf32> to vector<8x768xf32>
    %43 = arith.negf %42 : vector<8x768xf32>
    %44 = math.exp %43 : vector<8x768xf32>
    %cst_13 = arith.constant 1.000000e+00 : f32
    %45 = vector.broadcast %cst_13 : f32 to vector<8x768xf32>
    %46 = arith.addf %45, %44 : vector<8x768xf32>
    %47 = arith.divf %45, %46 : vector<8x768xf32>
    %48 = vector.extract_strided_slice %47 {offsets = [0, 0], sizes = [8, 256], strides = [1, 1]} : vector<8x768xf32> to vector<8x256xf32>
    %49 = vector.extract_strided_slice %47 {offsets = [0, 256], sizes = [8, 256], strides = [1, 1]} : vector<8x768xf32> to vector<8x256xf32>
    %50 = vector.extract_strided_slice %47 {offsets = [0, 512], sizes = [8, 256], strides = [1, 1]} : vector<8x768xf32> to vector<8x256xf32>
    %51 = vector.extract_strided_slice %41 {offsets = [0, 768], sizes = [8, 256], strides = [1, 1]} : vector<8x1024xf32> to vector<8x256xf32>
    %52 = math.tanh %51 : vector<8x256xf32>
    %53 = arith.mulf %49, %35 : vector<8x256xf32>
    %54 = arith.mulf %48, %52 : vector<8x256xf32>
    %55 = arith.addf %53, %54 : vector<8x256xf32>
    %56 = math.tanh %55 : vector<8x256xf32>
    %57 = arith.mulf %50, %56 : vector<8x256xf32>
    %58 = vector.extract_strided_slice %12 {offsets = [16, 0], sizes = [8, 1024], strides = [1, 1]} : vector<64x1024xf32> to vector<8x1024xf32>
    %59 = arith.truncf %57 : vector<8x256xf32> to vector<8x256xbf16>
    %cst_14 = arith.constant dense<0.000000e+00> : vector<8x1024xf32>
    %60 = tpu.matmul %59, %15, %cst_14 {dimension_numbers = #tpu.dot_dimension_numbers<[1], [0], [0], [1], [0, 0, 1, 1], [], []>} : vector<8x256xbf16>, vector<256x1024xbf16>, vector<8x1024xf32> -> vector<8x1024xf32>
    %61 = arith.addf %58, %60 : vector<8x1024xf32>
    %62 = vector.extract_strided_slice %61 {offsets = [0, 0], sizes = [8, 768], strides = [1, 1]} : vector<8x1024xf32> to vector<8x768xf32>
    %63 = arith.negf %62 : vector<8x768xf32>
    %64 = math.exp %63 : vector<8x768xf32>
    %cst_15 = arith.constant 1.000000e+00 : f32
    %65 = vector.broadcast %cst_15 : f32 to vector<8x768xf32>
    %66 = arith.addf %65, %64 : vector<8x768xf32>
    %67 = arith.divf %65, %66 : vector<8x768xf32>
    %68 = vector.extract_strided_slice %67 {offsets = [0, 0], sizes = [8, 256], strides = [1, 1]} : vector<8x768xf32> to vector<8x256xf32>
    %69 = vector.extract_strided_slice %67 {offsets = [0, 256], sizes = [8, 256], strides = [1, 1]} : vector<8x768xf32> to vector<8x256xf32>
    %70 = vector.extract_strided_slice %67 {offsets = [0, 512], sizes = [8, 256], strides = [1, 1]} : vector<8x768xf32> to vector<8x256xf32>
    %71 = vector.extract_strided_slice %61 {offsets = [0, 768], sizes = [8, 256], strides = [1, 1]} : vector<8x1024xf32> to vector<8x256xf32>
    %72 = math.tanh %71 : vector<8x256xf32>
    %73 = arith.mulf %69, %55 : vector<8x256xf32>
    %74 = arith.mulf %68, %72 : vector<8x256xf32>
    %75 = arith.addf %73, %74 : vector<8x256xf32>
    %76 = math.tanh %75 : vector<8x256xf32>
    %77 = arith.mulf %70, %76 : vector<8x256xf32>
    %78 = vector.extract_strided_slice %12 {offsets = [24, 0], sizes = [8, 1024], strides = [1, 1]} : vector<64x1024xf32> to vector<8x1024xf32>
    %79 = arith.truncf %77 : vector<8x256xf32> to vector<8x256xbf16>
    %cst_16 = arith.constant dense<0.000000e+00> : vector<8x1024xf32>
    %80 = tpu.matmul %79, %15, %cst_16 {dimension_numbers = #tpu.dot_dimension_numbers<[1], [0], [0], [1], [0, 0, 1, 1], [], []>} : vector<8x256xbf16>, vector<256x1024xbf16>, vector<8x1024xf32> -> vector<8x1024xf32>
    %81 = arith.addf %78, %80 : vector<8x1024xf32>
    %82 = vector.extract_strided_slice %81 {offsets = [0, 0], sizes = [8, 768], strides = [1, 1]} : vector<8x1024xf32> to vector<8x768xf32>
    %83 = arith.negf %82 : vector<8x768xf32>
    %84 = math.exp %83 : vector<8x768xf32>
    %cst_17 = arith.constant 1.000000e+00 : f32
    %85 = vector.broadcast %cst_17 : f32 to vector<8x768xf32>
    %86 = arith.addf %85, %84 : vector<8x768xf32>
    %87 = arith.divf %85, %86 : vector<8x768xf32>
    %88 = vector.extract_strided_slice %87 {offsets = [0, 0], sizes = [8, 256], strides = [1, 1]} : vector<8x768xf32> to vector<8x256xf32>
    %89 = vector.extract_strided_slice %87 {offsets = [0, 256], sizes = [8, 256], strides = [1, 1]} : vector<8x768xf32> to vector<8x256xf32>
    %90 = vector.extract_strided_slice %87 {offsets = [0, 512], sizes = [8, 256], strides = [1, 1]} : vector<8x768xf32> to vector<8x256xf32>
    %91 = vector.extract_strided_slice %81 {offsets = [0, 768], sizes = [8, 256], strides = [1, 1]} : vector<8x1024xf32> to vector<8x256xf32>
    %92 = math.tanh %91 : vector<8x256xf32>
    %93 = arith.mulf %89, %75 : vector<8x256xf32>
    %94 = arith.mulf %88, %92 : vector<8x256xf32>
    %95 = arith.addf %93, %94 : vector<8x256xf32>
    %96 = math.tanh %95 : vector<8x256xf32>
    %97 = arith.mulf %90, %96 : vector<8x256xf32>
    %98 = vector.extract_strided_slice %12 {offsets = [32, 0], sizes = [8, 1024], strides = [1, 1]} : vector<64x1024xf32> to vector<8x1024xf32>
    %99 = arith.truncf %97 : vector<8x256xf32> to vector<8x256xbf16>
    %cst_18 = arith.constant dense<0.000000e+00> : vector<8x1024xf32>
    %100 = tpu.matmul %99, %15, %cst_18 {dimension_numbers = #tpu.dot_dimension_numbers<[1], [0], [0], [1], [0, 0, 1, 1], [], []>} : vector<8x256xbf16>, vector<256x1024xbf16>, vector<8x1024xf32> -> vector<8x1024xf32>
    %101 = arith.addf %98, %100 : vector<8x1024xf32>
    %102 = vector.extract_strided_slice %101 {offsets = [0, 0], sizes = [8, 768], strides = [1, 1]} : vector<8x1024xf32> to vector<8x768xf32>
    %103 = arith.negf %102 : vector<8x768xf32>
    %104 = math.exp %103 : vector<8x768xf32>
    %cst_19 = arith.constant 1.000000e+00 : f32
    %105 = vector.broadcast %cst_19 : f32 to vector<8x768xf32>
    %106 = arith.addf %105, %104 : vector<8x768xf32>
    %107 = arith.divf %105, %106 : vector<8x768xf32>
    %108 = vector.extract_strided_slice %107 {offsets = [0, 0], sizes = [8, 256], strides = [1, 1]} : vector<8x768xf32> to vector<8x256xf32>
    %109 = vector.extract_strided_slice %107 {offsets = [0, 256], sizes = [8, 256], strides = [1, 1]} : vector<8x768xf32> to vector<8x256xf32>
    %110 = vector.extract_strided_slice %107 {offsets = [0, 512], sizes = [8, 256], strides = [1, 1]} : vector<8x768xf32> to vector<8x256xf32>
    %111 = vector.extract_strided_slice %101 {offsets = [0, 768], sizes = [8, 256], strides = [1, 1]} : vector<8x1024xf32> to vector<8x256xf32>
    %112 = math.tanh %111 : vector<8x256xf32>
    %113 = arith.mulf %109, %95 : vector<8x256xf32>
    %114 = arith.mulf %108, %112 : vector<8x256xf32>
    %115 = arith.addf %113, %114 : vector<8x256xf32>
    %116 = math.tanh %115 : vector<8x256xf32>
    %117 = arith.mulf %110, %116 : vector<8x256xf32>
    %118 = vector.extract_strided_slice %12 {offsets = [40, 0], sizes = [8, 1024], strides = [1, 1]} : vector<64x1024xf32> to vector<8x1024xf32>
    %119 = arith.truncf %117 : vector<8x256xf32> to vector<8x256xbf16>
    %cst_20 = arith.constant dense<0.000000e+00> : vector<8x1024xf32>
    %120 = tpu.matmul %119, %15, %cst_20 {dimension_numbers = #tpu.dot_dimension_numbers<[1], [0], [0], [1], [0, 0, 1, 1], [], []>} : vector<8x256xbf16>, vector<256x1024xbf16>, vector<8x1024xf32> -> vector<8x1024xf32>
    %121 = arith.addf %118, %120 : vector<8x1024xf32>
    %122 = vector.extract_strided_slice %121 {offsets = [0, 0], sizes = [8, 768], strides = [1, 1]} : vector<8x1024xf32> to vector<8x768xf32>
    %123 = arith.negf %122 : vector<8x768xf32>
    %124 = math.exp %123 : vector<8x768xf32>
    %cst_21 = arith.constant 1.000000e+00 : f32
    %125 = vector.broadcast %cst_21 : f32 to vector<8x768xf32>
    %126 = arith.addf %125, %124 : vector<8x768xf32>
    %127 = arith.divf %125, %126 : vector<8x768xf32>
    %128 = vector.extract_strided_slice %127 {offsets = [0, 0], sizes = [8, 256], strides = [1, 1]} : vector<8x768xf32> to vector<8x256xf32>
    %129 = vector.extract_strided_slice %127 {offsets = [0, 256], sizes = [8, 256], strides = [1, 1]} : vector<8x768xf32> to vector<8x256xf32>
    %130 = vector.extract_strided_slice %127 {offsets = [0, 512], sizes = [8, 256], strides = [1, 1]} : vector<8x768xf32> to vector<8x256xf32>
    %131 = vector.extract_strided_slice %121 {offsets = [0, 768], sizes = [8, 256], strides = [1, 1]} : vector<8x1024xf32> to vector<8x256xf32>
    %132 = math.tanh %131 : vector<8x256xf32>
    %133 = arith.mulf %129, %115 : vector<8x256xf32>
    %134 = arith.mulf %128, %132 : vector<8x256xf32>
    %135 = arith.addf %133, %134 : vector<8x256xf32>
    %136 = math.tanh %135 : vector<8x256xf32>
    %137 = arith.mulf %130, %136 : vector<8x256xf32>
    %138 = vector.extract_strided_slice %12 {offsets = [48, 0], sizes = [8, 1024], strides = [1, 1]} : vector<64x1024xf32> to vector<8x1024xf32>
    %139 = arith.truncf %137 : vector<8x256xf32> to vector<8x256xbf16>
    %cst_22 = arith.constant dense<0.000000e+00> : vector<8x1024xf32>
    %140 = tpu.matmul %139, %15, %cst_22 {dimension_numbers = #tpu.dot_dimension_numbers<[1], [0], [0], [1], [0, 0, 1, 1], [], []>} : vector<8x256xbf16>, vector<256x1024xbf16>, vector<8x1024xf32> -> vector<8x1024xf32>
    %141 = arith.addf %138, %140 : vector<8x1024xf32>
    %142 = vector.extract_strided_slice %141 {offsets = [0, 0], sizes = [8, 768], strides = [1, 1]} : vector<8x1024xf32> to vector<8x768xf32>
    %143 = arith.negf %142 : vector<8x768xf32>
    %144 = math.exp %143 : vector<8x768xf32>
    %cst_23 = arith.constant 1.000000e+00 : f32
    %145 = vector.broadcast %cst_23 : f32 to vector<8x768xf32>
    %146 = arith.addf %145, %144 : vector<8x768xf32>
    %147 = arith.divf %145, %146 : vector<8x768xf32>
    %148 = vector.extract_strided_slice %147 {offsets = [0, 0], sizes = [8, 256], strides = [1, 1]} : vector<8x768xf32> to vector<8x256xf32>
    %149 = vector.extract_strided_slice %147 {offsets = [0, 256], sizes = [8, 256], strides = [1, 1]} : vector<8x768xf32> to vector<8x256xf32>
    %150 = vector.extract_strided_slice %147 {offsets = [0, 512], sizes = [8, 256], strides = [1, 1]} : vector<8x768xf32> to vector<8x256xf32>
    %151 = vector.extract_strided_slice %141 {offsets = [0, 768], sizes = [8, 256], strides = [1, 1]} : vector<8x1024xf32> to vector<8x256xf32>
    %152 = math.tanh %151 : vector<8x256xf32>
    %153 = arith.mulf %149, %135 : vector<8x256xf32>
    %154 = arith.mulf %148, %152 : vector<8x256xf32>
    %155 = arith.addf %153, %154 : vector<8x256xf32>
    %156 = math.tanh %155 : vector<8x256xf32>
    %157 = arith.mulf %150, %156 : vector<8x256xf32>
    %158 = vector.extract_strided_slice %12 {offsets = [56, 0], sizes = [8, 1024], strides = [1, 1]} : vector<64x1024xf32> to vector<8x1024xf32>
    %159 = arith.truncf %157 : vector<8x256xf32> to vector<8x256xbf16>
    %cst_24 = arith.constant dense<0.000000e+00> : vector<8x1024xf32>
    %160 = tpu.matmul %159, %15, %cst_24 {dimension_numbers = #tpu.dot_dimension_numbers<[1], [0], [0], [1], [0, 0, 1, 1], [], []>} : vector<8x256xbf16>, vector<256x1024xbf16>, vector<8x1024xf32> -> vector<8x1024xf32>
    %161 = arith.addf %158, %160 : vector<8x1024xf32>
    %162 = vector.extract_strided_slice %161 {offsets = [0, 0], sizes = [8, 768], strides = [1, 1]} : vector<8x1024xf32> to vector<8x768xf32>
    %163 = arith.negf %162 : vector<8x768xf32>
    %164 = math.exp %163 : vector<8x768xf32>
    %cst_25 = arith.constant 1.000000e+00 : f32
    %165 = vector.broadcast %cst_25 : f32 to vector<8x768xf32>
    %166 = arith.addf %165, %164 : vector<8x768xf32>
    %167 = arith.divf %165, %166 : vector<8x768xf32>
    %168 = vector.extract_strided_slice %167 {offsets = [0, 0], sizes = [8, 256], strides = [1, 1]} : vector<8x768xf32> to vector<8x256xf32>
    %169 = vector.extract_strided_slice %167 {offsets = [0, 256], sizes = [8, 256], strides = [1, 1]} : vector<8x768xf32> to vector<8x256xf32>
    %170 = vector.extract_strided_slice %167 {offsets = [0, 512], sizes = [8, 256], strides = [1, 1]} : vector<8x768xf32> to vector<8x256xf32>
    %171 = vector.extract_strided_slice %161 {offsets = [0, 768], sizes = [8, 256], strides = [1, 1]} : vector<8x1024xf32> to vector<8x256xf32>
    %172 = math.tanh %171 : vector<8x256xf32>
    %173 = arith.mulf %169, %155 : vector<8x256xf32>
    %174 = arith.mulf %168, %172 : vector<8x256xf32>
    %175 = arith.addf %173, %174 : vector<8x256xf32>
    %176 = math.tanh %175 : vector<8x256xf32>
    %177 = arith.mulf %170, %176 : vector<8x256xf32>
    %c1_i32_26 = arith.constant 1 : i32
    %178 = tpu.memref_slice %arg12[%c1_i32_26] : memref<3x!tpu.dma_semaphore, #tpu.memory_space<semaphore_mem>> -> memref<1x!tpu.dma_semaphore, #tpu.memory_space<semaphore_mem>>
    %179 = tpu.memref_squeeze %178 : memref<1x!tpu.dma_semaphore, #tpu.memory_space<semaphore_mem>> -> memref<!tpu.dma_semaphore, #tpu.memory_space<semaphore_mem>>
    tpu.wait_dma2 semaphore(%179 : memref<!tpu.dma_semaphore, #tpu.memory_space<semaphore_mem>>) src(%arg6 : memref<256x512xbf16, #tpu.memory_space<any>>) dst(%arg10 : memref<256x512xbf16, #tpu.memory_space<vmem>>)
    %c2_i32_27 = arith.constant 2 : i32
    %180 = tpu.memref_slice %arg12[%c2_i32_27] : memref<3x!tpu.dma_semaphore, #tpu.memory_space<semaphore_mem>> -> memref<1x!tpu.dma_semaphore, #tpu.memory_space<semaphore_mem>>
    %181 = tpu.memref_squeeze %180 : memref<1x!tpu.dma_semaphore, #tpu.memory_space<semaphore_mem>> -> memref<!tpu.dma_semaphore, #tpu.memory_space<semaphore_mem>>
    tpu.wait_dma2 semaphore(%181 : memref<!tpu.dma_semaphore, #tpu.memory_space<semaphore_mem>>) src(%arg7 : memref<512x128xbf16, #tpu.memory_space<any>>) dst(%arg11 : memref<512x128xbf16, #tpu.memory_space<vmem>>)
    %182 = arith.truncf %177 : vector<8x256xf32> to vector<8x256xbf16>
    %c0_28 = arith.constant 0 : index
    %c0_29 = arith.constant 0 : index
    %183 = vector.load %arg10[%c0_28, %c0_29] : memref<256x512xbf16, #tpu.memory_space<vmem>>, vector<256x512xbf16>
    %cst_30 = arith.constant dense<0.000000e+00> : vector<8x512xf32>
    %184 = tpu.matmul %182, %183, %cst_30 {dimension_numbers = #tpu.dot_dimension_numbers<[1], [0], [0], [1], [0, 0, 1, 1], [], []>} : vector<8x256xbf16>, vector<256x512xbf16>, vector<8x512xf32> -> vector<8x512xf32>
    %c0_31 = arith.constant 0 : index
    %c0_32 = arith.constant 0 : index
    %185 = vector.load %arg3[%c0_31, %c0_32] : memref<1x512xf32, #tpu.memory_space<vmem>>, vector<1x512xf32>
    %186 = vector.broadcast %185 : vector<1x512xf32> to vector<8x512xf32>
    %187 = arith.addf %184, %186 : vector<8x512xf32>
    %cst_33 = arith.constant 0.000000e+00 : f32
    %188 = vector.broadcast %cst_33 : f32 to vector<8x512xf32>
    %189 = arith.maximumf %187, %188 : vector<8x512xf32>
    %190 = arith.truncf %189 : vector<8x512xf32> to vector<8x512xbf16>
    %c0_34 = arith.constant 0 : index
    %c0_35 = arith.constant 0 : index
    %191 = vector.load %arg11[%c0_34, %c0_35] : memref<512x128xbf16, #tpu.memory_space<vmem>>, vector<512x128xbf16>
    %cst_36 = arith.constant dense<0.000000e+00> : vector<8x128xf32>
    %192 = tpu.matmul %190, %191, %cst_36 {dimension_numbers = #tpu.dot_dimension_numbers<[1], [0], [0], [1], [0, 0, 1, 1], [], []>} : vector<8x512xbf16>, vector<512x128xbf16>, vector<8x128xf32> -> vector<8x128xf32>
    %c0_37 = arith.constant 0 : index
    %c0_38 = arith.constant 0 : index
    %193 = vector.load %arg4[%c0_37, %c0_38] : memref<1x128xf32, #tpu.memory_space<vmem>>, vector<1x128xf32>
    %194 = vector.broadcast %193 : vector<1x128xf32> to vector<8x128xf32>
    %195 = arith.addf %192, %194 : vector<8x128xf32>
    %c0_39 = arith.constant 0 : index
    %c0_40 = arith.constant 0 : index
    %196 = vector.load %arg8[%c0_39, %c0_40] : memref<8x128xf32, #tpu.memory_space<vmem>>, vector<8x128xf32>
    tpu.vector_store %arg8[%c0_39, %c0_40], %195 {strides = array<i32>} : memref<8x128xf32, #tpu.memory_space<vmem>>, vector<8x128xf32>,
    return
  }
}

</mosaic_0001>

<bundles_post_ra>
// kernel: lstm_nn_forward.1
= control target key start
LH: loop header
LB: loop body
LE: loop exit
PB: predicated region body
PF: predicated region fallthrough
CT: control target
= control target key end

     0   :  { %13 = vsyncpa [#allocation7], 0  ;;  %s3929_s27 = smov [#allocation6]   ;;  %s6335_s0 = inlined_call_operand.vmem [shape: f32[64,144], index: 0, kind: input, shape index: {}]   ;;  %s6336_s1 = inlined_call_operand.hbm [shape: bf16[144,1024], index: 1, kind: input, shape index: {}]   ;;  %s6337_s2 = inlined_call_operand.vmem [shape: f32[1,1024], index: 2, kind: input, shape index: {}]   ;;  %s6338_s3 = inlined_call_operand.vmem [shape: f32[1,512], index: 3, kind: input, shape index: {}]   ;;  %s6339_s4 = inlined_call_operand.vmem [shape: f32[1,128], index: 4, kind: input, shape index: {}]   ;;  %s6340_s5 = inlined_call_operand.hbm [shape: bf16[256,1024], index: 5, kind: input, shape index: {}]   ;;  %s6341_s6 = inlined_call_operand.hbm [shape: bf16[256,512], index: 6, kind: input, shape index: {}]   ;;  %s6342_s7 = inlined_call_operand.hbm [shape: bf16[512,128], index: 7, kind: input, shape index: {}]   ;;  %s6343_s8 = inlined_call_operand.vmem [shape: f32[8,128], index: 8, kind: output, shape index: {}]  }
   0x1   :  { %s21_s28 = sshll.u32 %s3929_s27, 4  ;;  %s3877_s9 = scalar_lea.hbm %s6336_s1, 9216  ;;  %s22_s28 = int_to_ptr.vmem [resolvable:$true] %s21_s28 }
   0x2   :  { %p3878_p0 = scmp.ne.s32.totalorder %s6336_s1, %s3877_s9  ;;  %p3881_p1 = scmp.lt.u32.totalorder %s3877_s9, %s6336_s1 }
   0x4   :  { %p3883_p2 = pnand %p3881_p1, %p3878_p0 }
   0x6   :  { %3886 = shalt.err (!%p3883_p2)
}
   0x7   :  { %s3887_s14 = scalar_lea.vmem %s22_s28, 9216  ;;  %p3892_p4 = scmp.lt.s32.totalorder %s22_s28, %s22_s28 }
   0x8   :  { %p3888_p3 = scmp.ne.s32.totalorder %s22_s28, %s3887_s14  ;;  %p3893_p5 = scmp.lt.s32.totalorder %s3887_s14, %s3887_s14 }
   0xa   :  { %p3894_p6 = por %p3893_p5, %p3892_p4 }
   0xc   :  { %p3895_p7 = pnand %p3894_p6, %p3888_p3 }
   0xe   :  { %3898 = shalt.err (!%p3895_p7)
}
   0xf   :  { %s3930_s15 = smov 512   ;;  %s3931_s16 = smov 32  }
  0x10   :  { %27 = dma.hbm_to_vmem [thread:$0]  %s6336_s1, 9216, %s22_s28, [#allocation7], %s3930_s15, %s3930_s15, %s3931_s16  }
  0x11   :  { %3921 = dma.done.wait [#allocation7], 9216  }
  0x12   :  { %3922 = vsyncadd [#allocation7], 4294958080  ;;  %s42_s19 = sld [smem:[#allocation0]]   ;;  %s3932_s20 = smov 1024   ;;  %vm618_vm0 = vcmask 130048  }
  0x13   :  { %54 = sst [smem:[#allocation9]] %s3932_s20  ;;  %s3933_s21 = smov 8  }
  0x14   :  { %56 = sst [smem:[#allocation9 + $0x1]] %s3932_s20  ;;  %s3934_s22 = smov [#allocation2]  }
  0x15   :  { %58 = sst [smem:[#allocation9 + $0x2]] %s3933_s21  ;;  %s50_s23 = sshll.u32 %s3934_s22, 4  ;;  %s51_s23 = int_to_ptr.vmem [resolvable:$true] %s50_s23 }
  0x16   :  { %66 = sst [smem:[#allocation9 + $0x6]] %s3930_s15  ;;  %s3935_s24 = smov 64  }
  0x17   :  { %60 = sst [smem:[#allocation9 + $0x3]] %s3935_s24  ;;  %s3936_s26 = smov 128  }
  0x18   :  { %s3159_s25 = sshll.u32 %s42_s19, 26  ;;  %62 = sst [smem:[#allocation9 + $0x4]] %s3936_s26 }
  0x19   :  { %s3160_s27 = sadd.s32 134217728, %s3159_s25  ;;  %s3937_s1 = smov 2  }
  0x1a   :  { %64 = sst [smem:[#allocation9 + $0x5]] %s3937_s1  ;;  %s3938_s28 = smov 4  }
  0x1b   :  { %68 = sst [smem:[#allocation9 + $0x7]] %s3935_s24  ;;  %s3939_s29 = smov [#allocation5]  }
  0x1c   :  { %70 = sst [smem:[#allocation9 + $0x8]] %s3938_s28  ;;  %s3940_s30 = smov [#allocation8]  }
  0x1d   :  { %72 = dma.general %s6340_s5, 16384, %s51_s23, %s3939_s29, %s3940_s30, [#allocation9], %s3160_s27, 0  }
  0x1e   :  { %89 = sst [smem:[#allocation11]] %s3930_s15  ;;  %s3941_s11 = smov [#allocation3]  }
  0x1f   :  { %91 = sst [smem:[#allocation11 + $0x1]] %s3930_s15  ;;  %s85_s12 = sshll.u32 %s3941_s11, 4  ;;  %s86_s12 = int_to_ptr.vmem [resolvable:$true] %s85_s12 }
  0x20   :  { %93 = sst [smem:[#allocation11 + $0x2]] %s3938_s28  ;;  %s3942_s13 = smov 256  }
  0x21   :  { %95 = sst [smem:[#allocation11 + $0x3]] %s3935_s24  ;;  %s3943_s14 = smov [#allocation5 + $0x1]  }
  0x22   :  { %97 = sst [smem:[#allocation11 + $0x4]] %s3936_s26  ;;  %s3944_s16 = smov [#allocation10]  }
  0x23   :  { %99 = sst [smem:[#allocation11 + $0x5]] %s3937_s1  ;;  %s3899_s26 = scalar_lea.hbm %s6342_s7, 4096 }
  0x24   :  { %101 = sst [smem:[#allocation11 + $0x6]] %s3942_s13  ;;  %p3900_p8 = scmp.ne.s32.totalorder %s6342_s7, %s3899_s26 }
  0x25   :  { %103 = sst [smem:[#allocation11 + $0x7]] %s3935_s24  ;;  %p3903_p9 = scmp.lt.u32.totalorder %s3899_s26, %s6342_s7 }
  0x26   :  { %105 = sst [smem:[#allocation11 + $0x8]] %s3938_s28 }
  0x27   :  { %107 = dma.general %s6341_s6, 8192, %s86_s12, %s3943_s14, %s3944_s16, [#allocation11], %s3160_s27, 0  }
  0x28   :  { %v144_v0 = vld [vmem:[#allocation6] sm:$0xff]  ;;  %v145_v2 = vld [vmem:[#allocation6 + $0x8] sm:$0xff]  ;;  %v123_v36 = vld [vmem:[%s6335_s0 + $0x18] sm:$0xff]  ;;  %p3905_p10 = pnand %p3903_p9, %p3900_p8 }
  0x29   :  { %v148_v1 = vld [vmem:[#allocation6 + $0x20] sm:$0xff]  ;;  %v149_v4 = vld [vmem:[#allocation6 + $0x28] sm:$0xff] }
  0x2a   :  { %v3164_v3 = vcombine.high %v144_v0, %v148_v1  ;;  %v3163_v5 = vcombine.low %v144_v0, %v148_v1  ;;  %v152_v6 = vld [vmem:[#allocation6 + $0x40] sm:$0xff]  ;;  %v3166_v8 = vcombine.high %v145_v2, %v149_v4  ;;  %v3165_v9 = vcombine.low %v145_v2, %v149_v4  ;;  %v153_v11 = vld [vmem:[#allocation6 + $0x48] sm:$0xff] }
  0x2b   :  { %v156_v7 = vld [vmem:[#allocation6 + $0x60] sm:$0xff]  ;;  %v157_v12 = vld [vmem:[#allocation6 + $0x68] sm:$0xff] }
  0x2c   :  { %v3172_v10 = vcombine.high %v152_v6, %v156_v7  ;;  %v160_v13 = vld [vmem:[#allocation6 + $0x80] sm:$0xff]  ;;  %631 = vmatprep.subr.bf16.mxu0 %v3164_v3  ;;  %v3174_v14 = vcombine.high %v153_v11, %v157_v12  ;;  %v161_v16 = vld [vmem:[#allocation6 + $0x88] sm:$0xff]  ;;  %704 = vmatprep.subr.bf16.mxu1 %v3166_v8  ;;  %v3171_v18 = vcombine.low %v152_v6, %v156_v7 }
  0x2d   :  { %v164_v15 = vld [vmem:[#allocation6 + $0xa0] sm:$0xff]  ;;  %v165_v17 = vld [vmem:[#allocation6 + $0xa8] sm:$0xff]  ;;  %632 = vmatpush1.bf16.msra.mxu0 %v3163_v5  ;;  %705 = vmatpush1.bf16.msra.mxu1 %v3165_v9  ;;  %v3173_v19 = vcombine.low %v153_v11, %v157_v12  ;;  %v146_v9 = vld [vmem:[#allocation6 + $0x10] sm:$0xff] }
  0x2e   :  { %633 = vmatprep.subr.bf16.mxu0 %v3172_v10  ;;  %v3180_v20 = vcombine.high %v160_v13, %v164_v15  ;;  %706 = vmatprep.subr.bf16.mxu1 %v3174_v14  ;;  %v3182_v21 = vcombine.high %v161_v16, %v165_v17  ;;  %v168_v22 = vld [vmem:[#allocation6 + $0xc0] sm:$0xff]  ;;  %v169_v24 = vld [vmem:[#allocation6 + $0xc8] sm:$0xff]  ;;  %v3179_v26 = vcombine.low %v160_v13, %v164_v15  ;;  %v150_v10 = vld [vmem:[#allocation6 + $0x30] sm:$0xff] }
  0x2f   :  { %v172_v23 = vld [vmem:[#allocation6 + $0xe0] sm:$0xff]  ;;  %v173_v25 = vld [vmem:[#allocation6 + $0xe8] sm:$0xff]  ;;  %v3181_v27 = vcombine.low %v161_v16, %v165_v17  ;;  %v147_v11 = vld [vmem:[#allocation6 + $0x18] sm:$0xff]  ;;  %v3168_v17 = vcombine.high %v146_v9, %v150_v10 }
  0x30   :  { %v3188_v28 = vcombine.high %v168_v22, %v172_v23  ;;  %v3190_v29 = vcombine.high %v169_v24, %v173_v25  ;;  %v176_v30 = vld [vmem:[#allocation6 + $0x100] sm:$0xff]  ;;  %v177_v32 = vld [vmem:[#allocation6 + $0x108] sm:$0xff]  ;;  %v3187_v34 = vcombine.low %v168_v22, %v172_v23  ;;  %v3189_v37 = vcombine.low %v169_v24, %v173_v25  ;;  %v151_v12 = vld [vmem:[#allocation6 + $0x38] sm:$0xff] }
  0x31   :  { %634 = vmatpush1.bf16.msra.mxu0 %v3171_v18  ;;  %707 = vmatpush1.bf16.msra.mxu1 %v3173_v19  ;;  %v180_v31 = vld [vmem:[#allocation6 + $0x120] sm:$0xff]  ;;  %v181_v33 = vld [vmem:[#allocation6 + $0x128] sm:$0xff]  ;;  %v122_v15 = vld [vmem:[%s6335_s0 + $0x10] sm:$0xff]  ;;  %v3170_v18 = vcombine.high %v147_v11, %v151_v12 }
  0x32   :  { %635 = vmatprep.subr.bf16.mxu0 %v3180_v20  ;;  %708 = vmatprep.subr.bf16.mxu1 %v3182_v21  ;;  %v121_v35 = vld [vmem:[%s6335_s0 + $0x8] sm:$0xff]  ;;  %v3196_v38 = vcombine.high %v176_v30, %v180_v31  ;;  %v3198_v40 = vcombine.high %v177_v32, %v181_v33  ;;  %v184_v41 = vld [vmem:[#allocation6 + $0x140] sm:$0xff]  ;;  %v3195_v45 = vcombine.low %v176_v30, %v180_v31  ;;  %v154_v19 = vld [vmem:[#allocation6 + $0x50] sm:$0xff] }
  0x33   :  { %v4021_v39 = vpack.c.bf16 %v123_v36, %v121_v35  ;;  %v188_v42 = vld [vmem:[#allocation6 + $0x160] sm:$0xff]  ;;  %v185_v43 = vld [vmem:[#allocation6 + $0x148] sm:$0xff]  ;;  %v3197_v46 = vcombine.low %v177_v32, %v181_v33  ;;  %v158_v20 = vld [vmem:[#allocation6 + $0x70] sm:$0xff] }
  0x34   :  { %v189_v44 = vld [vmem:[#allocation6 + $0x168] sm:$0xff]  ;;  %v3204_v47 = vcombine.high %v184_v41, %v188_v42  ;;  %v192_v49 = vld [vmem:[#allocation6 + $0x180] sm:$0xff]  ;;  %v3203_v53 = vcombine.low %v184_v41, %v188_v42  ;;  %v155_v21 = vld [vmem:[#allocation6 + $0x58] sm:$0xff]  ;;  %v3175_v35 = vcombine.low %v154_v19, %v158_v20 }
  0x35   :  { %636 = vmatpush1.bf16.msra.mxu0 %v3179_v26  ;;  %709 = vmatpush1.bf16.msra.mxu1 %v3181_v27  ;;  %v3206_v48 = vcombine.high %v185_v43, %v189_v44  ;;  %v196_v50 = vld [vmem:[#allocation6 + $0x1a0] sm:$0xff]  ;;  %v193_v51 = vld [vmem:[#allocation6 + $0x188] sm:$0xff]  ;;  %v3205_v54 = vcombine.low %v185_v43, %v189_v44  ;;  %v159_v23 = vld [vmem:[#allocation6 + $0x78] sm:$0xff]  ;;  %v3167_v26 = vcombine.low %v146_v9, %v150_v10 }
  0x36   :  { %637 = vmatprep.subr.bf16.mxu0 %v3188_v28  ;;  %710 = vmatprep.subr.bf16.mxu1 %v3190_v29  ;;  %v197_v52 = vld [vmem:[#allocation6 + $0x1a8] sm:$0xff]  ;;  %v3212_v55 = vcombine.high %v192_v49, %v196_v50  ;;  %v200_v57 = vld [vmem:[#allocation6 + $0x1c0] sm:$0xff]  ;;  %v3211_v61 = vcombine.low %v192_v49, %v196_v50  ;;  %v127_v25 = vld [vmem:[%s6335_s0 + $0x38] sm:$0xff]  ;;  %v3169_v27 = vcombine.low %v147_v11, %v151_v12 }
  0x37   :  { %3235 = vmatprep.mubr.msk.bf16.mxu0 %vm618_vm0, %v4021_v39  ;;  %3239 = vmatprep.mubr.msk.bf16.mxu1 %vm618_vm0, %v4021_v39  ;;  %v3214_v56 = vcombine.high %v193_v51, %v197_v52  ;;  %v204_v58 = vld [vmem:[#allocation6 + $0x1e0] sm:$0xff]  ;;  %v201_v59 = vld [vmem:[#allocation6 + $0x1c8] sm:$0xff]  ;;  %v3213_v62 = vcombine.low %v193_v51, %v197_v52  ;;  %v3176_v28 = vcombine.high %v154_v19, %v158_v20  ;;  %v162_v31 = vld [vmem:[#allocation6 + $0x90] sm:$0xff] }
  0x38   :  { %v205_v60 = vld [vmem:[#allocation6 + $0x1e8] sm:$0xff]  ;;  %v3220_v63 = vcombine.high %v200_v57, %v204_v58  ;;  %v208_v1 = vld [vmem:[#allocation6 + $0x200] sm:$0xff]  ;;  %v3219_v5 = vcombine.low %v200_v57, %v204_v58  ;;  %v3178_v29 = vcombine.high %v155_v21, %v159_v23  ;;  %v166_v32 = vld [vmem:[#allocation6 + $0xb0] sm:$0xff] }
  0x39   :  { %638 = vmatpush1.bf16.msra.mxu0 %v3187_v34  ;;  %711 = vmatpush1.bf16.msra.mxu1 %v3189_v37  ;;  %v3222_v0 = vcombine.high %v201_v59, %v205_v60  ;;  %v212_v2 = vld [vmem:[#allocation6 + $0x220] sm:$0xff]  ;;  %v209_v3 = vld [vmem:[#allocation6 + $0x208] sm:$0xff]  ;;  %v3221_v6 = vcombine.low %v201_v59, %v205_v60  ;;  %v163_v33 = vld [vmem:[#allocation6 + $0x98] sm:$0xff]  ;;  %v3183_v49 = vcombine.low %v162_v31, %v166_v32 }
  0x3a   :  { %639 = vmatprep.subr.bf16.mxu0 %v3196_v38  ;;  %712 = vmatprep.subr.bf16.mxu1 %v3198_v40  ;;  %v213_v4 = vld [vmem:[#allocation6 + $0x228] sm:$0xff]  ;;  %v3228_v7 = vcombine.high %v208_v1, %v212_v2  ;;  %v3227_v13 = vcombine.low %v208_v1, %v212_v2  ;;  %v120_v14 = vld [vmem:[%s6335_s0] sm:$0xff]  ;;  %v167_v34 = vld [vmem:[#allocation6 + $0xb8] sm:$0xff]  ;;  %v3177_v38 = vcombine.low %v155_v21, %v159_v23 }
  0x3b   :  { %v3230_v8 = vcombine.high %v209_v3, %v213_v4  ;;  %v3229_v16 = vcombine.low %v209_v3, %v213_v4  ;;  %v4033_v22 = vpack.c.bf16 %v122_v15, %v120_v14  ;;  %v125_v24 = vld [vmem:[%s6335_s0 + $0x28] sm:$0xff]  ;;  %v124_v36 = vld [vmem:[%s6335_s0 + $0x20] sm:$0xff]  ;;  %v126_v37 = vld [vmem:[%s6335_s0 + $0x30] sm:$0xff]  ;;  %v3184_v40 = vcombine.high %v162_v31, %v166_v32 }
  0x3c   :  { %v4041_v30 = vpack.c.bf16 %v127_v25, %v125_v24  ;;  %v3186_v41 = vcombine.high %v163_v33, %v167_v34  ;;  %v170_v42 = vld [vmem:[#allocation6 + $0xd0] sm:$0xff]  ;;  %v171_v44 = vld [vmem:[#allocation6 + $0xd8] sm:$0xff]  ;;  %v3185_v50 = vcombine.low %v163_v33, %v167_v34  ;;  %v128_v59 = vld [vmem:[%s6335_s0 + $0x40] sm:$0xff] }
  0x3d   :  { %640 = vmatpush1.bf16.msra.mxu0 %v3195_v45  ;;  %713 = vmatpush1.bf16.msra.mxu1 %v3197_v46  ;;  %v174_v43 = vld [vmem:[#allocation6 + $0xf0] sm:$0xff]  ;;  %v4055_v45 = vpack.c.bf16 %v126_v37, %v124_v36  ;;  %v175_v46 = vld [vmem:[#allocation6 + $0xf8] sm:$0xff] }
  0x3e   :  { %641 = vmatprep.subr.bf16.mxu0 %v3204_v47  ;;  %714 = vmatprep.subr.bf16.mxu1 %v3206_v48  ;;  %v129_v47 = vld [vmem:[%s6335_s0 + $0x48] sm:$0xff]  ;;  %v131_v48 = vld [vmem:[%s6335_s0 + $0x58] sm:$0xff]  ;;  %v3192_v51 = vcombine.high %v170_v42, %v174_v43  ;;  %v3194_v52 = vcombine.high %v171_v44, %v175_v46  ;;  %v3191_v58 = vcombine.low %v170_v42, %v174_v43  ;;  %v130_v60 = vld [vmem:[%s6335_s0 + $0x50] sm:$0xff] }
  0x3f   :  { %v183_v57 = vld [vmem:[#allocation6 + $0x138] sm:$0xff]  ;;  %v190_v1 = vld [vmem:[#allocation6 + $0x170] sm:$0xff]  ;;  %v4077_v3 = vpack.c.bf16 %v130_v60, %v128_v59 }
  0x40   :  { %v187_v2 = vld [vmem:[#allocation6 + $0x158] sm:$0xff]  ;;  %v194_v12 = vld [vmem:[#allocation6 + $0x190] sm:$0xff] }
  0x41   :  { %642 = vmatpush1.bf16.msra.mxu0 %v3203_v53  ;;  %715 = vmatpush1.bf16.msra.mxu1 %v3205_v54  ;;  %v4063_v53 = vpack.c.bf16 %v131_v48, %v129_v47  ;;  %v178_v54 = vld [vmem:[#allocation6 + $0x110] sm:$0xff]  ;;  %v191_v4 = vld [vmem:[#allocation6 + $0x178] sm:$0xff] }
  0x42   :  { %643 = vmatprep.subr.bf16.mxu0 %v3212_v55  ;;  %716 = vmatprep.subr.bf16.mxu1 %v3214_v56  ;;  %v182_v55 = vld [vmem:[#allocation6 + $0x130] sm:$0xff]  ;;  %v179_v56 = vld [vmem:[#allocation6 + $0x118] sm:$0xff]  ;;  %v3210_v10 = vcombine.high %v187_v2, %v191_v4  ;;  %v3209_v19 = vcombine.low %v187_v2, %v191_v4 }
  0x43   :  { %v195_v14 = vld [vmem:[#allocation6 + $0x198] sm:$0xff]  ;;  %v202_v23 = vld [vmem:[#allocation6 + $0x1d0] sm:$0xff] }
  0x44   :  { %v199_v15 = vld [vmem:[#allocation6 + $0x1b8] sm:$0xff]  ;;  %v206_v24 = vld [vmem:[#allocation6 + $0x1f0] sm:$0xff] }
  0x45   :  { %644 = vmatpush1.bf16.msra.mxu0 %v3211_v61  ;;  %717 = vmatpush1.bf16.msra.mxu1 %v3213_v62  ;;  %v3193_v61 = vcombine.low %v171_v44, %v175_v46  ;;  %v3200_v62 = vcombine.high %v178_v54, %v182_v55  ;;  %v3218_v21 = vcombine.high %v195_v14, %v199_v15  ;;  %v210_v33 = vld [vmem:[#allocation6 + $0x210] sm:$0xff]  ;;  %v215_v36 = vld [vmem:[#allocation6 + $0x238] sm:$0xff] }
  0x46   :  { %645 = vmatprep.subr.bf16.mxu0 %v3220_v63  ;;  %718 = vmatprep.subr.bf16.mxu1 %v3222_v0  ;;  %v3202_v63 = vcombine.high %v179_v56, %v183_v57  ;;  %v186_v0 = vld [vmem:[#allocation6 + $0x150] sm:$0xff]  ;;  %v3224_v31 = vcombine.high %v202_v23, %v206_v24  ;;  %v3223_v37 = vcombine.low %v202_v23, %v206_v24 }
  0x47   :  { %v3208_v9 = vcombine.high %v186_v0, %v190_v1  ;;  %v214_v34 = vld [vmem:[#allocation6 + $0x230] sm:$0xff] }
  0x48   :  { %v3231_v42 = vcombine.low %v210_v33, %v214_v34 }
  0x49   :  { %646 = vmatpush1.bf16.msra.mxu0 %v3219_v5  ;;  %719 = vmatpush1.bf16.msra.mxu1 %v3221_v6  ;;  %v133_v5 = vld [vmem:[%s6335_s0 + $0x68] sm:$0xff]  ;;  %v135_v6 = vld [vmem:[%s6335_s0 + $0x78] sm:$0xff] }
  0x4a   :  { %647 = vmatprep.subr.bf16.mxu0 %v3228_v7  ;;  %720 = vmatprep.subr.bf16.mxu1 %v3230_v8  ;;  %v3199_v7 = vcombine.low %v178_v54, %v182_v55  ;;  %v3201_v8 = vcombine.low %v179_v56, %v183_v57  ;;  %v4085_v11 = vpack.c.bf16 %v135_v6, %v133_v5 }
  0x4d   :  { %648 = vmatpush1.bf16.msra.mxu0 %v3227_v13  ;;  %721 = vmatpush1.bf16.msra.mxu1 %v3229_v16  ;;  %v198_v13 = vld [vmem:[#allocation6 + $0x1b0] sm:$0xff]  ;;  %v3207_v16 = vcombine.low %v186_v0, %v190_v1 }
  0x4e   :  { %777 = vmatprep.subr.bf16.mxu0 %v3168_v17  ;;  %850 = vmatprep.subr.bf16.mxu1 %v3170_v18  ;;  %v132_v17 = vld [vmem:[%s6335_s0 + $0x60] sm:$0xff]  ;;  %v134_v18 = vld [vmem:[%s6335_s0 + $0x70] sm:$0xff]  ;;  %v3216_v20 = vcombine.high %v194_v12, %v198_v13  ;;  %s3945_s0 = smov [#allocation4]  }
  0x4f   :  { %v142_v25 = vpack.c.bf16 %v134_v18, %v132_v17  ;;  %s116_s23 = sshll.u32 %s3945_s0, 4  ;;  %s117_s23 = int_to_ptr.vmem [resolvable:$true] %s116_s23 }
  0x50   :  { %664 = vmatmul.mubr.bf16.vlgmr.msra.gmra.mrb[0].mxu0 %v4033_v22  ;;  %737 = vmatmul.mubr.bf16.vlgmr.msra.gmra.mrb[0].mxu1 %v4033_v22 }
  0x51   :  { %778 = vmatpush1.bf16.msra.mxu0 %v3167_v26  ;;  %851 = vmatpush1.bf16.msra.mxu1 %v3169_v27  ;;  %v203_v26 = vld [vmem:[#allocation6 + $0x1d8] sm:$0xff] }
  0x52   :  { %779 = vmatprep.subr.bf16.mxu0 %v3176_v28  ;;  %852 = vmatprep.subr.bf16.mxu1 %v3178_v29  ;;  %v207_v27 = vld [vmem:[#allocation6 + $0x1f8] sm:$0xff]  ;;  %v3215_v28 = vcombine.low %v194_v12, %v198_v13  ;;  %v3217_v29 = vcombine.low %v195_v14, %v199_v15 }
  0x53   :  { %3236 = vmatprep.mubr.msk.bf16.mxu0 %vm618_vm0, %v4041_v30  ;;  %3240 = vmatprep.mubr.msk.bf16.mxu1 %vm618_vm0, %v4041_v30  ;;  %v3226_v32 = vcombine.high %v203_v26, %v207_v27 }
  0x55   :  { %780 = vmatpush1.bf16.msra.mxu0 %v3175_v35  ;;  %853 = vmatpush1.bf16.msra.mxu1 %v3177_v38  ;;  %v211_v35 = vld [vmem:[#allocation6 + $0x218] sm:$0xff]  ;;  %v3225_v38 = vcombine.low %v203_v26, %v207_v27 }
  0x56   :  { %781 = vmatprep.subr.bf16.mxu0 %v3184_v40  ;;  %854 = vmatprep.subr.bf16.mxu1 %v3186_v41  ;;  %v3232_v40 = vcombine.high %v210_v33, %v214_v34  ;;  %v3234_v41 = vcombine.high %v211_v35, %v215_v36  ;;  %v3233_v43 = vcombine.low %v211_v35, %v215_v36 }
  0x58   :  { %674 = vmatmul.mubr.bf16.gmra.mrb[4].mxu0 %v4055_v45  ;;  %747 = vmatmul.mubr.bf16.gmra.mrb[4].mxu1 %v4055_v45 }
  0x59   :  { %782 = vmatpush1.bf16.msra.mxu0 %v3183_v49  ;;  %855 = vmatpush1.bf16.msra.mxu1 %v3185_v50 }
  0x5a   :  { %783 = vmatprep.subr.bf16.mxu0 %v3192_v51  ;;  %856 = vmatprep.subr.bf16.mxu1 %v3194_v52 }
  0x5b   :  { %3237 = vmatprep.mubr.msk.bf16.mxu0 %vm618_vm0, %v4063_v53  ;;  %3241 = vmatprep.mubr.msk.bf16.mxu1 %vm618_vm0, %v4063_v53 }
  0x5d   :  { %784 = vmatpush1.bf16.msra.mxu0 %v3191_v58  ;;  %857 = vmatpush1.bf16.msra.mxu1 %v3193_v61 }
  0x5e   :  { %785 = vmatprep.subr.bf16.mxu0 %v3200_v62  ;;  %858 = vmatprep.subr.bf16.mxu1 %v3202_v63 }
  0x60   :  { %684 = vmatmul.mubr.bf16.gmra.mrb[8].mxu0 %v4077_v3  ;;  %757 = vmatmul.mubr.bf16.gmra.mrb[8].mxu1 %v4077_v3 }
  0x61   :  { %786 = vmatpush1.bf16.msra.mxu0 %v3199_v7  ;;  %859 = vmatpush1.bf16.msra.mxu1 %v3201_v8 }
  0x62   :  { %787 = vmatprep.subr.bf16.mxu0 %v3208_v9  ;;  %860 = vmatprep.subr.bf16.mxu1 %v3210_v10 }
  0x63   :  { %3238 = vmatprep.mubr.msk.bf16.mxu0 %vm618_vm0, %v4085_v11  ;;  %3242 = vmatprep.mubr.msk.bf16.mxu1 %vm618_vm0, %v4085_v11 }
  0x65   :  { %788 = vmatpush1.bf16.msra.mxu0 %v3207_v16  ;;  %861 = vmatpush1.bf16.msra.mxu1 %v3209_v19 }
  0x66   :  { %789 = vmatprep.subr.bf16.mxu0 %v3216_v20  ;;  %862 = vmatprep.subr.bf16.mxu1 %v3218_v21 }
  0x68   :  { %694 = vmatmul.mubr.bf16.gmra.mrb[12].mxu0 %v142_v25  ;;  %767 = vmatmul.mubr.bf16.gmra.mrb[12].mxu1 %v142_v25 }
  0x69   :  { %790 = vmatpush1.bf16.msra.mxu0 %v3215_v28  ;;  %863 = vmatpush1.bf16.msra.mxu1 %v3217_v29 }
  0x6a   :  { %791 = vmatprep.subr.bf16.mxu0 %v3224_v31  ;;  %864 = vmatprep.subr.bf16.mxu1 %v3226_v32 }
  0x6b   :  { %3243 = vmatprep.mubr.msk.bf16.mxu0 %vm618_vm0, %v4021_v39  ;;  %3247 = vmatprep.mubr.msk.bf16.mxu1 %vm618_vm0, %v4021_v39 }
  0x6d   :  { %792 = vmatpush1.bf16.msra.mxu0 %v3223_v37  ;;  %865 = vmatpush1.bf16.msra.mxu1 %v3225_v38 }
  0x6e   :  { %793 = vmatprep.subr.bf16.mxu0 %v3232_v40  ;;  %866 = vmatprep.subr.bf16.mxu1 %v3234_v41 }
  0x71   :  { %794 = vmatpush1.bf16.msra.mxu0 %v3231_v42  ;;  %867 = vmatpush1.bf16.msra.mxu1 %v3233_v43 }
  0x74   :  { %810 = vmatmul.mubr.bf16.vlgmr.msra.gmra.mrb[16].mxu0 %v4033_v22  ;;  %883 = vmatmul.mubr.bf16.vlgmr.msra.gmra.mrb[16].mxu1 %v4033_v22 }
  0x75   :  { %3244 = vmatprep.mubr.msk.bf16.mxu0 %vm618_vm0, %v4041_v30  ;;  %3248 = vmatprep.mubr.msk.bf16.mxu1 %vm618_vm0, %v4041_v30 }
  0x7c   :  { %820 = vmatmul.mubr.bf16.gmra.mrb[20].mxu0 %v4055_v45  ;;  %893 = vmatmul.mubr.bf16.gmra.mrb[20].mxu1 %v4055_v45 }
  0x7d   :  { %3245 = vmatprep.mubr.msk.bf16.mxu0 %vm618_vm0, %v4063_v53  ;;  %3249 = vmatprep.mubr.msk.bf16.mxu1 %vm618_vm0, %v4063_v53 }
  0x84   :  { %830 = vmatmul.mubr.bf16.gmra.mrb[24].mxu0 %v4077_v3  ;;  %903 = vmatmul.mubr.bf16.gmra.mrb[24].mxu1 %v4077_v3 }
  0x85   :  { %3246 = vmatprep.mubr.msk.bf16.mxu0 %vm618_vm0, %v4085_v11  ;;  %3250 = vmatprep.mubr.msk.bf16.mxu1 %vm618_vm0, %v4085_v11 }
  0x8c   :  { %840 = vmatmul.mubr.bf16.gmra.mrb[28].mxu0 %v142_v25  ;;  %913 = vmatmul.mubr.bf16.gmra.mrb[28].mxu1 %v142_v25 }
  0x8d   :  { %3908 = shalt.err (!%p3905_p10)  }
  0x8e   :  { %s3909_s30 = scalar_lea.vmem %s117_s23, 4096  ;;  %p3914_p12 = scmp.lt.s32.totalorder %s117_s23, %s117_s23 }
  0x8f   :  { %p3910_p11 = scmp.ne.s32.totalorder %s117_s23, %s3909_s30  ;;  %p3915_p13 = scmp.lt.s32.totalorder %s3909_s30, %s3909_s30 }
  0x91   :  { %p3916_p0 = por %p3915_p13, %p3914_p12 }
  0x93   :  { %p3917_p1 = pnand %p3916_p0, %p3910_p11 }
  0x95   :  { %3920 = shalt.err (!%p3917_p1)  }
  0x96   :  { %119 = dma.hbm_to_vmem [thread:$0]  %s6342_s7, 4096, %s117_s23, [#allocation5 + $0x2]  ;;  %v218_v39 = vlaneseq  ;;  %v4139_v44 = vld [vmem:[%s6337_s2] sm:$0xff] }
  0x98   :  { %v4133_v22 = vshrl.u32 %v218_v39, 7 }
  0x9a   :  { %6723 = vst [vmem:[#allocation20_spill] sm:$0xff] %v4133_v22  ;;  %v6347_v30 = vsub.s32 0, %v4133_v22  ;;  %v6346_v45 = vsub.s32 2, %v4133_v22  ;;  %v6345_v46 = vsub.s32 1, %v4133_v22  ;;  %v6344_v47 = vsub.s32 3, %v4133_v22 }
  0x9c   :  { %v221_v48 = vrot.slane %v4139_v44, %v6347_v30  ;;  %v4150_v49 = vrot.slane %v4139_v44, %v6346_v45  ;;  %v4155_v50 = vrot.slane %v4139_v44, %v6345_v46  ;;  %v4160_v51 = vrot.slane %v4139_v44, %v6344_v47 }
 0x123   :  { %v665_v52 = vpop.f32.mrb[0].mxu0  ;;  %v738_v54 = vpop.f32.mrb[0].mxu1 }
 0x124   :  { %v4162_v53 = vadd.f32 %v665_v52, %v221_v48  ;;  %v667_v55 = vpop.f32.mrb[1].mxu0  ;;  %v4165_v56 = vadd.f32 %v738_v54, %v4150_v49  ;;  %v740_v58 = vpop.f32.mrb[1].mxu1 }
 0x125   :  { %v4168_v57 = vadd.f32 %v667_v55, %v4155_v50  ;;  %v669_v59 = vpop.f32.mrb[2].mxu0  ;;  %v4171_v60 = vadd.f32 %v740_v58, %v4160_v51  ;;  %v742_v62 = vpop.f32.mrb[2].mxu1 }
 0x126   :  { %6724 = vst [vmem:[#allocation21_spill] sm:$0xff] %v4162_v53  ;;  %6725 = vst [vmem:[#allocation22_spill] sm:$0xff] %v4165_v56  ;;  %v4173_v61 = vadd.f32 %v669_v59, %v221_v48  ;;  %v671_v63 = vpop.f32.mrb[3].mxu0  ;;  %v4176_v0 = vadd.f32 %v742_v62, %v4150_v49  ;;  %v744_v2 = vpop.f32.mrb[3].mxu1 }
 0x127   :  { %6726 = vst [vmem:[#allocation23_spill] sm:$0xff] %v4168_v57  ;;  %6727 = vst [vmem:[#allocation24_spill] sm:$0xff] %v4171_v60  ;;  %v4179_v1 = vadd.f32 %v671_v63, %v4155_v50  ;;  %v4182_v3 = vadd.f32 %v744_v2, %v4160_v51 }
 0x128   :  { %6728 = vst [vmem:[#allocation25_spill] sm:$0xff] %v4173_v61  ;;  %6729 = vst [vmem:[#allocation26_spill] sm:$0xff] %v4176_v0 }
 0x129   :  { %6730 = vst [vmem:[#allocation27_spill] sm:$0xff] %v4179_v1  ;;  %6731 = vst [vmem:[#allocation28_spill] sm:$0xff] %v4182_v3 }
 0x12b   :  { %v675_v4 = vpop.f32.mrb[4].mxu0  ;;  %v748_v6 = vpop.f32.mrb[4].mxu1 }
 0x12c   :  { %v4184_v5 = vadd.f32 %v675_v4, %v221_v48  ;;  %v677_v7 = vpop.f32.mrb[5].mxu0  ;;  %v4187_v8 = vadd.f32 %v748_v6, %v4150_v49  ;;  %v750_v10 = vpop.f32.mrb[5].mxu1 }
 0x12d   :  { %v4190_v9 = vadd.f32 %v677_v7, %v4155_v50  ;;  %v679_v11 = vpop.f32.mrb[6].mxu0  ;;  %v4193_v12 = vadd.f32 %v750_v10, %v4160_v51  ;;  %v752_v14 = vpop.f32.mrb[6].mxu1  ;;  %v236_v7 = vsub.s32 4, %v4133_v22  ;;  %v244_v10 = vsub.s32 6, %v4133_v22 }
 0x12e   :  { %6732 = vst [vmem:[#allocation29_spill] sm:$0xff] %v4184_v5  ;;  %6733 = vst [vmem:[#allocation30_spill] sm:$0xff] %v4187_v8  ;;  %v4195_v13 = vadd.f32 %v679_v11, %v221_v48  ;;  %v681_v15 = vpop.f32.mrb[7].mxu0  ;;  %v4198_v16 = vadd.f32 %v752_v14, %v4150_v49  ;;  %v754_v18 = vpop.f32.mrb[7].mxu1  ;;  %v240_v11 = vsub.s32 5, %v4133_v22 }
 0x12f   :  { %6734 = vst [vmem:[#allocation31_spill] sm:$0xff] %v4190_v9  ;;  %6735 = vst [vmem:[#allocation32_spill] sm:$0xff] %v4193_v12  ;;  %v4201_v17 = vadd.f32 %v681_v15, %v4155_v50  ;;  %v4204_v19 = vadd.f32 %v754_v18, %v4160_v51  ;;  %v237_v14 = vrot.slane %v4139_v44, %v236_v7 }
 0x130   :  { %6736 = vst [vmem:[#allocation33_spill] sm:$0xff] %v4195_v13  ;;  %6737 = vst [vmem:[#allocation34_spill] sm:$0xff] %v4198_v16 }
 0x131   :  { %6738 = vst [vmem:[#allocation35_spill] sm:$0xff] %v4201_v17  ;;  %6739 = vst [vmem:[#allocation36_spill] sm:$0xff] %v4204_v19 }
 0x133   :  { %v685_v20 = vpop.f32.mrb[8].mxu0  ;;  %v758_v23 = vpop.f32.mrb[8].mxu1 }
 0x134   :  { %v4206_v21 = vadd.f32 %v685_v20, %v221_v48  ;;  %v687_v24 = vpop.f32.mrb[9].mxu0  ;;  %v4209_v25 = vadd.f32 %v758_v23, %v4150_v49  ;;  %v760_v27 = vpop.f32.mrb[9].mxu1 }
 0x135   :  { %v4212_v26 = vadd.f32 %v687_v24, %v4155_v50  ;;  %v689_v28 = vpop.f32.mrb[10].mxu0  ;;  %v4215_v29 = vadd.f32 %v760_v27, %v4160_v51  ;;  %v762_v32 = vpop.f32.mrb[10].mxu1 }
 0x136   :  { %6740 = vst [vmem:[#allocation37_spill] sm:$0xff] %v4206_v21  ;;  %6741 = vst [vmem:[#allocation38_spill] sm:$0xff] %v4209_v25  ;;  %v4217_v31 = vadd.f32 %v689_v28, %v221_v48  ;;  %v691_v33 = vpop.f32.mrb[11].mxu0  ;;  %v4220_v34 = vadd.f32 %v762_v32, %v4150_v49  ;;  %v764_v36 = vpop.f32.mrb[11].mxu1 }
 0x137   :  { %6742 = vst [vmem:[#allocation39_spill] sm:$0xff] %v4212_v26  ;;  %6743 = vst [vmem:[#allocation40_spill] sm:$0xff] %v4215_v29  ;;  %v4223_v35 = vadd.f32 %v691_v33, %v4155_v50  ;;  %v4226_v37 = vadd.f32 %v764_v36, %v4160_v51 }
 0x138   :  { %6744 = vst [vmem:[#allocation41_spill] sm:$0xff] %v4217_v31  ;;  %6745 = vst [vmem:[#allocation42_spill] sm:$0xff] %v4220_v34 }
 0x139   :  { %6746 = vst [vmem:[#allocation43_spill] sm:$0xff] %v4223_v35  ;;  %6747 = vst [vmem:[#allocation44_spill] sm:$0xff] %v4226_v37 }
 0x13b   :  { %v695_v38 = vpop.f32.mrb[12].mxu0  ;;  %v768_v41 = vpop.f32.mrb[12].mxu1 }
 0x13c   :  { %v4228_v40 = vadd.f32 %v695_v38, %v221_v48  ;;  %v697_v42 = vpop.f32.mrb[13].mxu0  ;;  %v4231_v43 = vadd.f32 %v768_v41, %v4150_v49  ;;  %v770_v52 = vpop.f32.mrb[13].mxu1 }
 0x13d   :  { %v4234_v39 = vadd.f32 %v697_v42, %v4155_v50  ;;  %v699_v54 = vpop.f32.mrb[14].mxu0  ;;  %v4237_v55 = vadd.f32 %v770_v52, %v4160_v51  ;;  %v772_v59 = vpop.f32.mrb[14].mxu1 }
 0x13e   :  { %6748 = vst [vmem:[#allocation45_spill] sm:$0xff] %v4228_v40  ;;  %6749 = vst [vmem:[#allocation46_spill] sm:$0xff] %v4231_v43  ;;  %v4239_v58 = vadd.f32 %v699_v54, %v221_v48  ;;  %v701_v62 = vpop.f32.mrb[15].mxu0  ;;  %v4242_v63 = vadd.f32 %v772_v59, %v4150_v49  ;;  %v774_v4 = vpop.f32.mrb[15].mxu1  ;;  %v248_v48 = vsub.s32 7, %v4133_v22  ;;  %v4256_v49 = vrot.slane %v4139_v44, %v244_v10 }
 0x13f   :  { %6750 = vst [vmem:[#allocation47_spill] sm:$0xff] %v4234_v39  ;;  %6751 = vst [vmem:[#allocation48_spill] sm:$0xff] %v4237_v55  ;;  %v4245_v2 = vadd.f32 %v701_v62, %v4155_v50  ;;  %v4248_v6 = vadd.f32 %v774_v4, %v4160_v51  ;;  %v4259_v50 = vrot.slane %v4139_v44, %v240_v11 }
 0x140   :  { %6752 = vst [vmem:[#allocation49_spill] sm:$0xff] %v4239_v58  ;;  %6753 = vst [vmem:[#allocation50_spill] sm:$0xff] %v4242_v63  ;;  %v4262_v15 = vrot.slane %v4139_v44, %v248_v48 }
 0x141   :  { %6754 = vst [vmem:[#allocation51_spill] sm:$0xff] %v4245_v2  ;;  %6755 = vst [vmem:[#allocation52_spill] sm:$0xff] %v4248_v6 }
 0x147   :  { %v811_v51 = vpop.f32.mrb[16].mxu0  ;;  %v884_v20 = vpop.f32.mrb[16].mxu1 }
 0x148   :  { %v4264_v18 = vadd.f32 %v811_v51, %v237_v14  ;;  %v813_v23 = vpop.f32.mrb[17].mxu0  ;;  %v4267_v24 = vadd.f32 %v884_v20, %v4256_v49  ;;  %v886_v28 = vpop.f32.mrb[17].mxu1 }
 0x149   :  { %v4270_v27 = vadd.f32 %v813_v23, %v4259_v50  ;;  %v815_v32 = vpop.f32.mrb[18].mxu0  ;;  %v4273_v33 = vadd.f32 %v886_v28, %v4262_v15  ;;  %v888_v44 = vpop.f32.mrb[18].mxu1 }
 0x14a   :  { %6756 = vst [vmem:[#allocation53_spill] sm:$0xff] %v4264_v18  ;;  %6757 = vst [vmem:[#allocation54_spill] sm:$0xff] %v4267_v24  ;;  %v4275_v36 = vadd.f32 %v815_v32, %v237_v14  ;;  %v817_v38 = vpop.f32.mrb[19].mxu0  ;;  %v4278_v41 = vadd.f32 %v888_v44, %v4256_v49  ;;  %v890_v52 = vpop.f32.mrb[19].mxu1 }
 0x14b   :  { %6758 = vst [vmem:[#allocation55_spill] sm:$0xff] %v4270_v27  ;;  %6759 = vst [vmem:[#allocation56_spill] sm:$0xff] %v4273_v33  ;;  %v4281_v42 = vadd.f32 %v817_v38, %v4259_v50  ;;  %v4284_v54 = vadd.f32 %v890_v52, %v4262_v15 }
 0x14c   :  { %6760 = vst [vmem:[#allocation57_spill] sm:$0xff] %v4275_v36  ;;  %6761 = vst [vmem:[#allocation58_spill] sm:$0xff] %v4278_v41 }
 0x14d   :  { %6762 = vst [vmem:[#allocation59_spill] sm:$0xff] %v4281_v42  ;;  %6763 = vst [vmem:[#allocation60_spill] sm:$0xff] %v4284_v54 }
 0x14f   :  { %v821_v59 = vpop.f32.mrb[20].mxu0  ;;  %v894_v4 = vpop.f32.mrb[20].mxu1 }
 0x150   :  { %v4286_v62 = vadd.f32 %v821_v59, %v237_v14  ;;  %v823_v7 = vpop.f32.mrb[21].mxu0  ;;  %v4289_v10 = vadd.f32 %v894_v4, %v4256_v49  ;;  %v896_v48 = vpop.f32.mrb[21].mxu1 }
 0x151   :  { %v4292_v11 = vadd.f32 %v823_v7, %v4259_v50  ;;  %v825_v51 = vpop.f32.mrb[22].mxu0  ;;  %v4295_v20 = vadd.f32 %v896_v48, %v4262_v15  ;;  %v898_v28 = vpop.f32.mrb[22].mxu1 }
 0x152   :  { %6764 = vst [vmem:[#allocation61_spill] sm:$0xff] %v4286_v62  ;;  %6765 = vst [vmem:[#allocation62_spill] sm:$0xff] %v4289_v10  ;;  %v4297_v23 = vadd.f32 %v825_v51, %v237_v14  ;;  %v827_v32 = vpop.f32.mrb[23].mxu0  ;;  %v4300_v44 = vadd.f32 %v898_v28, %v4256_v49  ;;  %v900_v52 = vpop.f32.mrb[23].mxu1 }
 0x153   :  { %6766 = vst [vmem:[#allocation63_spill] sm:$0xff] %v4292_v11  ;;  %6767 = vst [vmem:[#allocation64_spill] sm:$0xff] %v4295_v20  ;;  %v4303_v38 = vadd.f32 %v827_v32, %v4259_v50  ;;  %v4306_v59 = vadd.f32 %v900_v52, %v4262_v15 }
 0x154   :  { %6768 = vst [vmem:[#allocation65_spill] sm:$0xff] %v4297_v23  ;;  %6769 = vst [vmem:[#allocation66_spill] sm:$0xff] %v4300_v44 }
 0x155   :  { %6770 = vst [vmem:[#allocation67_spill] sm:$0xff] %v4303_v38  ;;  %6771 = vst [vmem:[#allocation68_spill] sm:$0xff] %v4306_v59 }
 0x157   :  { %v831_v4 = vpop.f32.mrb[24].mxu0  ;;  %v904_v47 = vpop.f32.mrb[24].mxu1 }
 0x158   :  { %v4308_v7 = vadd.f32 %v831_v4, %v237_v14  ;;  %v833_v48 = vpop.f32.mrb[25].mxu0  ;;  %v4311_v51 = vadd.f32 %v904_v47, %v4256_v49  ;;  %v906_v28 = vpop.f32.mrb[25].mxu1 }
 0x159   :  { %v4314_v46 = vadd.f32 %v833_v48, %v4259_v50  ;;  %v835_v45 = vpop.f32.mrb[26].mxu0  ;;  %v4317_v32 = vadd.f32 %v906_v28, %v4262_v15  ;;  %v908_v52 = vpop.f32.mrb[26].mxu1 }
 0x15a   :  { %6772 = vst [vmem:[#allocation69_spill] sm:$0xff] %v4308_v7  ;;  %6773 = vst [vmem:[#allocation70_spill] sm:$0xff] %v4311_v51  ;;  %v4319_v30 = vadd.f32 %v835_v45, %v237_v14  ;;  %v837_v22 = vpop.f32.mrb[27].mxu0  ;;  %v4322_v4 = vadd.f32 %v908_v52, %v4256_v49  ;;  %v910_v47 = vpop.f32.mrb[27].mxu1 }
 0x15b   :  { %6774 = vst [vmem:[#allocation71_spill] sm:$0xff] %v4314_v46  ;;  %6775 = vst [vmem:[#allocation72_spill] sm:$0xff] %v4317_v32  ;;  %v4325_v6 = vadd.f32 %v837_v22, %v4259_v50  ;;  %v4328_v2 = vadd.f32 %v910_v47, %v4262_v15 }
 0x15c   :  { %6776 = vst [vmem:[#allocation73_spill] sm:$0xff] %v4319_v30  ;;  %6777 = vst [vmem:[#allocation74_spill] sm:$0xff] %v4322_v4 }
 0x15d   :  { %6778 = vst [vmem:[#allocation75_spill] sm:$0xff] %v4325_v6  ;;  %6779 = vst [vmem:[#allocation76_spill] sm:$0xff] %v4328_v2 }
 0x15f   :  { %v841_v48 = vpop.f32.mrb[28].mxu0  ;;  %v914_v58 = vpop.f32.mrb[28].mxu1 }
 0x160   :  { %v4330_v63 = vadd.f32 %v841_v48, %v237_v14  ;;  %v843_v28 = vpop.f32.mrb[29].mxu0  ;;  %v4333_v45 = vadd.f32 %v914_v58, %v4256_v49  ;;  %v916_v52 = vpop.f32.mrb[29].mxu1 }
 0x161   :  { %v4336_v55 = vadd.f32 %v843_v28, %v4259_v50  ;;  %v845_v39 = vpop.f32.mrb[30].mxu0  ;;  %v4339_v22 = vadd.f32 %v916_v52, %v4262_v15  ;;  %v918_v47 = vpop.f32.mrb[30].mxu1 }
 0x162   :  { %6780 = vst [vmem:[#allocation77_spill] sm:$0xff] %v4330_v63  ;;  %6781 = vst [vmem:[#allocation78_spill] sm:$0xff] %v4333_v45  ;;  %v4341_v43 = vadd.f32 %v845_v39, %v237_v14  ;;  %v847_v40 = vpop.f32.mrb[31].mxu0  ;;  %v4344_v48 = vadd.f32 %v918_v47, %v4256_v49  ;;  %v920_v58 = vpop.f32.mrb[31].mxu1 }
 0x163   :  { %6782 = vst [vmem:[#allocation79_spill] sm:$0xff] %v4336_v55  ;;  %6783 = vst [vmem:[#allocation80_spill] sm:$0xff] %v4339_v22  ;;  %v4347_v63 = vadd.f32 %v847_v40, %v4259_v50  ;;  %v4350_v45 = vadd.f32 %v920_v58, %v4262_v15 }
 0x164   :  { %6784 = vst [vmem:[#allocation81_spill] sm:$0xff] %v4341_v43  ;;  %6785 = vst [vmem:[#allocation82_spill] sm:$0xff] %v4344_v48 }
 0x165   :  { %6786 = vst [vmem:[#allocation83_spill] sm:$0xff] %v4347_v63  ;;  %6787 = vst [vmem:[#allocation84_spill] sm:$0xff] %v4350_v45 }
 0x166   :  { %3923 = dma.done.wait [#allocation5], 16384 }
 0x167   :  { %3924 = vsyncadd [#allocation5], 4294950912  ;;  %v6350_v28 = vmov 0   ;;  %v4354_v39 = vld [vmem:[#allocation2 + $0x8] sm:$0xff]  ;;  %v4356_v14 = vld [vmem:[#allocation2 + $0x18] sm:$0xff] }
 0x168   :  { %1087 = vmatprep.mubr.bf16.mxu0 %v6350_v28  ;;  %1128 = vmatprep.mubr.bf16.mxu1 %v6350_v28  ;;  %v4358_v49 = vld [vmem:[#allocation2] sm:$0xff]  ;;  %v4362_v40 = vld [vmem:[#allocation2 + $0x10] sm:$0xff]  ;;  %v4364_v50 = vld [vmem:[#allocation2 + $0x48] sm:$0xff] }
 0x169   :  { %1055 = vmatprep.subr.bf16.mxu0 %v4354_v39  ;;  %1096 = vmatprep.subr.bf16.mxu1 %v4356_v14  ;;  %v4366_v15 = vld [vmem:[#allocation2 + $0x58] sm:$0xff]  ;;  %v4372_v52 = vld [vmem:[#allocation2 + $0x40] sm:$0xff]  ;;  %v4374_v47 = vld [vmem:[#allocation2 + $0x50] sm:$0xff] }
 0x16a   :  { %1056 = vmatpush1.bf16.msra.mxu0 %v4358_v49  ;;  %1097 = vmatpush1.bf16.msra.mxu1 %v4362_v40  ;;  %v4376_v58 = vld [vmem:[#allocation2 + $0x88] sm:$0xff]  ;;  %v4378_v28 = vld [vmem:[#allocation2 + $0x98] sm:$0xff]  ;;  %v4384_v45 = vld [vmem:[#allocation2 + $0x80] sm:$0xff] }
 0x16b   :  { %1057 = vmatprep.subr.bf16.mxu0 %v4364_v50  ;;  %1098 = vmatprep.subr.bf16.mxu1 %v4366_v15  ;;  %v4386_v63 = vld [vmem:[#allocation2 + $0x90] sm:$0xff]  ;;  %v4388_v48 = vld [vmem:[#allocation2 + $0xc8] sm:$0xff]  ;;  %v4390_v43 = vld [vmem:[#allocation2 + $0xd8] sm:$0xff] }
 0x16c   :  { %v4396_v22 = vld [vmem:[#allocation2 + $0xc0] sm:$0xff]  ;;  %v4398_v55 = vld [vmem:[#allocation2 + $0xd0] sm:$0xff]  ;;  %v4400_v2 = vld [vmem:[#allocation2 + $0x108] sm:$0xff] }
 0x16d   :  { %v4402_v6 = vld [vmem:[#allocation2 + $0x118] sm:$0xff]  ;;  %v4408_v4 = vld [vmem:[#allocation2 + $0x100] sm:$0xff]  ;;  %v4410_v30 = vld [vmem:[#allocation2 + $0x110] sm:$0xff] }
 0x16e   :  { %1058 = vmatpush1.bf16.msra.mxu0 %v4372_v52  ;;  %1099 = vmatpush1.bf16.msra.mxu1 %v4374_v47  ;;  %v4412_v37 = vld [vmem:[#allocation2 + $0x148] sm:$0xff]  ;;  %v4414_v35 = vld [vmem:[#allocation2 + $0x158] sm:$0xff]  ;;  %v4420_v34 = vld [vmem:[#allocation2 + $0x140] sm:$0xff] }
 0x16f   :  { %1059 = vmatprep.subr.bf16.mxu0 %v4376_v58  ;;  %1100 = vmatprep.subr.bf16.mxu1 %v4378_v28  ;;  %v4422_v31 = vld [vmem:[#allocation2 + $0x150] sm:$0xff]  ;;  %v4424_v32 = vld [vmem:[#allocation2 + $0x188] sm:$0xff]  ;;  %v4426_v46 = vld [vmem:[#allocation2 + $0x198] sm:$0xff] }
 0x170   :  { %v4432_v51 = vld [vmem:[#allocation2 + $0x180] sm:$0xff]  ;;  %v4434_v7 = vld [vmem:[#allocation2 + $0x190] sm:$0xff]  ;;  %v4436_v29 = vld [vmem:[#allocation2 + $0x1c8] sm:$0xff] }
 0x171   :  { %v4438_v26 = vld [vmem:[#allocation2 + $0x1d8] sm:$0xff]  ;;  %v4444_v25 = vld [vmem:[#allocation2 + $0x1c0] sm:$0xff]  ;;  %v4446_v21 = vld [vmem:[#allocation2 + $0x1d0] sm:$0xff] }
 0x172   :  { %1060 = vmatpush1.bf16.msra.mxu0 %v4384_v45  ;;  %1101 = vmatpush1.bf16.msra.mxu1 %v4386_v63  ;;  %v4448_v59 = vld [vmem:[#allocation2 + $0x208] sm:$0xff]  ;;  %v4450_v38 = vld [vmem:[#allocation2 + $0x218] sm:$0xff]  ;;  %v4456_v44 = vld [vmem:[#allocation2 + $0x200] sm:$0xff] }
 0x173   :  { %1061 = vmatprep.subr.bf16.mxu0 %v4388_v48  ;;  %1102 = vmatprep.subr.bf16.mxu1 %v4390_v43  ;;  %v4458_v23 = vld [vmem:[#allocation2 + $0x210] sm:$0xff]  ;;  %v4460_v19 = vld [vmem:[#allocation2 + $0x248] sm:$0xff]  ;;  %v4462_v17 = vld [vmem:[#allocation2 + $0x258] sm:$0xff] }
 0x174   :  { %6788 = vst [vmem:[#allocation85_spill] sm:$0xff] %v4458_v23  ;;  %6789 = vst [vmem:[#allocation86_spill] sm:$0xff] %v4460_v19  ;;  %v4468_v16 = vld [vmem:[#allocation2 + $0x240] sm:$0xff]  ;;  %v4470_v13 = vld [vmem:[#allocation2 + $0x250] sm:$0xff] }
 0x175   :  { %6790 = vst [vmem:[#allocation87_spill] sm:$0xff] %v4462_v17  ;;  %6791 = vst [vmem:[#allocation88_spill] sm:$0xff] %v4468_v16  ;;  %v4472_v20 = vld [vmem:[#allocation2 + $0x288] sm:$0xff]  ;;  %v4474_v11 = vld [vmem:[#allocation2 + $0x298] sm:$0xff] }
 0x176   :  { %1062 = vmatpush1.bf16.msra.mxu0 %v4396_v22  ;;  %1103 = vmatpush1.bf16.msra.mxu1 %v4398_v55  ;;  %6792 = vst [vmem:[#allocation89_spill] sm:$0xff] %v4470_v13  ;;  %6793 = vst [vmem:[#allocation90_spill] sm:$0xff] %v4472_v20  ;;  %v4480_v10 = vld [vmem:[#allocation2 + $0x280] sm:$0xff]  ;;  %v4482_v62 = vld [vmem:[#allocation2 + $0x290] sm:$0xff] }
 0x177   :  { %1063 = vmatprep.subr.bf16.mxu0 %v4400_v2  ;;  %1104 = vmatprep.subr.bf16.mxu1 %v4402_v6  ;;  %6794 = vst [vmem:[#allocation91_spill] sm:$0xff] %v4474_v11  ;;  %6795 = vst [vmem:[#allocation92_spill] sm:$0xff] %v4480_v10  ;;  %v4484_v12 = vld [vmem:[#allocation2 + $0x2c8] sm:$0xff]  ;;  %v4486_v9 = vld [vmem:[#allocation2 + $0x2d8] sm:$0xff] }
 0x178   :  { %6796 = vst [vmem:[#allocation93_spill] sm:$0xff] %v4482_v62  ;;  %6797 = vst [vmem:[#allocation94_spill] sm:$0xff] %v4484_v12  ;;  %v4492_v8 = vld [vmem:[#allocation2 + $0x2c0] sm:$0xff]  ;;  %v4494_v5 = vld [vmem:[#allocation2 + $0x2d0] sm:$0xff] }
 0x179   :  { %6798 = vst [vmem:[#allocation95_spill] sm:$0xff] %v4486_v9  ;;  %6799 = vst [vmem:[#allocation96_spill] sm:$0xff] %v4492_v8  ;;  %v4496_v54 = vld [vmem:[#allocation2 + $0x308] sm:$0xff]  ;;  %v4498_v42 = vld [vmem:[#allocation2 + $0x318] sm:$0xff] }
 0x17a   :  { %1064 = vmatpush1.bf16.msra.mxu0 %v4408_v4  ;;  %1105 = vmatpush1.bf16.msra.mxu1 %v4410_v30  ;;  %6800 = vst [vmem:[#allocation97_spill] sm:$0xff] %v4494_v5  ;;  %6801 = vst [vmem:[#allocation98_spill] sm:$0xff] %v4496_v54  ;;  %v4504_v41 = vld [vmem:[#allocation2 + $0x300] sm:$0xff]  ;;  %v4506_v36 = vld [vmem:[#allocation2 + $0x310] sm:$0xff] }
 0x17b   :  { %1065 = vmatprep.subr.bf16.mxu0 %v4412_v37  ;;  %1106 = vmatprep.subr.bf16.mxu1 %v4414_v35  ;;  %6802 = vst [vmem:[#allocation99_spill] sm:$0xff] %v4498_v42  ;;  %6803 = vst [vmem:[#allocation100_spill] sm:$0xff] %v4504_v41  ;;  %v4508_v3 = vld [vmem:[#allocation2 + $0x348] sm:$0xff]  ;;  %v4510_v1 = vld [vmem:[#allocation2 + $0x358] sm:$0xff] }
 0x17c   :  { %6804 = vst [vmem:[#allocation101_spill] sm:$0xff] %v4506_v36  ;;  %6805 = vst [vmem:[#allocation102_spill] sm:$0xff] %v4508_v3  ;;  %v4516_v0 = vld [vmem:[#allocation2 + $0x340] sm:$0xff]  ;;  %v4518_v61 = vld [vmem:[#allocation2 + $0x350] sm:$0xff] }
 0x17d   :  { %6806 = vst [vmem:[#allocation103_spill] sm:$0xff] %v4510_v1  ;;  %6807 = vst [vmem:[#allocation104_spill] sm:$0xff] %v4516_v0  ;;  %v4520_v33 = vld [vmem:[#allocation2 + $0x388] sm:$0xff]  ;;  %v4522_v27 = vld [vmem:[#allocation2 + $0x398] sm:$0xff] }
 0x17e   :  { %1066 = vmatpush1.bf16.msra.mxu0 %v4420_v34  ;;  %1107 = vmatpush1.bf16.msra.mxu1 %v4422_v31  ;;  %6808 = vst [vmem:[#allocation105_spill] sm:$0xff] %v4518_v61  ;;  %6809 = vst [vmem:[#allocation106_spill] sm:$0xff] %v4520_v33  ;;  %v4528_v24 = vld [vmem:[#allocation2 + $0x380] sm:$0xff]  ;;  %v4530_v18 = vld [vmem:[#allocation2 + $0x390] sm:$0xff] }
 0x17f   :  { %1067 = vmatprep.subr.bf16.mxu0 %v4424_v32  ;;  %1108 = vmatprep.subr.bf16.mxu1 %v4426_v46  ;;  %6810 = vst [vmem:[#allocation107_spill] sm:$0xff] %v4522_v27  ;;  %6811 = vst [vmem:[#allocation108_spill] sm:$0xff] %v4528_v24  ;;  %v4532_v60 = vld [vmem:[#allocation2 + $0x3c8] sm:$0xff]  ;;  %v4534_v57 = vld [vmem:[#allocation2 + $0x3d8] sm:$0xff] }
 0x180   :  { %6812 = vst [vmem:[#allocation109_spill] sm:$0xff] %v4530_v18  ;;  %6813 = vst [vmem:[#allocation110_spill] sm:$0xff] %v4532_v60  ;;  %v4540_v56 = vld [vmem:[#allocation2 + $0x3c0] sm:$0xff]  ;;  %v4542_v53 = vld [vmem:[#allocation2 + $0x3d0] sm:$0xff] }
 0x181   :  { %6814 = vst [vmem:[#allocation111_spill] sm:$0xff] %v4534_v57  ;;  %6815 = vst [vmem:[#allocation112_spill] sm:$0xff] %v4540_v56 }
 0x182   :  { %1068 = vmatpush1.bf16.msra.mxu0 %v4432_v51  ;;  %1109 = vmatpush1.bf16.msra.mxu1 %v4434_v7  ;;  %6816 = vst [vmem:[#allocation113_spill] sm:$0xff] %v4542_v53 }
 0x183   :  { %1069 = vmatprep.subr.bf16.mxu0 %v4436_v29  ;;  %1110 = vmatprep.subr.bf16.mxu1 %v4438_v26 }
 0x186   :  { %1070 = vmatpush1.bf16.msra.mxu0 %v4444_v25  ;;  %1111 = vmatpush1.bf16.msra.mxu1 %v4446_v21 }
 0x187   :  { %1071 = vmatprep.subr.bf16.mxu0 %v4448_v59  ;;  %1112 = vmatprep.subr.bf16.mxu1 %v4450_v38 }
 0x18a   :  { %1072 = vmatpush1.bf16.msra.mxu0 %v4456_v44  ;;  %1113 = vmatpush1.bf16.msra.mxu1 %v4458_v23 }
 0x18b   :  { %1073 = vmatprep.subr.bf16.mxu0 %v4460_v19  ;;  %1114 = vmatprep.subr.bf16.mxu1 %v4462_v17 }
 0x18e   :  { %1074 = vmatpush1.bf16.msra.mxu0 %v4468_v16  ;;  %1115 = vmatpush1.bf16.msra.mxu1 %v4470_v13 }
 0x18f   :  { %1075 = vmatprep.subr.bf16.mxu0 %v4472_v20  ;;  %1116 = vmatprep.subr.bf16.mxu1 %v4474_v11 }
 0x192   :  { %1076 = vmatpush1.bf16.msra.mxu0 %v4480_v10  ;;  %1117 = vmatpush1.bf16.msra.mxu1 %v4482_v62 }
 0x193   :  { %1077 = vmatprep.subr.bf16.mxu0 %v4484_v12  ;;  %1118 = vmatprep.subr.bf16.mxu1 %v4486_v9 }
 0x196   :  { %1078 = vmatpush1.bf16.msra.mxu0 %v4492_v8  ;;  %1119 = vmatpush1.bf16.msra.mxu1 %v4494_v5 }
 0x197   :  { %1079 = vmatprep.subr.bf16.mxu0 %v4496_v54  ;;  %1120 = vmatprep.subr.bf16.mxu1 %v4498_v42 }
 0x19a   :  { %1080 = vmatpush1.bf16.msra.mxu0 %v4504_v41  ;;  %1121 = vmatpush1.bf16.msra.mxu1 %v4506_v36 }
 0x19b   :  { %1081 = vmatprep.subr.bf16.mxu0 %v4508_v3  ;;  %1122 = vmatprep.subr.bf16.mxu1 %v4510_v1 }
 0x19e   :  { %1082 = vmatpush1.bf16.msra.mxu0 %v4516_v0  ;;  %1123 = vmatpush1.bf16.msra.mxu1 %v4518_v61  ;;  %v6823_v61 = vmov 0  }
 0x19f   :  { %1083 = vmatprep.subr.bf16.mxu0 %v4520_v33  ;;  %1124 = vmatprep.subr.bf16.mxu1 %v4522_v27  ;;  %v4544_v27 = vld [vmem:[#allocation2 + $0x28] sm:$0xff]  ;;  %v4546_v33 = vld [vmem:[#allocation2 + $0x38] sm:$0xff] }
 0x1a0   :  { %6817 = vst [vmem:[#allocation114_spill] sm:$0xff] %v4544_v27  ;;  %6818 = vst [vmem:[#allocation115_spill] sm:$0xff] %v4546_v33 }
 0x1a2   :  { %1084 = vmatpush1.bf16.msra.mxu0 %v4528_v24  ;;  %1125 = vmatpush1.bf16.msra.mxu1 %v4530_v18  ;;  %v4552_v18 = vld [vmem:[#allocation2 + $0x20] sm:$0xff]  ;;  %v4558_v24 = vld [vmem:[#allocation2 + $0x78] sm:$0xff] }
 0x1a3   :  { %1085 = vmatprep.subr.bf16.mxu0 %v4532_v60  ;;  %1126 = vmatprep.subr.bf16.mxu1 %v4534_v57  ;;  %6819 = vst [vmem:[#allocation116_spill] sm:$0xff] %v4552_v18  ;;  %v4554_v60 = vld [vmem:[#allocation2 + $0x30] sm:$0xff]  ;;  %v4556_v57 = vld [vmem:[#allocation2 + $0x68] sm:$0xff]  ;;  %6822 = vst [vmem:[#allocation119_spill] sm:$0xff] %v4558_v24 }
 0x1a4   :  { %6820 = vst [vmem:[#allocation117_spill] sm:$0xff] %v4554_v60  ;;  %6821 = vst [vmem:[#allocation118_spill] sm:$0xff] %v4556_v57 }
 0x1a6   :  { %1086 = vmatpush1.bf16.msra.mxu0 %v4540_v56  ;;  %1127 = vmatpush1.bf16.msra.mxu1 %v4542_v53  ;;  %v4570_v53 = vld [vmem:[#allocation2 + $0xa8] sm:$0xff]  ;;  %v4572_v56 = vld [vmem:[#allocation2 + $0xb8] sm:$0xff] }
 0x1a7   :  { %1137 = vmatprep.subr.bf16.mxu0 %v4544_v27  ;;  %1178 = vmatprep.subr.bf16.mxu1 %v4546_v33  ;;  %v4566_v33 = vld [vmem:[#allocation2 + $0x60] sm:$0xff]  ;;  %v4568_v27 = vld [vmem:[#allocation2 + $0x70] sm:$0xff]  ;;  %6826 = vst [vmem:[#allocation122_spill] sm:$0xff] %v4570_v53  ;;  %6827 = vst [vmem:[#allocation123_spill] sm:$0xff] %v4572_v56 }
 0x1a8   :  { %6824 = vst [vmem:[#allocation120_spill] sm:$0xff] %v4566_v33  ;;  %6825 = vst [vmem:[#allocation121_spill] sm:$0xff] %v4568_v27 }
 0x1a9   :  { %1088 = vmatmul.mubr.bf16.vlgmr.msra.gmra.mrb[32].mxu0 %v6823_v61  ;;  %1129 = vmatmul.mubr.bf16.vlgmr.msra.gmra.mrb[32].mxu1 %v6823_v61 }
 0x1aa   :  { %1138 = vmatpush1.bf16.msra.mxu0 %v4552_v18  ;;  %1179 = vmatpush1.bf16.msra.mxu1 %v4554_v60  ;;  %v4584_v60 = vld [vmem:[#allocation2 + $0xe8] sm:$0xff]  ;;  %v4586_v18 = vld [vmem:[#allocation2 + $0xf8] sm:$0xff] }
 0x1ab   :  { %1139 = vmatprep.subr.bf16.mxu0 %v4556_v57  ;;  %1180 = vmatprep.subr.bf16.mxu1 %v4558_v24  ;;  %v4580_v24 = vld [vmem:[#allocation2 + $0xa0] sm:$0xff]  ;;  %v4582_v57 = vld [vmem:[#allocation2 + $0xb0] sm:$0xff]  ;;  %6830 = vst [vmem:[#allocation126_spill] sm:$0xff] %v4584_v60  ;;  %6831 = vst [vmem:[#allocation127_spill] sm:$0xff] %v4586_v18 }
 0x1ac   :  { %1169 = vmatprep.mubr.bf16.mxu0 %v6823_v61  ;;  %1210 = vmatprep.mubr.bf16.mxu1 %v6823_v61  ;;  %6828 = vst [vmem:[#allocation124_spill] sm:$0xff] %v4580_v24  ;;  %6829 = vst [vmem:[#allocation125_spill] sm:$0xff] %v4582_v57 }
 0x1ae   :  { %1140 = vmatpush1.bf16.msra.mxu0 %v4566_v33  ;;  %1181 = vmatpush1.bf16.msra.mxu1 %v4568_v27  ;;  %v4592_v27 = vld [vmem:[#allocation2 + $0xe0] sm:$0xff]  ;;  %v4598_v33 = vld [vmem:[#allocation2 + $0x138] sm:$0xff] }
 0x1af   :  { %1141 = vmatprep.subr.bf16.mxu0 %v4570_v53  ;;  %1182 = vmatprep.subr.bf16.mxu1 %v4572_v56  ;;  %6832 = vst [vmem:[#allocation128_spill] sm:$0xff] %v4592_v27  ;;  %v4594_v53 = vld [vmem:[#allocation2 + $0xf0] sm:$0xff]  ;;  %v4596_v56 = vld [vmem:[#allocation2 + $0x128] sm:$0xff]  ;;  %6835 = vst [vmem:[#allocation131_spill] sm:$0xff] %v4598_v33 }
 0x1b0   :  { %6833 = vst [vmem:[#allocation129_spill] sm:$0xff] %v4594_v53  ;;  %6834 = vst [vmem:[#allocation130_spill] sm:$0xff] %v4596_v56 }
 0x1b2   :  { %1142 = vmatpush1.bf16.msra.mxu0 %v4580_v24  ;;  %1183 = vmatpush1.bf16.msra.mxu1 %v4582_v57  ;;  %v4604_v57 = vld [vmem:[#allocation2 + $0x120] sm:$0xff]  ;;  %v4610_v24 = vld [vmem:[#allocation2 + $0x178] sm:$0xff] }
 0x1b3   :  { %1143 = vmatprep.subr.bf16.mxu0 %v4584_v60  ;;  %1184 = vmatprep.subr.bf16.mxu1 %v4586_v18  ;;  %6836 = vst [vmem:[#allocation132_spill] sm:$0xff] %v4604_v57  ;;  %v4606_v60 = vld [vmem:[#allocation2 + $0x130] sm:$0xff]  ;;  %v4608_v18 = vld [vmem:[#allocation2 + $0x168] sm:$0xff]  ;;  %6839 = vst [vmem:[#allocation135_spill] sm:$0xff] %v4610_v24 }
 0x1b4   :  { %6837 = vst [vmem:[#allocation133_spill] sm:$0xff] %v4606_v60  ;;  %6838 = vst [vmem:[#allocation134_spill] sm:$0xff] %v4608_v18 }
 0x1b6   :  { %1144 = vmatpush1.bf16.msra.mxu0 %v4592_v27  ;;  %1185 = vmatpush1.bf16.msra.mxu1 %v4594_v53  ;;  %v4616_v53 = vld [vmem:[#allocation2 + $0x160] sm:$0xff]  ;;  %v4622_v27 = vld [vmem:[#allocation2 + $0x1b8] sm:$0xff] }
 0x1b7   :  { %1145 = vmatprep.subr.bf16.mxu0 %v4596_v56  ;;  %1186 = vmatprep.subr.bf16.mxu1 %v4598_v33  ;;  %6840 = vst [vmem:[#allocation136_spill] sm:$0xff] %v4616_v53  ;;  %v4618_v56 = vld [vmem:[#allocation2 + $0x170] sm:$0xff]  ;;  %v4620_v33 = vld [vmem:[#allocation2 + $0x1a8] sm:$0xff]  ;;  %6843 = vst [vmem:[#allocation139_spill] sm:$0xff] %v4622_v27 }
 0x1b8   :  { %6841 = vst [vmem:[#allocation137_spill] sm:$0xff] %v4618_v56  ;;  %6842 = vst [vmem:[#allocation138_spill] sm:$0xff] %v4620_v33 }
 0x1ba   :  { %1146 = vmatpush1.bf16.msra.mxu0 %v4604_v57  ;;  %1187 = vmatpush1.bf16.msra.mxu1 %v4606_v60  ;;  %v4628_v60 = vld [vmem:[#allocation2 + $0x1a0] sm:$0xff]  ;;  %v4634_v57 = vld [vmem:[#allocation2 + $0x1f8] sm:$0xff] }
 0x1bb   :  { %1147 = vmatprep.subr.bf16.mxu0 %v4608_v18  ;;  %1188 = vmatprep.subr.bf16.mxu1 %v4610_v24  ;;  %6844 = vst [vmem:[#allocation140_spill] sm:$0xff] %v4628_v60  ;;  %v4630_v18 = vld [vmem:[#allocation2 + $0x1b0] sm:$0xff]  ;;  %v4632_v24 = vld [vmem:[#allocation2 + $0x1e8] sm:$0xff]  ;;  %6847 = vst [vmem:[#allocation143_spill] sm:$0xff] %v4634_v57 }
 0x1bc   :  { %6845 = vst [vmem:[#allocation141_spill] sm:$0xff] %v4630_v18  ;;  %6846 = vst [vmem:[#allocation142_spill] sm:$0xff] %v4632_v24 }
 0x1be   :  { %1148 = vmatpush1.bf16.msra.mxu0 %v4616_v53  ;;  %1189 = vmatpush1.bf16.msra.mxu1 %v4618_v56  ;;  %v4640_v56 = vld [vmem:[#allocation2 + $0x1e0] sm:$0xff]  ;;  %v4646_v53 = vld [vmem:[#allocation2 + $0x238] sm:$0xff] }
 0x1bf   :  { %1149 = vmatprep.subr.bf16.mxu0 %v4620_v33  ;;  %1190 = vmatprep.subr.bf16.mxu1 %v4622_v27  ;;  %6848 = vst [vmem:[#allocation144_spill] sm:$0xff] %v4640_v56  ;;  %v4642_v33 = vld [vmem:[#allocation2 + $0x1f0] sm:$0xff]  ;;  %v4644_v27 = vld [vmem:[#allocation2 + $0x228] sm:$0xff]  ;;  %6851 = vst [vmem:[#allocation147_spill] sm:$0xff] %v4646_v53 }
 0x1c0   :  { %6849 = vst [vmem:[#allocation145_spill] sm:$0xff] %v4642_v33  ;;  %6850 = vst [vmem:[#allocation146_spill] sm:$0xff] %v4644_v27 }
 0x1c2   :  { %1150 = vmatpush1.bf16.msra.mxu0 %v4628_v60  ;;  %1191 = vmatpush1.bf16.msra.mxu1 %v4630_v18  ;;  %v4652_v18 = vld [vmem:[#allocation2 + $0x220] sm:$0xff]  ;;  %v4658_v60 = vld [vmem:[#allocation2 + $0x278] sm:$0xff] }
 0x1c3   :  { %1151 = vmatprep.subr.bf16.mxu0 %v4632_v24  ;;  %1192 = vmatprep.subr.bf16.mxu1 %v4634_v57  ;;  %6852 = vst [vmem:[#allocation148_spill] sm:$0xff] %v4652_v18  ;;  %v4654_v24 = vld [vmem:[#allocation2 + $0x230] sm:$0xff]  ;;  %v4656_v57 = vld [vmem:[#allocation2 + $0x268] sm:$0xff]  ;;  %6855 = vst [vmem:[#allocation151_spill] sm:$0xff] %v4658_v60 }
 0x1c4   :  { %6853 = vst [vmem:[#allocation149_spill] sm:$0xff] %v4654_v24  ;;  %6854 = vst [vmem:[#allocation150_spill] sm:$0xff] %v4656_v57 }
 0x1c6   :  { %1152 = vmatpush1.bf16.msra.mxu0 %v4640_v56  ;;  %1193 = vmatpush1.bf16.msra.mxu1 %v4642_v33  ;;  %v4664_v33 = vld [vmem:[#allocation2 + $0x260] sm:$0xff]  ;;  %v4670_v56 = vld [vmem:[#allocation2 + $0x2b8] sm:$0xff] }
 0x1c7   :  { %1153 = vmatprep.subr.bf16.mxu0 %v4644_v27  ;;  %1194 = vmatprep.subr.bf16.mxu1 %v4646_v53  ;;  %6856 = vst [vmem:[#allocation152_spill] sm:$0xff] %v4664_v33  ;;  %v4666_v27 = vld [vmem:[#allocation2 + $0x270] sm:$0xff]  ;;  %v4668_v53 = vld [vmem:[#allocation2 + $0x2a8] sm:$0xff]  ;;  %6859 = vst [vmem:[#allocation155_spill] sm:$0xff] %v4670_v56 }
 0x1c8   :  { %6857 = vst [vmem:[#allocation153_spill] sm:$0xff] %v4666_v27  ;;  %6858 = vst [vmem:[#allocation154_spill] sm:$0xff] %v4668_v53 }
 0x1ca   :  { %1154 = vmatpush1.bf16.msra.mxu0 %v4652_v18  ;;  %1195 = vmatpush1.bf16.msra.mxu1 %v4654_v24  ;;  %v4676_v24 = vld [vmem:[#allocation2 + $0x2a0] sm:$0xff]  ;;  %v4682_v18 = vld [vmem:[#allocation2 + $0x2f8] sm:$0xff] }
 0x1cb   :  { %1155 = vmatprep.subr.bf16.mxu0 %v4656_v57  ;;  %1196 = vmatprep.subr.bf16.mxu1 %v4658_v60  ;;  %6860 = vst [vmem:[#allocation156_spill] sm:$0xff] %v4676_v24  ;;  %v4678_v57 = vld [vmem:[#allocation2 + $0x2b0] sm:$0xff]  ;;  %v4680_v60 = vld [vmem:[#allocation2 + $0x2e8] sm:$0xff]  ;;  %6863 = vst [vmem:[#allocation159_spill] sm:$0xff] %v4682_v18 }
 0x1cc   :  { %6861 = vst [vmem:[#allocation157_spill] sm:$0xff] %v4678_v57  ;;  %6862 = vst [vmem:[#allocation158_spill] sm:$0xff] %v4680_v60 }
 0x1ce   :  { %1156 = vmatpush1.bf16.msra.mxu0 %v4664_v33  ;;  %1197 = vmatpush1.bf16.msra.mxu1 %v4666_v27  ;;  %v4688_v27 = vld [vmem:[#allocation2 + $0x2e0] sm:$0xff]  ;;  %v4694_v33 = vld [vmem:[#allocation2 + $0x338] sm:$0xff] }
 0x1cf   :  { %1157 = vmatprep.subr.bf16.mxu0 %v4668_v53  ;;  %1198 = vmatprep.subr.bf16.mxu1 %v4670_v56  ;;  %6864 = vst [vmem:[#allocation160_spill] sm:$0xff] %v4688_v27  ;;  %v4690_v53 = vld [vmem:[#allocation2 + $0x2f0] sm:$0xff]  ;;  %v4692_v56 = vld [vmem:[#allocation2 + $0x328] sm:$0xff]  ;;  %6867 = vst [vmem:[#allocation163_spill] sm:$0xff] %v4694_v33 }
 0x1d0   :  { %6865 = vst [vmem:[#allocation161_spill] sm:$0xff] %v4690_v53  ;;  %6866 = vst [vmem:[#allocation162_spill] sm:$0xff] %v4692_v56 }
 0x1d2   :  { %1158 = vmatpush1.bf16.msra.mxu0 %v4676_v24  ;;  %1199 = vmatpush1.bf16.msra.mxu1 %v4678_v57  ;;  %v4700_v57 = vld [vmem:[#allocation2 + $0x320] sm:$0xff]  ;;  %v4706_v24 = vld [vmem:[#allocation2 + $0x378] sm:$0xff] }
 0x1d3   :  { %1159 = vmatprep.subr.bf16.mxu0 %v4680_v60  ;;  %1200 = vmatprep.subr.bf16.mxu1 %v4682_v18  ;;  %6868 = vst [vmem:[#allocation164_spill] sm:$0xff] %v4700_v57  ;;  %v4702_v60 = vld [vmem:[#allocation2 + $0x330] sm:$0xff]  ;;  %v4704_v18 = vld [vmem:[#allocation2 + $0x368] sm:$0xff]  ;;  %6871 = vst [vmem:[#allocation167_spill] sm:$0xff] %v4706_v24 }
 0x1d4   :  { %6869 = vst [vmem:[#allocation165_spill] sm:$0xff] %v4702_v60  ;;  %6870 = vst [vmem:[#allocation166_spill] sm:$0xff] %v4704_v18 }
 0x1d6   :  { %1160 = vmatpush1.bf16.msra.mxu0 %v4688_v27  ;;  %1201 = vmatpush1.bf16.msra.mxu1 %v4690_v53  ;;  %v4712_v53 = vld [vmem:[#allocation2 + $0x360] sm:$0xff]  ;;  %v4718_v27 = vld [vmem:[#allocation2 + $0x3b8] sm:$0xff] }
 0x1d7   :  { %1161 = vmatprep.subr.bf16.mxu0 %v4692_v56  ;;  %1202 = vmatprep.subr.bf16.mxu1 %v4694_v33  ;;  %v4714_v56 = vld [vmem:[#allocation2 + $0x370] sm:$0xff]  ;;  %v4716_v33 = vld [vmem:[#allocation2 + $0x3a8] sm:$0xff] }
 0x1d8   :  { %6872 = vst [vmem:[#allocation168_spill] sm:$0xff] %v4714_v56  ;;  %6873 = vst [vmem:[#allocation169_spill] sm:$0xff] %v4716_v33 }
 0x1da   :  { %1162 = vmatpush1.bf16.msra.mxu0 %v4700_v57  ;;  %1203 = vmatpush1.bf16.msra.mxu1 %v4702_v60  ;;  %v4724_v60 = vld [vmem:[#allocation2 + $0x3a0] sm:$0xff]  ;;  %v4730_v57 = vld [vmem:[#allocation2 + $0x3f8] sm:$0xff] }
 0x1db   :  { %1163 = vmatprep.subr.bf16.mxu0 %v4704_v18  ;;  %1204 = vmatprep.subr.bf16.mxu1 %v4706_v24  ;;  %v4726_v18 = vld [vmem:[#allocation2 + $0x3b0] sm:$0xff]  ;;  %v4728_v24 = vld [vmem:[#allocation2 + $0x3e8] sm:$0xff] }
 0x1de   :  { %1164 = vmatpush1.bf16.msra.mxu0 %v4712_v53  ;;  %1205 = vmatpush1.bf16.msra.mxu1 %v4714_v56  ;;  %v4736_v56 = vld [vmem:[#allocation2 + $0x3e0] sm:$0xff] }
 0x1df   :  { %1165 = vmatprep.subr.bf16.mxu0 %v4716_v33  ;;  %1206 = vmatprep.subr.bf16.mxu1 %v4718_v27  ;;  %v4738_v33 = vld [vmem:[#allocation2 + $0x3f0] sm:$0xff] }
 0x1e2   :  { %1166 = vmatpush1.bf16.msra.mxu0 %v4724_v60  ;;  %1207 = vmatpush1.bf16.msra.mxu1 %v4726_v18 }
 0x1e3   :  { %1167 = vmatprep.subr.bf16.mxu0 %v4728_v24  ;;  %1208 = vmatprep.subr.bf16.mxu1 %v4730_v57 }
 0x1e6   :  { %1168 = vmatpush1.bf16.msra.mxu0 %v4736_v56  ;;  %1209 = vmatpush1.bf16.msra.mxu1 %v4738_v33 }
 0x1e7   :  { %1277 = vmatprep.subr.bf16.mxu0 %v4354_v39  ;;  %1318 = vmatprep.subr.bf16.mxu1 %v4356_v14 }
 0x1e9   :  { %1170 = vmatmul.mubr.bf16.vlgmr.msra.gmra.mrb[36].mxu0 %v6823_v61  ;;  %1211 = vmatmul.mubr.bf16.vlgmr.msra.gmra.mrb[36].mxu1 %v6823_v61  ;;  %v6874_v61 = vld [vmem:[#allocation105_spill] sm:$0xff] }
 0x1ea   :  { %1278 = vmatpush1.bf16.msra.mxu0 %v4358_v49  ;;  %1319 = vmatpush1.bf16.msra.mxu1 %v4362_v40 }
 0x1eb   :  { %1279 = vmatprep.subr.bf16.mxu0 %v4364_v50  ;;  %1320 = vmatprep.subr.bf16.mxu1 %v4366_v15 }
 0x1ee   :  { %1280 = vmatpush1.bf16.msra.mxu0 %v4372_v52  ;;  %1321 = vmatpush1.bf16.msra.mxu1 %v4374_v47 }
 0x1ef   :  { %1281 = vmatprep.subr.bf16.mxu0 %v4376_v58  ;;  %1322 = vmatprep.subr.bf16.mxu1 %v4378_v28 }
 0x1f2   :  { %1282 = vmatpush1.bf16.msra.mxu0 %v4384_v45  ;;  %1323 = vmatpush1.bf16.msra.mxu1 %v4386_v63 }
 0x1f3   :  { %1283 = vmatprep.subr.bf16.mxu0 %v4388_v48  ;;  %1324 = vmatprep.subr.bf16.mxu1 %v4390_v43 }
 0x1f6   :  { %1284 = vmatpush1.bf16.msra.mxu0 %v4396_v22  ;;  %1325 = vmatpush1.bf16.msra.mxu1 %v4398_v55 }
 0x1f7   :  { %1285 = vmatprep.subr.bf16.mxu0 %v4400_v2  ;;  %1326 = vmatprep.subr.bf16.mxu1 %v4402_v6 }
 0x1fa   :  { %1286 = vmatpush1.bf16.msra.mxu0 %v4408_v4  ;;  %1327 = vmatpush1.bf16.msra.mxu1 %v4410_v30 }
 0x1fb   :  { %1287 = vmatprep.subr.bf16.mxu0 %v4412_v37  ;;  %1328 = vmatprep.subr.bf16.mxu1 %v4414_v35 }
 0x1fe   :  { %1288 = vmatpush1.bf16.msra.mxu0 %v4420_v34  ;;  %1329 = vmatpush1.bf16.msra.mxu1 %v4422_v31 }
 0x1ff   :  { %1289 = vmatprep.subr.bf16.mxu0 %v4424_v32  ;;  %1330 = vmatprep.subr.bf16.mxu1 %v4426_v46 }
 0x202   :  { %1290 = vmatpush1.bf16.msra.mxu0 %v4432_v51  ;;  %1331 = vmatpush1.bf16.msra.mxu1 %v4434_v7 }
 0x203   :  { %1291 = vmatprep.subr.bf16.mxu0 %v4436_v29  ;;  %1332 = vmatprep.subr.bf16.mxu1 %v4438_v26 }
 0x206   :  { %1292 = vmatpush1.bf16.msra.mxu0 %v4444_v25  ;;  %1333 = vmatpush1.bf16.msra.mxu1 %v4446_v21 }
 0x207   :  { %1293 = vmatprep.subr.bf16.mxu0 %v4448_v59  ;;  %1334 = vmatprep.subr.bf16.mxu1 %v4450_v38 }
 0x20a   :  { %1294 = vmatpush1.bf16.msra.mxu0 %v4456_v44  ;;  %1335 = vmatpush1.bf16.msra.mxu1 %v4458_v23 }
 0x20b   :  { %1295 = vmatprep.subr.bf16.mxu0 %v4460_v19  ;;  %1336 = vmatprep.subr.bf16.mxu1 %v4462_v17 }
 0x20e   :  { %1296 = vmatpush1.bf16.msra.mxu0 %v4468_v16  ;;  %1337 = vmatpush1.bf16.msra.mxu1 %v4470_v13  ;;  %v6887_v13 = vld [vmem:[#allocation23_spill] sm:$0xff]  ;;  %v6888_v16 = vld [vmem:[#allocation24_spill] sm:$0xff] }
 0x20f   :  { %1297 = vmatprep.subr.bf16.mxu0 %v4472_v20  ;;  %1338 = vmatprep.subr.bf16.mxu1 %v4474_v11  ;;  %v6885_v11 = vld [vmem:[#allocation21_spill] sm:$0xff]  ;;  %v6886_v20 = vld [vmem:[#allocation22_spill] sm:$0xff] }
 0x212   :  { %1298 = vmatpush1.bf16.msra.mxu0 %v4480_v10  ;;  %1339 = vmatpush1.bf16.msra.mxu1 %v4482_v62 }
 0x213   :  { %1299 = vmatprep.subr.bf16.mxu0 %v4484_v12  ;;  %1340 = vmatprep.subr.bf16.mxu1 %v4486_v9  ;;  %v6875_v9 = vld [vmem:[#allocation106_spill] sm:$0xff] }
 0x216   :  { %1300 = vmatpush1.bf16.msra.mxu0 %v4492_v8  ;;  %1341 = vmatpush1.bf16.msra.mxu1 %v4494_v5  ;;  %v6876_v8 = vld [vmem:[#allocation107_spill] sm:$0xff]  ;;  %v6877_v5 = vld [vmem:[#allocation108_spill] sm:$0xff] }
 0x217   :  { %1301 = vmatprep.subr.bf16.mxu0 %v4496_v54  ;;  %1342 = vmatprep.subr.bf16.mxu1 %v4498_v42  ;;  %v6878_v54 = vld [vmem:[#allocation109_spill] sm:$0xff]  ;;  %v6879_v42 = vld [vmem:[#allocation110_spill] sm:$0xff] }
 0x21a   :  { %1302 = vmatpush1.bf16.msra.mxu0 %v4504_v41  ;;  %1343 = vmatpush1.bf16.msra.mxu1 %v4506_v36  ;;  %v6880_v41 = vld [vmem:[#allocation111_spill] sm:$0xff]  ;;  %v6881_v36 = vld [vmem:[#allocation112_spill] sm:$0xff] }
 0x21b   :  { %1303 = vmatprep.subr.bf16.mxu0 %v4508_v3  ;;  %1344 = vmatprep.subr.bf16.mxu1 %v4510_v1  ;;  %v6882_v3 = vld [vmem:[#allocation113_spill] sm:$0xff]  ;;  %v6883_v1 = vld [vmem:[#allocation114_spill] sm:$0xff] }
 0x21e   :  { %1304 = vmatpush1.bf16.msra.mxu0 %v4516_v0  ;;  %1345 = vmatpush1.bf16.msra.mxu1 %v6874_v61  ;;  %v6884_v0 = vld [vmem:[#allocation115_spill] sm:$0xff] }
 0x21f   :  { %1305 = vmatprep.subr.bf16.mxu0 %v6875_v9  ;;  %1346 = vmatprep.subr.bf16.mxu1 %v6876_v8 }
 0x222   :  { %1306 = vmatpush1.bf16.msra.mxu0 %v6877_v5  ;;  %1347 = vmatpush1.bf16.msra.mxu1 %v6878_v54 }
 0x223   :  { %1307 = vmatprep.subr.bf16.mxu0 %v6879_v42  ;;  %1348 = vmatprep.subr.bf16.mxu1 %v6880_v41 }
 0x226   :  { %1308 = vmatpush1.bf16.msra.mxu0 %v6881_v36  ;;  %1349 = vmatpush1.bf16.msra.mxu1 %v6882_v3 }
 0x227   :  { %1359 = vmatprep.subr.bf16.mxu0 %v6883_v1  ;;  %1400 = vmatprep.subr.bf16.mxu1 %v6884_v0 }
 0x27c   :  { %v1089_v61 = vpop.f32.mrb[32].mxu0  ;;  %v1130_v9 = vpop.f32.mrb[32].mxu1 }
 0x27d   :  { %v1091_v12 = vpop.f32.mrb[33].mxu0  ;;  %v1132_v8 = vpop.f32.mrb[33].mxu1  ;;  %v1219_v42 = vadd.f32 %v1089_v61, %v6885_v11  ;;  %v1221_v41 = vadd.f32 %v1130_v9, %v6886_v20 }
 0x27e   :  { %v1093_v62 = vpop.f32.mrb[34].mxu0  ;;  %v1134_v5 = vpop.f32.mrb[34].mxu1  ;;  %v1220_v36 = vadd.f32 %v1091_v12, %v6887_v13  ;;  %v1222_v3 = vadd.f32 %v1132_v8, %v6888_v16  ;;  %v6889_v13 = vld [vmem:[#allocation53_spill] sm:$0xff] }
 0x27f   :  { %v1094_v10 = vpop.f32.mrb[35].mxu0  ;;  %v1135_v54 = vpop.f32.mrb[35].mxu1  ;;  %v3251_v17 = vmul.f32 -1.442695, %v1219_v42  ;;  %v3253_v1 = vmul.f32 -1.442695, %v1221_v41 }
 0x280   :  { %v3252_v19 = vmul.f32 -1.442695, %v1220_v36  ;;  %v3254_v0 = vmul.f32 -1.442695, %v1222_v3  ;;  %v6890_v3 = vld [vmem:[#allocation54_spill] sm:$0xff]  ;;  %v6892_v41 = vld [vmem:[#allocation56_spill] sm:$0xff] }
 0x281   :  { %3365 = vpow2.f32 %v3251_v17 }
 0x282   :  { %3367 = vpow2.f32 %v3253_v1 }
 0x283   :  { %3369 = vpow2.f32 %v3252_v19 }
 0x284   :  { %3371 = vpow2.f32 %v3254_v0  ;;  %v6891_v0 = vld [vmem:[#allocation55_spill] sm:$0xff] }
 0x28b   :  { %v3366_v62 = vpop.eup %3365 }
 0x28c   :  { %v3368_v5 = vpop.eup %3367  ;;  %v1245_v23 = vadd.f32 1.0, %v3366_v62 }
 0x28d   :  { %v3370_v10 = vpop.eup %3369  ;;  %v1247_v11 = vadd.f32 1.0, %v3368_v5 }
 0x28e   :  { %v3372_v54 = vpop.eup %3371  ;;  %v1246_v61 = vadd.f32 1.0, %v3370_v10  ;;  %3373 = vrcp.f32 %v1245_v23 }
 0x28f   :  { %v1248_v9 = vadd.f32 1.0, %v3372_v54  ;;  %3375 = vrcp.f32 %v1247_v11 }
 0x290   :  { %3377 = vrcp.f32 %v1246_v61 }
 0x291   :  { %3379 = vrcp.f32 %v1248_v9 }
 0x298   :  { %v3374_v11 = vpop.eup %3373 }
 0x299   :  { %v3376_v61 = vpop.eup %3375 }
 0x2bc   :  { %v1171_v12 = vpop.f32.mrb[36].mxu0  ;;  %v1212_v8 = vpop.f32.mrb[36].mxu1 }
 0x2bd   :  { %v1223_v16 = vadd.f32 %v1171_v12, %v6889_v13  ;;  %v1225_v17 = vadd.f32 %v1212_v8, %v6890_v3  ;;  %v1173_v1 = vpop.f32.mrb[37].mxu0  ;;  %v1214_v19 = vpop.f32.mrb[37].mxu1  ;;  %v1265_v3 = vmul.f32 0.0, %v3376_v61 }
 0x2be   :  { %v1224_v36 = vadd.f32 %v1173_v1, %v6891_v0  ;;  %v1226_v42 = vadd.f32 %v1214_v19, %v6892_v41  ;;  %v1175_v20 = vpop.f32.mrb[38].mxu0  ;;  %v1216_v62 = vpop.f32.mrb[38].mxu1 }
 0x2bf   :  { %v3255_v5 = vmul.f32 -1.442695, %v1223_v16  ;;  %3381 = vtanh.f32 %v1225_v17  ;;  %v1176_v23 = vpop.f32.mrb[39].mxu0  ;;  %v1217_v10 = vpop.f32.mrb[39].mxu1 }
 0x2c0   :  { %v3256_v54 = vmul.f32 -1.442695, %v1224_v36  ;;  %3383 = vtanh.f32 %v1226_v42  ;;  %v3378_v12 = vpop.eup %3377 }
 0x2c1   :  { %3385 = vpow2.f32 %v3255_v5  ;;  %v3380_v8 = vpop.eup %3379 }
 0x2c2   :  { %3387 = vpow2.f32 %v3256_v54  ;;  %v1266_v19 = vmul.f32 0.0, %v3380_v8  ;;  %v6893_v8 = vld [vmem:[#allocation116_spill] sm:$0xff] }
 0x2c9   :  { %v3382_v13 = vpop.eup %3381 }
 0x2ca   :  { %v3384_v9 = vpop.eup %3383  ;;  %v1267_v1 = vmul.f32 %v3382_v13, %v3374_v11  ;;  %v6894_v13 = vld [vmem:[#allocation117_spill] sm:$0xff] }
 0x2cb   :  { %v3386_v0 = vpop.eup %3385  ;;  %v1268_v41 = vmul.f32 %v3384_v9, %v3378_v12  ;;  %v6895_v9 = vld [vmem:[#allocation118_spill] sm:$0xff] }
 0x2cc   :  { %v3388_v20 = vpop.eup %3387  ;;  %v1249_v16 = vadd.f32 1.0, %v3386_v0  ;;  %v4818_v17 = vadd.f32 %v1267_v1, %v1265_v3  ;;  %v6896_v3 = vld [vmem:[#allocation119_spill] sm:$0xff]  ;;  %v6897_v1 = vld [vmem:[#allocation120_spill] sm:$0xff]  ;;  %v6898_v0 = vld [vmem:[#allocation121_spill] sm:$0xff] }
 0x2cd   :  { %v1250_v62 = vadd.f32 1.0, %v3388_v20  ;;  %v4820_v36 = vadd.f32 %v1268_v41, %v1266_v19  ;;  %v6899_v19 = vld [vmem:[#allocation122_spill] sm:$0xff]  ;;  %v6900_v41 = vld [vmem:[#allocation123_spill] sm:$0xff]  ;;  %v6901_v20 = vld [vmem:[#allocation124_spill] sm:$0xff] }
 0x2ce   :  { %3389 = vrcp.f32 %v1249_v16  ;;  %v6902_v16 = vld [vmem:[#allocation125_spill] sm:$0xff] }
 0x2cf   :  { %3391 = vtanh.f32 %v4818_v17 }
 0x2d0   :  { %3393 = vrcp.f32 %v1250_v62  ;;  %v6903_v62 = vld [vmem:[#allocation126_spill] sm:$0xff] }
 0x2d1   :  { %3395 = vtanh.f32 %v4820_v36 }
 0x2d8   :  { %v3390_v42 = vpop.eup %3389 }
 0x2d9   :  { %v3392_v5 = vpop.eup %3391 }
 0x2da   :  { %v3394_v23 = vpop.eup %3393  ;;  %v1273_v54 = vmul.f32 %v3392_v5, %v3390_v42  ;;  %v6904_v42 = vld [vmem:[#allocation127_spill] sm:$0xff]  ;;  %v6905_v5 = vld [vmem:[#allocation128_spill] sm:$0xff] }
 0x2db   :  { %v3396_v10 = vpop.eup %3395 }
 0x2dc   :  { %v1274_v11 = vmul.f32 %v3396_v10, %v3394_v23  ;;  %v4824_v12 = vpack.c.bf16 %v1273_v54, %v1273_v54  ;;  %v6906_v23 = vld [vmem:[#allocation129_spill] sm:$0xff]  ;;  %v6907_v10 = vld [vmem:[#allocation130_spill] sm:$0xff]  ;;  %v6908_v54 = vld [vmem:[#allocation131_spill] sm:$0xff] }
 0x2de   :  { %v1276_v61 = vpack.c.bf16 %v1274_v11, %v1274_v11  ;;  %v6909_v11 = vld [vmem:[#allocation132_spill] sm:$0xff] }
 0x2e0   :  { %1309 = vmatprep.mubr.bf16.mxu0 %v1276_v61  ;;  %1350 = vmatprep.mubr.bf16.mxu1 %v1276_v61 }
 0x2e1   :  { %1310 = vmatmul.mubr.bf16.vlgmr.msra.gmra.mrb[40].mxu0 %v4824_v12  ;;  %1351 = vmatmul.mubr.bf16.vlgmr.msra.gmra.mrb[40].mxu1 %v4824_v12 }
 0x2e2   :  { %1360 = vmatpush1.bf16.msra.mxu0 %v6893_v8  ;;  %1401 = vmatpush1.bf16.msra.mxu1 %v6894_v13 }
 0x2e3   :  { %1391 = vmatprep.mubr.bf16.mxu0 %v1276_v61  ;;  %1432 = vmatprep.mubr.bf16.mxu1 %v1276_v61  ;;  %v6910_v61 = vld [vmem:[#allocation133_spill] sm:$0xff] }
 0x2e4   :  { %1361 = vmatprep.subr.bf16.mxu0 %v6895_v9  ;;  %1402 = vmatprep.subr.bf16.mxu1 %v6896_v3 }
 0x2e6   :  { %1362 = vmatpush1.bf16.msra.mxu0 %v6897_v1  ;;  %1403 = vmatpush1.bf16.msra.mxu1 %v6898_v0 }
 0x2e7   :  { %1363 = vmatprep.subr.bf16.mxu0 %v6899_v19  ;;  %1404 = vmatprep.subr.bf16.mxu1 %v6900_v41  ;;  %v6911_v41 = vld [vmem:[#allocation134_spill] sm:$0xff] }
 0x2ea   :  { %1364 = vmatpush1.bf16.msra.mxu0 %v6901_v20  ;;  %1405 = vmatpush1.bf16.msra.mxu1 %v6902_v16  ;;  %v6912_v20 = vld [vmem:[#allocation135_spill] sm:$0xff]  ;;  %v6913_v16 = vld [vmem:[#allocation136_spill] sm:$0xff] }
 0x2eb   :  { %1365 = vmatprep.subr.bf16.mxu0 %v6903_v62  ;;  %1406 = vmatprep.subr.bf16.mxu1 %v6904_v42  ;;  %v6914_v62 = vld [vmem:[#allocation137_spill] sm:$0xff]  ;;  %v6915_v42 = vld [vmem:[#allocation138_spill] sm:$0xff] }
 0x2ee   :  { %1366 = vmatpush1.bf16.msra.mxu0 %v6905_v5  ;;  %1407 = vmatpush1.bf16.msra.mxu1 %v6906_v23  ;;  %v6916_v5 = vld [vmem:[#allocation139_spill] sm:$0xff]  ;;  %v6917_v23 = vld [vmem:[#allocation140_spill] sm:$0xff] }
 0x2ef   :  { %1367 = vmatprep.subr.bf16.mxu0 %v6907_v10  ;;  %1408 = vmatprep.subr.bf16.mxu1 %v6908_v54  ;;  %v6918_v10 = vld [vmem:[#allocation141_spill] sm:$0xff]  ;;  %v6919_v54 = vld [vmem:[#allocation142_spill] sm:$0xff] }
 0x2f2   :  { %1368 = vmatpush1.bf16.msra.mxu0 %v6909_v11  ;;  %1409 = vmatpush1.bf16.msra.mxu1 %v6910_v61  ;;  %v6920_v11 = vld [vmem:[#allocation143_spill] sm:$0xff]  ;;  %v6921_v61 = vld [vmem:[#allocation144_spill] sm:$0xff] }
 0x2f3   :  { %1369 = vmatprep.subr.bf16.mxu0 %v6911_v41  ;;  %1410 = vmatprep.subr.bf16.mxu1 %v6912_v20  ;;  %v6922_v41 = vld [vmem:[#allocation145_spill] sm:$0xff]  ;;  %v6923_v20 = vld [vmem:[#allocation146_spill] sm:$0xff] }
 0x2f6   :  { %1370 = vmatpush1.bf16.msra.mxu0 %v6913_v16  ;;  %1411 = vmatpush1.bf16.msra.mxu1 %v6914_v62  ;;  %v6924_v16 = vld [vmem:[#allocation147_spill] sm:$0xff]  ;;  %v6925_v62 = vld [vmem:[#allocation148_spill] sm:$0xff] }
 0x2f7   :  { %1371 = vmatprep.subr.bf16.mxu0 %v6915_v42  ;;  %1412 = vmatprep.subr.bf16.mxu1 %v6916_v5  ;;  %v6926_v42 = vld [vmem:[#allocation149_spill] sm:$0xff]  ;;  %v6927_v5 = vld [vmem:[#allocation150_spill] sm:$0xff] }
 0x2fa   :  { %1372 = vmatpush1.bf16.msra.mxu0 %v6917_v23  ;;  %1413 = vmatpush1.bf16.msra.mxu1 %v6918_v10  ;;  %v6928_v23 = vld [vmem:[#allocation151_spill] sm:$0xff]  ;;  %v6929_v10 = vld [vmem:[#allocation152_spill] sm:$0xff] }
 0x2fb   :  { %1373 = vmatprep.subr.bf16.mxu0 %v6919_v54  ;;  %1414 = vmatprep.subr.bf16.mxu1 %v6920_v11  ;;  %v6930_v54 = vld [vmem:[#allocation153_spill] sm:$0xff]  ;;  %v6931_v11 = vld [vmem:[#allocation154_spill] sm:$0xff] }
 0x2fe   :  { %1374 = vmatpush1.bf16.msra.mxu0 %v6921_v61  ;;  %1415 = vmatpush1.bf16.msra.mxu1 %v6922_v41  ;;  %v6932_v61 = vld [vmem:[#allocation155_spill] sm:$0xff]  ;;  %v6933_v41 = vld [vmem:[#allocation156_spill] sm:$0xff] }
 0x2ff   :  { %1375 = vmatprep.subr.bf16.mxu0 %v6923_v20  ;;  %1416 = vmatprep.subr.bf16.mxu1 %v6924_v16  ;;  %v6934_v20 = vld [vmem:[#allocation157_spill] sm:$0xff]  ;;  %v6935_v16 = vld [vmem:[#allocation158_spill] sm:$0xff] }
 0x302   :  { %1376 = vmatpush1.bf16.msra.mxu0 %v6925_v62  ;;  %1417 = vmatpush1.bf16.msra.mxu1 %v6926_v42  ;;  %v6936_v62 = vld [vmem:[#allocation159_spill] sm:$0xff]  ;;  %v6937_v42 = vld [vmem:[#allocation160_spill] sm:$0xff] }
 0x303   :  { %1377 = vmatprep.subr.bf16.mxu0 %v6927_v5  ;;  %1418 = vmatprep.subr.bf16.mxu1 %v6928_v23  ;;  %v6938_v5 = vld [vmem:[#allocation161_spill] sm:$0xff]  ;;  %v6939_v23 = vld [vmem:[#allocation162_spill] sm:$0xff] }
 0x306   :  { %1378 = vmatpush1.bf16.msra.mxu0 %v6929_v10  ;;  %1419 = vmatpush1.bf16.msra.mxu1 %v6930_v54  ;;  %v6940_v10 = vld [vmem:[#allocation163_spill] sm:$0xff]  ;;  %v6941_v54 = vld [vmem:[#allocation164_spill] sm:$0xff] }
 0x307   :  { %1379 = vmatprep.subr.bf16.mxu0 %v6931_v11  ;;  %1420 = vmatprep.subr.bf16.mxu1 %v6932_v61  ;;  %v6942_v11 = vld [vmem:[#allocation165_spill] sm:$0xff]  ;;  %v6943_v61 = vld [vmem:[#allocation166_spill] sm:$0xff] }
 0x30a   :  { %1380 = vmatpush1.bf16.msra.mxu0 %v6933_v41  ;;  %1421 = vmatpush1.bf16.msra.mxu1 %v6934_v20  ;;  %v6944_v41 = vld [vmem:[#allocation167_spill] sm:$0xff] }
 0x30b   :  { %1381 = vmatprep.subr.bf16.mxu0 %v6935_v16  ;;  %1422 = vmatprep.subr.bf16.mxu1 %v6936_v62  ;;  %v6945_v16 = vld [vmem:[#allocation168_spill] sm:$0xff]  ;;  %v6946_v62 = vld [vmem:[#allocation169_spill] sm:$0xff] }
 0x30e   :  { %1382 = vmatpush1.bf16.msra.mxu0 %v6937_v42  ;;  %1423 = vmatpush1.bf16.msra.mxu1 %v6938_v5 }
 0x30f   :  { %1383 = vmatprep.subr.bf16.mxu0 %v6939_v23  ;;  %1424 = vmatprep.subr.bf16.mxu1 %v6940_v10 }
 0x312   :  { %1384 = vmatpush1.bf16.msra.mxu0 %v6941_v54  ;;  %1425 = vmatpush1.bf16.msra.mxu1 %v6942_v11 }
 0x313   :  { %1385 = vmatprep.subr.bf16.mxu0 %v6943_v61  ;;  %1426 = vmatprep.subr.bf16.mxu1 %v6944_v41 }
 0x316   :  { %1386 = vmatpush1.bf16.msra.mxu0 %v4712_v53  ;;  %1427 = vmatpush1.bf16.msra.mxu1 %v6945_v16 }
 0x317   :  { %1387 = vmatprep.subr.bf16.mxu0 %v6946_v62  ;;  %1428 = vmatprep.subr.bf16.mxu1 %v4718_v27 }
 0x31a   :  { %1388 = vmatpush1.bf16.msra.mxu0 %v4724_v60  ;;  %1429 = vmatpush1.bf16.msra.mxu1 %v4726_v18 }
 0x31b   :  { %1389 = vmatprep.subr.bf16.mxu0 %v4728_v24  ;;  %1430 = vmatprep.subr.bf16.mxu1 %v4730_v57 }
 0x31e   :  { %1390 = vmatpush1.bf16.msra.mxu0 %v4736_v56  ;;  %1431 = vmatpush1.bf16.msra.mxu1 %v4738_v33 }
 0x31f   :  { %1499 = vmatprep.subr.bf16.mxu0 %v4354_v39  ;;  %1540 = vmatprep.subr.bf16.mxu1 %v4356_v14  ;;  %v6973_v39 = vld [vmem:[#allocation111_spill] sm:$0xff]  ;;  %v6974_v14 = vld [vmem:[#allocation112_spill] sm:$0xff] }
 0x321   :  { %1392 = vmatmul.mubr.bf16.vlgmr.msra.gmra.mrb[44].mxu0 %v4824_v12  ;;  %1433 = vmatmul.mubr.bf16.vlgmr.msra.gmra.mrb[44].mxu1 %v4824_v12 }
 0x322   :  { %1500 = vmatpush1.bf16.msra.mxu0 %v4358_v49  ;;  %1541 = vmatpush1.bf16.msra.mxu1 %v4362_v40  ;;  %v6975_v49 = vld [vmem:[#allocation113_spill] sm:$0xff]  ;;  %v6976_v40 = vld [vmem:[#allocation114_spill] sm:$0xff] }
 0x323   :  { %1501 = vmatprep.subr.bf16.mxu0 %v4364_v50  ;;  %1542 = vmatprep.subr.bf16.mxu1 %v4366_v15  ;;  %v6977_v50 = vld [vmem:[#allocation115_spill] sm:$0xff] }
 0x326   :  { %1502 = vmatpush1.bf16.msra.mxu0 %v4372_v52  ;;  %1543 = vmatpush1.bf16.msra.mxu1 %v4374_v47 }
 0x327   :  { %1503 = vmatprep.subr.bf16.mxu0 %v4376_v58  ;;  %1544 = vmatprep.subr.bf16.mxu1 %v4378_v28  ;;  %v6972_v28 = vld [vmem:[#allocation110_spill] sm:$0xff] }
 0x32a   :  { %1504 = vmatpush1.bf16.msra.mxu0 %v4384_v45  ;;  %1545 = vmatpush1.bf16.msra.mxu1 %v4386_v63  ;;  %v6959_v63 = vld [vmem:[#allocation97_spill] sm:$0xff]  ;;  %v6969_v45 = vld [vmem:[#allocation107_spill] sm:$0xff] }
 0x32b   :  { %1505 = vmatprep.subr.bf16.mxu0 %v4388_v48  ;;  %1546 = vmatprep.subr.bf16.mxu1 %v4390_v43  ;;  %v6957_v43 = vld [vmem:[#allocation95_spill] sm:$0xff]  ;;  %v6971_v48 = vld [vmem:[#allocation109_spill] sm:$0xff] }
 0x32e   :  { %1506 = vmatpush1.bf16.msra.mxu0 %v4396_v22  ;;  %1547 = vmatpush1.bf16.msra.mxu1 %v4398_v55  ;;  %v6958_v55 = vld [vmem:[#allocation96_spill] sm:$0xff] }
 0x32f   :  { %1507 = vmatprep.subr.bf16.mxu0 %v4400_v2  ;;  %1548 = vmatprep.subr.bf16.mxu1 %v4402_v6  ;;  %v6960_v2 = vld [vmem:[#allocation98_spill] sm:$0xff]  ;;  %v6961_v6 = vld [vmem:[#allocation99_spill] sm:$0xff]  ;;  %v6970_v22 = vld [vmem:[#allocation108_spill] sm:$0xff] }
 0x332   :  { %1508 = vmatpush1.bf16.msra.mxu0 %v4408_v4  ;;  %1549 = vmatpush1.bf16.msra.mxu1 %v4410_v30  ;;  %v6947_v30 = vld [vmem:[#allocation85_spill] sm:$0xff]  ;;  %v6968_v4 = vld [vmem:[#allocation106_spill] sm:$0xff] }
 0x333   :  { %1509 = vmatprep.subr.bf16.mxu0 %v4412_v37  ;;  %1550 = vmatprep.subr.bf16.mxu1 %v4414_v35  ;;  %v6955_v35 = vld [vmem:[#allocation93_spill] sm:$0xff]  ;;  %v6956_v37 = vld [vmem:[#allocation94_spill] sm:$0xff] }
 0x336   :  { %1510 = vmatpush1.bf16.msra.mxu0 %v4420_v34  ;;  %1551 = vmatpush1.bf16.msra.mxu1 %v4422_v31  ;;  %v6949_v31 = vld [vmem:[#allocation87_spill] sm:$0xff]  ;;  %v6950_v34 = vld [vmem:[#allocation88_spill] sm:$0xff] }
 0x337   :  { %1511 = vmatprep.subr.bf16.mxu0 %v4424_v32  ;;  %1552 = vmatprep.subr.bf16.mxu1 %v4426_v46  ;;  %v6948_v46 = vld [vmem:[#allocation86_spill] sm:$0xff]  ;;  %v6967_v32 = vld [vmem:[#allocation105_spill] sm:$0xff] }
 0x33a   :  { %1512 = vmatpush1.bf16.msra.mxu0 %v4432_v51  ;;  %1553 = vmatpush1.bf16.msra.mxu1 %v4434_v7  ;;  %v6965_v7 = vld [vmem:[#allocation103_spill] sm:$0xff]  ;;  %v6966_v51 = vld [vmem:[#allocation104_spill] sm:$0xff] }
 0x33b   :  { %1513 = vmatprep.subr.bf16.mxu0 %v4436_v29  ;;  %1554 = vmatprep.subr.bf16.mxu1 %v4438_v26  ;;  %v6951_v29 = vld [vmem:[#allocation89_spill] sm:$0xff]  ;;  %v6952_v26 = vld [vmem:[#allocation90_spill] sm:$0xff] }
 0x33e   :  { %1514 = vmatpush1.bf16.msra.mxu0 %v4444_v25  ;;  %1555 = vmatpush1.bf16.msra.mxu1 %v4446_v21  ;;  %v6953_v25 = vld [vmem:[#allocation91_spill] sm:$0xff]  ;;  %v6954_v21 = vld [vmem:[#allocation92_spill] sm:$0xff] }
 0x33f   :  { %1515 = vmatprep.subr.bf16.mxu0 %v4448_v59  ;;  %1556 = vmatprep.subr.bf16.mxu1 %v4450_v38  ;;  %v6963_v38 = vld [vmem:[#allocation101_spill] sm:$0xff]  ;;  %v6964_v59 = vld [vmem:[#allocation102_spill] sm:$0xff] }
 0x342   :  { %1516 = vmatpush1.bf16.msra.mxu0 %v4456_v44  ;;  %1557 = vmatpush1.bf16.msra.mxu1 %v6947_v30  ;;  %v6962_v44 = vld [vmem:[#allocation100_spill] sm:$0xff] }
 0x343   :  { %1517 = vmatprep.subr.bf16.mxu0 %v6948_v46  ;;  %1558 = vmatprep.subr.bf16.mxu1 %v6949_v31 }
 0x346   :  { %1518 = vmatpush1.bf16.msra.mxu0 %v6950_v34  ;;  %1559 = vmatpush1.bf16.msra.mxu1 %v6951_v29  ;;  %v6978_v34 = vld [vmem:[#allocation25_spill] sm:$0xff] }
 0x347   :  { %1519 = vmatprep.subr.bf16.mxu0 %v6952_v26  ;;  %1560 = vmatprep.subr.bf16.mxu1 %v6953_v25  ;;  %v6979_v26 = vld [vmem:[#allocation26_spill] sm:$0xff] }
 0x34a   :  { %1520 = vmatpush1.bf16.msra.mxu0 %v6954_v21  ;;  %1561 = vmatpush1.bf16.msra.mxu1 %v6955_v35  ;;  %v6980_v21 = vld [vmem:[#allocation27_spill] sm:$0xff] }
 0x34b   :  { %1521 = vmatprep.subr.bf16.mxu0 %v6956_v37  ;;  %1562 = vmatprep.subr.bf16.mxu1 %v6957_v43  ;;  %v6981_v37 = vld [vmem:[#allocation28_spill] sm:$0xff] }
 0x34e   :  { %1522 = vmatpush1.bf16.msra.mxu0 %v6958_v55  ;;  %1563 = vmatpush1.bf16.msra.mxu1 %v6959_v63 }
 0x34f   :  { %1523 = vmatprep.subr.bf16.mxu0 %v6960_v2  ;;  %1564 = vmatprep.subr.bf16.mxu1 %v6961_v6 }
 0x352   :  { %1524 = vmatpush1.bf16.msra.mxu0 %v6962_v44  ;;  %1565 = vmatpush1.bf16.msra.mxu1 %v6963_v38 }
 0x353   :  { %1525 = vmatprep.subr.bf16.mxu0 %v6964_v59  ;;  %1566 = vmatprep.subr.bf16.mxu1 %v6965_v7 }
 0x356   :  { %1526 = vmatpush1.bf16.msra.mxu0 %v6966_v51  ;;  %1567 = vmatpush1.bf16.msra.mxu1 %v6967_v32 }
 0x357   :  { %1527 = vmatprep.subr.bf16.mxu0 %v6968_v4  ;;  %1568 = vmatprep.subr.bf16.mxu1 %v6969_v45 }
 0x35a   :  { %1528 = vmatpush1.bf16.msra.mxu0 %v6970_v22  ;;  %1569 = vmatpush1.bf16.msra.mxu1 %v6971_v48 }
 0x35b   :  { %1529 = vmatprep.subr.bf16.mxu0 %v6972_v28  ;;  %1570 = vmatprep.subr.bf16.mxu1 %v6973_v39  ;;  %v6982_v28 = vld [vmem:[#allocation57_spill] sm:$0xff] }
 0x35e   :  { %1530 = vmatpush1.bf16.msra.mxu0 %v6974_v14  ;;  %1571 = vmatpush1.bf16.msra.mxu1 %v6975_v49  ;;  %v6983_v14 = vld [vmem:[#allocation58_spill] sm:$0xff] }
 0x35f   :  { %1581 = vmatprep.subr.bf16.mxu0 %v6976_v40  ;;  %1622 = vmatprep.subr.bf16.mxu1 %v6977_v50 }
 0x3b4   :  { %v1311_v15 = vpop.f32.mrb[40].mxu0  ;;  %v1352_v52 = vpop.f32.mrb[40].mxu1 }
 0x3b5   :  { %v1313_v47 = vpop.f32.mrb[41].mxu0  ;;  %v1354_v58 = vpop.f32.mrb[41].mxu1  ;;  %v1441_v29 = vadd.f32 %v1311_v15, %v6978_v34  ;;  %v1443_v25 = vadd.f32 %v1352_v52, %v6979_v26  ;;  %v6984_v15 = vld [vmem:[#allocation59_spill] sm:$0xff] }
 0x3b6   :  { %v1315_v12 = vpop.f32.mrb[42].mxu0  ;;  %v1356_v30 = vpop.f32.mrb[42].mxu1  ;;  %v1442_v35 = vadd.f32 %v1313_v47, %v6980_v21  ;;  %v1444_v43 = vadd.f32 %v1354_v58, %v6981_v37  ;;  %v6985_v47 = vld [vmem:[#allocation60_spill] sm:$0xff] }
 0x3b7   :  { %v1316_v46 = vpop.f32.mrb[43].mxu0  ;;  %v1357_v31 = vpop.f32.mrb[43].mxu1  ;;  %v3257_v55 = vmul.f32 -1.442695, %v1441_v29  ;;  %v3259_v63 = vmul.f32 -1.442695, %v1443_v25 }
 0x3b8   :  { %v3258_v2 = vmul.f32 -1.442695, %v1442_v35  ;;  %v3260_v6 = vmul.f32 -1.442695, %v1444_v43 }
 0x3b9   :  { %3397 = vpow2.f32 %v3257_v55 }
 0x3ba   :  { %3399 = vpow2.f32 %v3259_v63 }
 0x3bb   :  { %3401 = vpow2.f32 %v3258_v2 }
 0x3bc   :  { %3403 = vpow2.f32 %v3260_v6 }
 0x3c3   :  { %v3398_v44 = vpop.eup %3397 }
 0x3c4   :  { %v3400_v38 = vpop.eup %3399  ;;  %v1467_v51 = vadd.f32 1.0, %v3398_v44 }
 0x3c5   :  { %v3402_v59 = vpop.eup %3401  ;;  %v1469_v32 = vadd.f32 1.0, %v3400_v38 }
 0x3c6   :  { %v3404_v7 = vpop.eup %3403  ;;  %v1468_v4 = vadd.f32 1.0, %v3402_v59  ;;  %3405 = vrcp.f32 %v1467_v51 }
 0x3c7   :  { %v1470_v45 = vadd.f32 1.0, %v3404_v7  ;;  %3407 = vrcp.f32 %v1469_v32 }
 0x3c8   :  { %3409 = vrcp.f32 %v1468_v4 }
 0x3c9   :  { %3411 = vrcp.f32 %v1470_v45 }
 0x3d0   :  { %v3406_v26 = vpop.eup %3405 }
 0x3d1   :  { %v3408_v25 = vpop.eup %3407 }
 0x3d2   :  { %v3410_v21 = vpop.eup %3409  ;;  %v1487_v55 = vmul.f32 %v3408_v25, %v4818_v17  ;;  %v7008_v25 = vld [vmem:[#allocation145_spill] sm:$0xff] }
 0x3d3   :  { %v3412_v35 = vpop.eup %3411 }
 0x3d4   :  { %v1488_v6 = vmul.f32 %v3412_v35, %v4820_v36  ;;  %v7010_v35 = vld [vmem:[#allocation147_spill] sm:$0xff] }
 0x3f4   :  { %v1393_v22 = vpop.f32.mrb[44].mxu0  ;;  %v1434_v48 = vpop.f32.mrb[44].mxu1 }
 0x3f5   :  { %v1445_v39 = vadd.f32 %v1393_v22, %v6982_v28  ;;  %v1447_v49 = vadd.f32 %v1434_v48, %v6983_v14  ;;  %v1395_v40 = vpop.f32.mrb[45].mxu0  ;;  %v1436_v50 = vpop.f32.mrb[45].mxu1  ;;  %v6986_v14 = vld [vmem:[#allocation123_spill] sm:$0xff] }
 0x3f6   :  { %v1446_v52 = vadd.f32 %v1395_v40, %v6984_v15  ;;  %v1448_v58 = vadd.f32 %v1436_v50, %v6985_v47  ;;  %v1397_v12 = vpop.f32.mrb[46].mxu0  ;;  %v1438_v30 = vpop.f32.mrb[46].mxu1  ;;  %v6988_v40 = vld [vmem:[#allocation125_spill] sm:$0xff]  ;;  %v6991_v50 = vld [vmem:[#allocation128_spill] sm:$0xff]  ;;  %v6997_v15 = vld [vmem:[#allocation134_spill] sm:$0xff] }
 0x3f7   :  { %v3261_v46 = vmul.f32 -1.442695, %v1445_v39  ;;  %3413 = vtanh.f32 %v1447_v49  ;;  %v1398_v31 = vpop.f32.mrb[47].mxu0  ;;  %v1439_v34 = vpop.f32.mrb[47].mxu1  ;;  %v6987_v49 = vld [vmem:[#allocation124_spill] sm:$0xff]  ;;  %v7001_v12 = vld [vmem:[#allocation138_spill] sm:$0xff] }
 0x3f8   :  { %v3262_v29 = vmul.f32 -1.442695, %v1446_v52  ;;  %3415 = vtanh.f32 %v1448_v58  ;;  %v6998_v52 = vld [vmem:[#allocation135_spill] sm:$0xff]  ;;  %v6999_v47 = vld [vmem:[#allocation136_spill] sm:$0xff]  ;;  %v7000_v58 = vld [vmem:[#allocation137_spill] sm:$0xff] }
 0x3f9   :  { %3417 = vpow2.f32 %v3261_v46  ;;  %v7002_v30 = vld [vmem:[#allocation139_spill] sm:$0xff]  ;;  %v7003_v46 = vld [vmem:[#allocation140_spill] sm:$0xff]  ;;  %v7004_v31 = vld [vmem:[#allocation141_spill] sm:$0xff] }
 0x3fa   :  { %3419 = vpow2.f32 %v3262_v29  ;;  %v7005_v34 = vld [vmem:[#allocation142_spill] sm:$0xff]  ;;  %v7006_v29 = vld [vmem:[#allocation143_spill] sm:$0xff] }
 0x401   :  { %v3414_v37 = vpop.eup %3413 }
 0x402   :  { %v3416_v43 = vpop.eup %3415  ;;  %v1489_v63 = vmul.f32 %v3414_v37, %v3406_v26  ;;  %v7007_v26 = vld [vmem:[#allocation144_spill] sm:$0xff] }
 0x403   :  { %v3418_v2 = vpop.eup %3417  ;;  %v1490_v44 = vmul.f32 %v3416_v43, %v3410_v21  ;;  %v7009_v21 = vld [vmem:[#allocation146_spill] sm:$0xff]  ;;  %v7011_v37 = vld [vmem:[#allocation148_spill] sm:$0xff]  ;;  %v7012_v43 = vld [vmem:[#allocation149_spill] sm:$0xff] }
 0x404   :  { %v3420_v38 = vpop.eup %3419  ;;  %v1471_v59 = vadd.f32 1.0, %v3418_v2  ;;  %v4968_v7 = vadd.f32 %v1489_v63, %v1487_v55  ;;  %v7013_v55 = vld [vmem:[#allocation150_spill] sm:$0xff]  ;;  %v7014_v63 = vld [vmem:[#allocation151_spill] sm:$0xff]  ;;  %v7015_v2 = vld [vmem:[#allocation152_spill] sm:$0xff] }
 0x405   :  { %v1472_v51 = vadd.f32 1.0, %v3420_v38  ;;  %v4970_v32 = vadd.f32 %v1490_v44, %v1488_v6  ;;  %v7016_v6 = vld [vmem:[#allocation153_spill] sm:$0xff]  ;;  %v7017_v44 = vld [vmem:[#allocation154_spill] sm:$0xff]  ;;  %v7018_v38 = vld [vmem:[#allocation155_spill] sm:$0xff] }
 0x406   :  { %3421 = vrcp.f32 %v1471_v59  ;;  %v7019_v59 = vld [vmem:[#allocation156_spill] sm:$0xff] }
 0x407   :  { %3423 = vtanh.f32 %v4968_v7 }
 0x408   :  { %3425 = vrcp.f32 %v1472_v51  ;;  %v7020_v51 = vld [vmem:[#allocation158_spill] sm:$0xff] }
 0x409   :  { %3427 = vtanh.f32 %v4970_v32 }
 0x410   :  { %v3422_v4 = vpop.eup %3421 }
 0x411   :  { %v3424_v17 = vpop.eup %3423 }
 0x412   :  { %v3426_v45 = vpop.eup %3425  ;;  %v1495_v48 = vmul.f32 %v3424_v17, %v3422_v4  ;;  %v7021_v4 = vld [vmem:[#allocation159_spill] sm:$0xff]  ;;  %v5099_v17 = vld [vmem:[#allocation2 + $0x110] sm:$0xff] }
 0x413   :  { %v3428_v22 = vpop.eup %3427 }
 0x414   :  { %v1496_v36 = vmul.f32 %v3428_v22, %v3426_v45  ;;  %v4974_v39 = vpack.c.bf16 %v1495_v48, %v1495_v48  ;;  %v5102_v45 = vld [vmem:[#allocation2 + $0x148] sm:$0xff]  ;;  %v5105_v22 = vld [vmem:[#allocation2 + $0x158] sm:$0xff]  ;;  %v5108_v48 = vld [vmem:[#allocation2 + $0x140] sm:$0xff] }
 0x415   :  { %7022 = vst [vmem:[#allocation21_spill] sm:$0xff] %v5105_v22  ;;  %7023 = vst [vmem:[#allocation22_spill] sm:$0xff] %v5108_v48 }
 0x416   :  { %v1498_v28 = vpack.c.bf16 %v1496_v36, %v1496_v36  ;;  %v5111_v36 = vld [vmem:[#allocation2 + $0x150] sm:$0xff] }
 0x417   :  { %7024 = vst [vmem:[#allocation23_spill] sm:$0xff] %v5111_v36 }
 0x418   :  { %1531 = vmatprep.mubr.bf16.mxu0 %v1498_v28  ;;  %1572 = vmatprep.mubr.bf16.mxu1 %v1498_v28 }
 0x419   :  { %1532 = vmatmul.mubr.bf16.vlgmr.msra.gmra.mrb[48].mxu0 %v4974_v39  ;;  %1573 = vmatmul.mubr.bf16.vlgmr.msra.gmra.mrb[48].mxu1 %v4974_v39 }
 0x41a   :  { %1582 = vmatpush1.bf16.msra.mxu0 %v6893_v8  ;;  %1623 = vmatpush1.bf16.msra.mxu1 %v6894_v13  ;;  %v6989_v8 = vld [vmem:[#allocation126_spill] sm:$0xff]  ;;  %v6990_v13 = vld [vmem:[#allocation127_spill] sm:$0xff] }
 0x41b   :  { %1613 = vmatprep.mubr.bf16.mxu0 %v1498_v28  ;;  %1654 = vmatprep.mubr.bf16.mxu1 %v1498_v28  ;;  %v5114_v28 = vld [vmem:[#allocation2 + $0x188] sm:$0xff] }
 0x41c   :  { %1583 = vmatprep.subr.bf16.mxu0 %v6895_v9  ;;  %1624 = vmatprep.subr.bf16.mxu1 %v6896_v3  ;;  %v6992_v9 = vld [vmem:[#allocation129_spill] sm:$0xff]  ;;  %v6993_v3 = vld [vmem:[#allocation130_spill] sm:$0xff]  ;;  %7025 = vst [vmem:[#allocation24_spill] sm:$0xff] %v5114_v28 }
 0x41e   :  { %1584 = vmatpush1.bf16.msra.mxu0 %v6897_v1  ;;  %1625 = vmatpush1.bf16.msra.mxu1 %v6898_v0  ;;  %v6994_v1 = vld [vmem:[#allocation131_spill] sm:$0xff]  ;;  %v6995_v0 = vld [vmem:[#allocation132_spill] sm:$0xff] }
 0x41f   :  { %1585 = vmatprep.subr.bf16.mxu0 %v6899_v19  ;;  %1626 = vmatprep.subr.bf16.mxu1 %v6986_v14  ;;  %v6996_v19 = vld [vmem:[#allocation133_spill] sm:$0xff]  ;;  %v5120_v14 = vld [vmem:[#allocation2 + $0x180] sm:$0xff] }
 0x420   :  { %7027 = vst [vmem:[#allocation54_spill] sm:$0xff] %v5120_v14 }
 0x422   :  { %1586 = vmatpush1.bf16.msra.mxu0 %v6987_v49  ;;  %1627 = vmatpush1.bf16.msra.mxu1 %v6988_v40  ;;  %v5123_v49 = vld [vmem:[#allocation2 + $0x190] sm:$0xff]  ;;  %v5126_v40 = vld [vmem:[#allocation2 + $0x1c8] sm:$0xff] }
 0x423   :  { %1587 = vmatprep.subr.bf16.mxu0 %v6989_v8  ;;  %1628 = vmatprep.subr.bf16.mxu1 %v6990_v13  ;;  %7028 = vst [vmem:[#allocation55_spill] sm:$0xff] %v5123_v49  ;;  %7029 = vst [vmem:[#allocation56_spill] sm:$0xff] %v5126_v40  ;;  %v5129_v8 = vld [vmem:[#allocation2 + $0x1d8] sm:$0xff]  ;;  %v5132_v13 = vld [vmem:[#allocation2 + $0x1c0] sm:$0xff] }
 0x424   :  { %7030 = vst [vmem:[#allocation116_spill] sm:$0xff] %v5129_v8  ;;  %7031 = vst [vmem:[#allocation117_spill] sm:$0xff] %v5132_v13 }
 0x426   :  { %1588 = vmatpush1.bf16.msra.mxu0 %v6991_v50  ;;  %1629 = vmatpush1.bf16.msra.mxu1 %v6992_v9  ;;  %v5135_v50 = vld [vmem:[#allocation2 + $0x1d0] sm:$0xff]  ;;  %v5138_v9 = vld [vmem:[#allocation2 + $0x208] sm:$0xff] }
 0x427   :  { %1589 = vmatprep.subr.bf16.mxu0 %v6993_v3  ;;  %1630 = vmatprep.subr.bf16.mxu1 %v6994_v1  ;;  %7032 = vst [vmem:[#allocation118_spill] sm:$0xff] %v5135_v50  ;;  %7033 = vst [vmem:[#allocation119_spill] sm:$0xff] %v5138_v9  ;;  %v5141_v3 = vld [vmem:[#allocation2 + $0x218] sm:$0xff]  ;;  %v5144_v1 = vld [vmem:[#allocation2 + $0x200] sm:$0xff] }
 0x428   :  { %7034 = vst [vmem:[#allocation120_spill] sm:$0xff] %v5141_v3  ;;  %7035 = vst [vmem:[#allocation121_spill] sm:$0xff] %v5144_v1 }
 0x42a   :  { %1590 = vmatpush1.bf16.msra.mxu0 %v6995_v0  ;;  %1631 = vmatpush1.bf16.msra.mxu1 %v6996_v19  ;;  %v5147_v0 = vld [vmem:[#allocation2 + $0x210] sm:$0xff]  ;;  %v5150_v19 = vld [vmem:[#allocation2 + $0x248] sm:$0xff] }
 0x42b   :  { %1591 = vmatprep.subr.bf16.mxu0 %v6997_v15  ;;  %1632 = vmatprep.subr.bf16.mxu1 %v6998_v52  ;;  %7036 = vst [vmem:[#allocation122_spill] sm:$0xff] %v5147_v0  ;;  %7037 = vst [vmem:[#allocation157_spill] sm:$0xff] %v5150_v19  ;;  %v5153_v15 = vld [vmem:[#allocation2 + $0x258] sm:$0xff]  ;;  %v5156_v52 = vld [vmem:[#allocation2 + $0x240] sm:$0xff] }
 0x42c   :  { %7038 = vst [vmem:[#allocation160_spill] sm:$0xff] %v5153_v15  ;;  %7039 = vst [vmem:[#allocation161_spill] sm:$0xff] %v5156_v52 }
 0x42e   :  { %1592 = vmatpush1.bf16.msra.mxu0 %v6999_v47  ;;  %1633 = vmatpush1.bf16.msra.mxu1 %v7000_v58  ;;  %v5159_v47 = vld [vmem:[#allocation2 + $0x250] sm:$0xff]  ;;  %v5162_v58 = vld [vmem:[#allocation2 + $0x288] sm:$0xff] }
 0x42f   :  { %1593 = vmatprep.subr.bf16.mxu0 %v7001_v12  ;;  %1634 = vmatprep.subr.bf16.mxu1 %v7002_v30  ;;  %7040 = vst [vmem:[#allocation162_spill] sm:$0xff] %v5159_v47  ;;  %7041 = vst [vmem:[#allocation163_spill] sm:$0xff] %v5162_v58  ;;  %v5165_v12 = vld [vmem:[#allocation2 + $0x298] sm:$0xff]  ;;  %v5168_v30 = vld [vmem:[#allocation2 + $0x280] sm:$0xff] }
 0x430   :  { %7042 = vst [vmem:[#allocation164_spill] sm:$0xff] %v5165_v12  ;;  %7043 = vst [vmem:[#allocation165_spill] sm:$0xff] %v5168_v30 }
 0x432   :  { %1594 = vmatpush1.bf16.msra.mxu0 %v7003_v46  ;;  %1635 = vmatpush1.bf16.msra.mxu1 %v7004_v31  ;;  %v5171_v46 = vld [vmem:[#allocation2 + $0x290] sm:$0xff]  ;;  %v5174_v31 = vld [vmem:[#allocation2 + $0x2c8] sm:$0xff] }
 0x433   :  { %1595 = vmatprep.subr.bf16.mxu0 %v7005_v34  ;;  %1636 = vmatprep.subr.bf16.mxu1 %v7006_v29  ;;  %7044 = vst [vmem:[#allocation166_spill] sm:$0xff] %v5171_v46  ;;  %7045 = vst [vmem:[#allocation167_spill] sm:$0xff] %v5174_v31  ;;  %v5177_v34 = vld [vmem:[#allocation2 + $0x2d8] sm:$0xff]  ;;  %v5180_v29 = vld [vmem:[#allocation2 + $0x2c0] sm:$0xff] }
 0x434   :  { %7046 = vst [vmem:[#allocation168_spill] sm:$0xff] %v5177_v34  ;;  %7047 = vst [vmem:[#allocation169_spill] sm:$0xff] %v5180_v29 }
 0x436   :  { %1596 = vmatpush1.bf16.msra.mxu0 %v7007_v26  ;;  %1637 = vmatpush1.bf16.msra.mxu1 %v7008_v25  ;;  %v5183_v26 = vld [vmem:[#allocation2 + $0x2d0] sm:$0xff]  ;;  %v5186_v25 = vld [vmem:[#allocation2 + $0x308] sm:$0xff] }
 0x437   :  { %1597 = vmatprep.subr.bf16.mxu0 %v7009_v21  ;;  %1638 = vmatprep.subr.bf16.mxu1 %v7010_v35  ;;  %7048 = vst [vmem:[#allocation85_spill] sm:$0xff] %v5183_v26  ;;  %7049 = vst [vmem:[#allocation86_spill] sm:$0xff] %v5186_v25  ;;  %v5189_v21 = vld [vmem:[#allocation2 + $0x318] sm:$0xff]  ;;  %v5192_v35 = vld [vmem:[#allocation2 + $0x300] sm:$0xff] }
 0x438   :  { %7050 = vst [vmem:[#allocation87_spill] sm:$0xff] %v5189_v21  ;;  %7051 = vst [vmem:[#allocation88_spill] sm:$0xff] %v5192_v35 }
 0x43a   :  { %1598 = vmatpush1.bf16.msra.mxu0 %v7011_v37  ;;  %1639 = vmatpush1.bf16.msra.mxu1 %v7012_v43  ;;  %v5195_v37 = vld [vmem:[#allocation2 + $0x310] sm:$0xff]  ;;  %v5198_v43 = vld [vmem:[#allocation2 + $0x348] sm:$0xff] }
 0x43b   :  { %1599 = vmatprep.subr.bf16.mxu0 %v7013_v55  ;;  %1640 = vmatprep.subr.bf16.mxu1 %v7014_v63  ;;  %7052 = vst [vmem:[#allocation89_spill] sm:$0xff] %v5195_v37  ;;  %7053 = vst [vmem:[#allocation90_spill] sm:$0xff] %v5198_v43  ;;  %v5201_v55 = vld [vmem:[#allocation2 + $0x358] sm:$0xff]  ;;  %v5204_v63 = vld [vmem:[#allocation2 + $0x340] sm:$0xff] }
 0x43c   :  { %7054 = vst [vmem:[#allocation91_spill] sm:$0xff] %v5201_v55  ;;  %7055 = vst [vmem:[#allocation92_spill] sm:$0xff] %v5204_v63 }
 0x43e   :  { %1600 = vmatpush1.bf16.msra.mxu0 %v7015_v2  ;;  %1641 = vmatpush1.bf16.msra.mxu1 %v7016_v6  ;;  %v5207_v2 = vld [vmem:[#allocation2 + $0x350] sm:$0xff]  ;;  %v5210_v6 = vld [vmem:[#allocation2 + $0x388] sm:$0xff] }
 0x43f   :  { %1601 = vmatprep.subr.bf16.mxu0 %v7017_v44  ;;  %1642 = vmatprep.subr.bf16.mxu1 %v7018_v38  ;;  %7056 = vst [vmem:[#allocation93_spill] sm:$0xff] %v5207_v2  ;;  %7057 = vst [vmem:[#allocation94_spill] sm:$0xff] %v5210_v6  ;;  %v5213_v44 = vld [vmem:[#allocation2 + $0x398] sm:$0xff]  ;;  %v5216_v38 = vld [vmem:[#allocation2 + $0x380] sm:$0xff] }
 0x440   :  { %7058 = vst [vmem:[#allocation95_spill] sm:$0xff] %v5213_v44  ;;  %7059 = vst [vmem:[#allocation96_spill] sm:$0xff] %v5216_v38 }
 0x442   :  { %1602 = vmatpush1.bf16.msra.mxu0 %v7019_v59  ;;  %1643 = vmatpush1.bf16.msra.mxu1 %v6934_v20  ;;  %v5069_v20 = vld [vmem:[#allocation2 + $0x98] sm:$0xff]  ;;  %v5219_v59 = vld [vmem:[#allocation2 + $0x390] sm:$0xff] }
 0x443   :  { %1603 = vmatprep.subr.bf16.mxu0 %v7020_v51  ;;  %1644 = vmatprep.subr.bf16.mxu1 %v7021_v4  ;;  %7060 = vst [vmem:[#allocation97_spill] sm:$0xff] %v5219_v59  ;;  %v5222_v51 = vld [vmem:[#allocation2 + $0x3c8] sm:$0xff]  ;;  %v5225_v4 = vld [vmem:[#allocation2 + $0x3d8] sm:$0xff] }
 0x444   :  { %7061 = vst [vmem:[#allocation98_spill] sm:$0xff] %v5222_v51  ;;  %7062 = vst [vmem:[#allocation99_spill] sm:$0xff] %v5225_v4 }
 0x446   :  { %1604 = vmatpush1.bf16.msra.mxu0 %v6937_v42  ;;  %1645 = vmatpush1.bf16.msra.mxu1 %v6938_v5  ;;  %v5078_v42 = vld [vmem:[#allocation2 + $0xc8] sm:$0xff]  ;;  %v5081_v5 = vld [vmem:[#allocation2 + $0xd8] sm:$0xff] }
 0x447   :  { %1605 = vmatprep.subr.bf16.mxu0 %v6939_v23  ;;  %1646 = vmatprep.subr.bf16.mxu1 %v6940_v10  ;;  %v5084_v23 = vld [vmem:[#allocation2 + $0xc0] sm:$0xff]  ;;  %v5087_v10 = vld [vmem:[#allocation2 + $0xd0] sm:$0xff] }
 0x44a   :  { %1606 = vmatpush1.bf16.msra.mxu0 %v6941_v54  ;;  %1647 = vmatpush1.bf16.msra.mxu1 %v6942_v11  ;;  %v5090_v54 = vld [vmem:[#allocation2 + $0x108] sm:$0xff]  ;;  %v5093_v11 = vld [vmem:[#allocation2 + $0x118] sm:$0xff] }
 0x44b   :  { %1607 = vmatprep.subr.bf16.mxu0 %v6943_v61  ;;  %1648 = vmatprep.subr.bf16.mxu1 %v6944_v41  ;;  %v5040_v41 = vld [vmem:[#allocation2 + $0x8] sm:$0xff]  ;;  %v5096_v61 = vld [vmem:[#allocation2 + $0x100] sm:$0xff] }
 0x44e   :  { %1608 = vmatpush1.bf16.msra.mxu0 %v4712_v53  ;;  %1649 = vmatpush1.bf16.msra.mxu1 %v6945_v16  ;;  %v5043_v53 = vld [vmem:[#allocation2 + $0x18] sm:$0xff]  ;;  %v5072_v16 = vld [vmem:[#allocation2 + $0x80] sm:$0xff] }
 0x44f   :  { %1609 = vmatprep.subr.bf16.mxu0 %v6946_v62  ;;  %1650 = vmatprep.subr.bf16.mxu1 %v4718_v27  ;;  %v5063_v27 = vld [vmem:[#allocation2 + $0x50] sm:$0xff] }
 0x450   :  { %v5075_v62 = vld [vmem:[#allocation2 + $0x90] sm:$0xff] }
 0x452   :  { %1610 = vmatpush1.bf16.msra.mxu0 %v4724_v60  ;;  %1651 = vmatpush1.bf16.msra.mxu1 %v4726_v18  ;;  %v5048_v60 = vld [vmem:[#allocation2] sm:$0xff]  ;;  %v5057_v18 = vld [vmem:[#allocation2 + $0x58] sm:$0xff] }
 0x453   :  { %1611 = vmatprep.subr.bf16.mxu0 %v4728_v24  ;;  %1652 = vmatprep.subr.bf16.mxu1 %v4730_v57  ;;  %v5051_v57 = vld [vmem:[#allocation2 + $0x10] sm:$0xff]  ;;  %v5060_v24 = vld [vmem:[#allocation2 + $0x40] sm:$0xff] }
 0x456   :  { %1612 = vmatpush1.bf16.msra.mxu0 %v4736_v56  ;;  %1653 = vmatpush1.bf16.msra.mxu1 %v4738_v33  ;;  %v5054_v56 = vld [vmem:[#allocation2 + $0x48] sm:$0xff] }
 0x457   :  { %1721 = vmatprep.subr.bf16.mxu0 %v5040_v41  ;;  %1762 = vmatprep.subr.bf16.mxu1 %v5043_v53  ;;  %v5066_v33 = vld [vmem:[#allocation2 + $0x88] sm:$0xff] }
 0x459   :  { %1614 = vmatmul.mubr.bf16.vlgmr.msra.gmra.mrb[52].mxu0 %v4974_v39  ;;  %1655 = vmatmul.mubr.bf16.vlgmr.msra.gmra.mrb[52].mxu1 %v4974_v39  ;;  %v5117_v39 = vld [vmem:[#allocation2 + $0x198] sm:$0xff] }
 0x45a   :  { %1722 = vmatpush1.bf16.msra.mxu0 %v5048_v60  ;;  %1763 = vmatpush1.bf16.msra.mxu1 %v5051_v57  ;;  %7026 = vst [vmem:[#allocation53_spill] sm:$0xff] %v5117_v39 }
 0x45b   :  { %1723 = vmatprep.subr.bf16.mxu0 %v5054_v56  ;;  %1764 = vmatprep.subr.bf16.mxu1 %v5057_v18 }
 0x45e   :  { %1724 = vmatpush1.bf16.msra.mxu0 %v5060_v24  ;;  %1765 = vmatpush1.bf16.msra.mxu1 %v5063_v27 }
 0x45f   :  { %1725 = vmatprep.subr.bf16.mxu0 %v5066_v33  ;;  %1766 = vmatprep.subr.bf16.mxu1 %v5069_v20 }
 0x462   :  { %1726 = vmatpush1.bf16.msra.mxu0 %v5072_v16  ;;  %1767 = vmatpush1.bf16.msra.mxu1 %v5075_v62 }
 0x463   :  { %1727 = vmatprep.subr.bf16.mxu0 %v5078_v42  ;;  %1768 = vmatprep.subr.bf16.mxu1 %v5081_v5 }
 0x466   :  { %1728 = vmatpush1.bf16.msra.mxu0 %v5084_v23  ;;  %1769 = vmatpush1.bf16.msra.mxu1 %v5087_v10 }
 0x467   :  { %1729 = vmatprep.subr.bf16.mxu0 %v5090_v54  ;;  %1770 = vmatprep.subr.bf16.mxu1 %v5093_v11 }
 0x46a   :  { %1730 = vmatpush1.bf16.msra.mxu0 %v5096_v61  ;;  %1771 = vmatpush1.bf16.msra.mxu1 %v5099_v17 }
 0x46b   :  { %1731 = vmatprep.subr.bf16.mxu0 %v5102_v45  ;;  %1772 = vmatprep.subr.bf16.mxu1 %v5105_v22 }
 0x46e   :  { %1732 = vmatpush1.bf16.msra.mxu0 %v5108_v48  ;;  %1773 = vmatpush1.bf16.msra.mxu1 %v5111_v36 }
 0x46f   :  { %1733 = vmatprep.subr.bf16.mxu0 %v5114_v28  ;;  %1774 = vmatprep.subr.bf16.mxu1 %v5117_v39 }
 0x472   :  { %1734 = vmatpush1.bf16.msra.mxu0 %v5120_v14  ;;  %1775 = vmatpush1.bf16.msra.mxu1 %v5123_v49 }
 0x473   :  { %1735 = vmatprep.subr.bf16.mxu0 %v5126_v40  ;;  %1776 = vmatprep.subr.bf16.mxu1 %v5129_v8 }
 0x476   :  { %1736 = vmatpush1.bf16.msra.mxu0 %v5132_v13  ;;  %1777 = vmatpush1.bf16.msra.mxu1 %v5135_v50 }
 0x477   :  { %1737 = vmatprep.subr.bf16.mxu0 %v5138_v9  ;;  %1778 = vmatprep.subr.bf16.mxu1 %v5141_v3 }
 0x47a   :  { %1738 = vmatpush1.bf16.msra.mxu0 %v5144_v1  ;;  %1779 = vmatpush1.bf16.msra.mxu1 %v5147_v0 }
 0x47b   :  { %1739 = vmatprep.subr.bf16.mxu0 %v5150_v19  ;;  %1780 = vmatprep.subr.bf16.mxu1 %v5153_v15 }
 0x47e   :  { %1740 = vmatpush1.bf16.msra.mxu0 %v5156_v52  ;;  %1781 = vmatpush1.bf16.msra.mxu1 %v5159_v47 }
 0x47f   :  { %1741 = vmatprep.subr.bf16.mxu0 %v5162_v58  ;;  %1782 = vmatprep.subr.bf16.mxu1 %v5165_v12 }
 0x482   :  { %1742 = vmatpush1.bf16.msra.mxu0 %v5168_v30  ;;  %1783 = vmatpush1.bf16.msra.mxu1 %v5171_v46 }
 0x483   :  { %1743 = vmatprep.subr.bf16.mxu0 %v5174_v31  ;;  %1784 = vmatprep.subr.bf16.mxu1 %v5177_v34  ;;  %v7070_v34 = vld [vmem:[#allocation32_spill] sm:$0xff] }
 0x486   :  { %1744 = vmatpush1.bf16.msra.mxu0 %v5180_v29  ;;  %1785 = vmatpush1.bf16.msra.mxu1 %v5183_v26  ;;  %v7069_v26 = vld [vmem:[#allocation31_spill] sm:$0xff] }
 0x487   :  { %1745 = vmatprep.subr.bf16.mxu0 %v5186_v25  ;;  %1786 = vmatprep.subr.bf16.mxu1 %v5189_v21  ;;  %v7068_v25 = vld [vmem:[#allocation30_spill] sm:$0xff] }
 0x48a   :  { %1746 = vmatpush1.bf16.msra.mxu0 %v5192_v35  ;;  %1787 = vmatpush1.bf16.msra.mxu1 %v5195_v37  ;;  %v7067_v35 = vld [vmem:[#allocation29_spill] sm:$0xff] }
 0x48b   :  { %1747 = vmatprep.subr.bf16.mxu0 %v5198_v43  ;;  %1788 = vmatprep.subr.bf16.mxu1 %v5201_v55 }
 0x48e   :  { %1748 = vmatpush1.bf16.msra.mxu0 %v5204_v63  ;;  %1789 = vmatpush1.bf16.msra.mxu1 %v5207_v2 }
 0x48f   :  { %1749 = vmatprep.subr.bf16.mxu0 %v5210_v6  ;;  %1790 = vmatprep.subr.bf16.mxu1 %v5213_v44  ;;  %v5228_v6 = vld [vmem:[#allocation2 + $0x3c0] sm:$0xff]  ;;  %v5231_v44 = vld [vmem:[#allocation2 + $0x3d0] sm:$0xff] }
 0x490   :  { %7063 = vst [vmem:[#allocation100_spill] sm:$0xff] %v5228_v6  ;;  %7064 = vst [vmem:[#allocation101_spill] sm:$0xff] %v5231_v44 }
 0x492   :  { %1750 = vmatpush1.bf16.msra.mxu0 %v5216_v38  ;;  %1791 = vmatpush1.bf16.msra.mxu1 %v5219_v59  ;;  %v5234_v38 = vld [vmem:[#allocation2 + $0x28] sm:$0xff]  ;;  %v5237_v59 = vld [vmem:[#allocation2 + $0x38] sm:$0xff] }
 0x493   :  { %1751 = vmatprep.subr.bf16.mxu0 %v5222_v51  ;;  %1792 = vmatprep.subr.bf16.mxu1 %v5225_v4  ;;  %7065 = vst [vmem:[#allocation102_spill] sm:$0xff] %v5234_v38  ;;  %7066 = vst [vmem:[#allocation103_spill] sm:$0xff] %v5237_v59 }
 0x496   :  { %1752 = vmatpush1.bf16.msra.mxu0 %v5228_v6  ;;  %1793 = vmatpush1.bf16.msra.mxu1 %v5231_v44 }
 0x497   :  { %1803 = vmatprep.subr.bf16.mxu0 %v5234_v38  ;;  %1844 = vmatprep.subr.bf16.mxu1 %v5237_v59 }
 0x4ec   :  { %v1533_v51 = vpop.f32.mrb[48].mxu0  ;;  %v1574_v2 = vpop.f32.mrb[48].mxu1 }
 0x4ed   :  { %v1535_v63 = vpop.f32.mrb[49].mxu0  ;;  %v1576_v4 = vpop.f32.mrb[49].mxu1  ;;  %v1663_v21 = vadd.f32 %v1533_v51, %v7067_v35  ;;  %v1665_v44 = vadd.f32 %v1574_v2, %v7068_v25  ;;  %v7073_v2 = vld [vmem:[#allocation63_spill] sm:$0xff] }
 0x4ee   :  { %v1537_v55 = vpop.f32.mrb[50].mxu0  ;;  %v1578_v43 = vpop.f32.mrb[50].mxu1  ;;  %v1664_v29 = vadd.f32 %v1535_v63, %v7069_v26  ;;  %v1666_v38 = vadd.f32 %v1576_v4, %v7070_v34  ;;  %v7072_v63 = vld [vmem:[#allocation62_spill] sm:$0xff] }
 0x4ef   :  { %v1538_v37 = vpop.f32.mrb[51].mxu0  ;;  %v1579_v6 = vpop.f32.mrb[51].mxu1  ;;  %v3263_v31 = vmul.f32 -1.442695, %v1663_v21  ;;  %v3265_v46 = vmul.f32 -1.442695, %v1665_v44 }
 0x4f0   :  { %v3264_v30 = vmul.f32 -1.442695, %v1664_v29  ;;  %v3266_v59 = vmul.f32 -1.442695, %v1666_v38  ;;  %v7071_v21 = vld [vmem:[#allocation61_spill] sm:$0xff]  ;;  %v7074_v38 = vld [vmem:[#allocation64_spill] sm:$0xff] }
 0x4f1   :  { %3429 = vpow2.f32 %v3263_v31 }
 0x4f2   :  { %3431 = vpow2.f32 %v3265_v46 }
 0x4f3   :  { %3433 = vpow2.f32 %v3264_v30 }
 0x4f4   :  { %3435 = vpow2.f32 %v3266_v59 }
 0x4fb   :  { %v3430_v55 = vpop.eup %3429 }
 0x4fc   :  { %v3432_v43 = vpop.eup %3431  ;;  %v1689_v12 = vadd.f32 1.0, %v3430_v55 }
 0x4fd   :  { %v3434_v37 = vpop.eup %3433  ;;  %v1691_v35 = vadd.f32 1.0, %v3432_v43 }
 0x4fe   :  { %v3436_v6 = vpop.eup %3435  ;;  %v1690_v51 = vadd.f32 1.0, %v3434_v37  ;;  %3437 = vrcp.f32 %v1689_v12 }
 0x4ff   :  { %v1692_v25 = vadd.f32 1.0, %v3436_v6  ;;  %3439 = vrcp.f32 %v1691_v35 }
 0x500   :  { %3441 = vrcp.f32 %v1690_v51 }
 0x501   :  { %3443 = vrcp.f32 %v1692_v25 }
 0x508   :  { %v3438_v35 = vpop.eup %3437 }
 0x509   :  { %v3440_v51 = vpop.eup %3439 }
 0x52c   :  { %v1615_v26 = vpop.f32.mrb[52].mxu0  ;;  %v1656_v34 = vpop.f32.mrb[52].mxu1 }
 0x52d   :  { %v1667_v29 = vadd.f32 %v1615_v26, %v7071_v21  ;;  %v1669_v31 = vadd.f32 %v1656_v34, %v7072_v63  ;;  %v1617_v46 = vpop.f32.mrb[53].mxu0  ;;  %v1658_v30 = vpop.f32.mrb[53].mxu1  ;;  %v1709_v63 = vmul.f32 %v3440_v51, %v4968_v7  ;;  %v5260_v51 = vld [vmem:[#allocation2 + $0x20] sm:$0xff] }
 0x52e   :  { %v1668_v44 = vadd.f32 %v1617_v46, %v7073_v2  ;;  %v1670_v59 = vadd.f32 %v1658_v30, %v7074_v38  ;;  %v1619_v4 = vpop.f32.mrb[54].mxu0  ;;  %v1660_v55 = vpop.f32.mrb[54].mxu1 }
 0x52f   :  { %v3267_v43 = vmul.f32 -1.442695, %v1667_v29  ;;  %3445 = vtanh.f32 %v1669_v31  ;;  %v1620_v12 = vpop.f32.mrb[55].mxu0  ;;  %v1661_v37 = vpop.f32.mrb[55].mxu1 }
 0x530   :  { %v3268_v6 = vmul.f32 -1.442695, %v1668_v44  ;;  %3447 = vtanh.f32 %v1670_v59  ;;  %v3442_v26 = vpop.eup %3441 }
 0x531   :  { %3449 = vpow2.f32 %v3267_v43  ;;  %v3444_v34 = vpop.eup %3443 }
 0x532   :  { %3451 = vpow2.f32 %v3268_v6  ;;  %v1710_v2 = vmul.f32 %v3444_v34, %v4970_v32  ;;  %v5266_v34 = vld [vmem:[#allocation2 + $0x68] sm:$0xff] }
 0x539   :  { %v3446_v21 = vpop.eup %3445 }
 0x53a   :  { %v3448_v25 = vpop.eup %3447  ;;  %v1711_v46 = vmul.f32 %v3446_v21, %v3438_v35  ;;  %v5269_v21 = vld [vmem:[#allocation2 + $0x78] sm:$0xff] }
 0x53b   :  { %v3450_v30 = vpop.eup %3449  ;;  %v1712_v29 = vmul.f32 %v3448_v25, %v3442_v26  ;;  %v5263_v26 = vld [vmem:[#allocation2 + $0x30] sm:$0xff]  ;;  %v5272_v25 = vld [vmem:[#allocation2 + $0x60] sm:$0xff] }
 0x53c   :  { %v3452_v31 = vpop.eup %3451  ;;  %v1693_v38 = vadd.f32 1.0, %v3450_v30  ;;  %v5250_v4 = vadd.f32 %v1711_v46, %v1709_v63  ;;  %v5275_v63 = vld [vmem:[#allocation2 + $0x70] sm:$0xff]  ;;  %v5278_v46 = vld [vmem:[#allocation2 + $0xa8] sm:$0xff]  ;;  %v5281_v30 = vld [vmem:[#allocation2 + $0xb8] sm:$0xff] }
 0x53d   :  { %v1694_v44 = vadd.f32 1.0, %v3452_v31  ;;  %v5252_v59 = vadd.f32 %v1712_v29, %v1710_v2  ;;  %v5284_v2 = vld [vmem:[#allocation2 + $0xa0] sm:$0xff]  ;;  %v5287_v29 = vld [vmem:[#allocation2 + $0xb0] sm:$0xff]  ;;  %v5290_v31 = vld [vmem:[#allocation2 + $0xe8] sm:$0xff] }
 0x53e   :  { %3453 = vrcp.f32 %v1693_v38  ;;  %v5293_v38 = vld [vmem:[#allocation2 + $0xf8] sm:$0xff] }
 0x53f   :  { %3455 = vtanh.f32 %v5250_v4 }
 0x540   :  { %3457 = vrcp.f32 %v1694_v44  ;;  %v5296_v44 = vld [vmem:[#allocation2 + $0xe0] sm:$0xff] }
 0x541   :  { %3459 = vtanh.f32 %v5252_v59 }
 0x548   :  { %v3454_v55 = vpop.eup %3453 }
 0x549   :  { %v3456_v7 = vpop.eup %3455 }
 0x54a   :  { %v3458_v43 = vpop.eup %3457  ;;  %v1717_v37 = vmul.f32 %v3456_v7, %v3454_v55  ;;  %v5299_v55 = vld [vmem:[#allocation2 + $0xf0] sm:$0xff]  ;;  %v5302_v7 = vld [vmem:[#allocation2 + $0x128] sm:$0xff] }
 0x54b   :  { %v3460_v12 = vpop.eup %3459  ;;  %7075 = vst [vmem:[#allocation104_spill] sm:$0xff] %v5302_v7 }
 0x54c   :  { %v1718_v32 = vmul.f32 %v3460_v12, %v3458_v43  ;;  %v5256_v35 = vpack.c.bf16 %v1717_v37, %v1717_v37  ;;  %v5305_v43 = vld [vmem:[#allocation2 + $0x138] sm:$0xff]  ;;  %v5308_v12 = vld [vmem:[#allocation2 + $0x120] sm:$0xff]  ;;  %v5311_v37 = vld [vmem:[#allocation2 + $0x130] sm:$0xff] }
 0x54d   :  { %7076 = vst [vmem:[#allocation105_spill] sm:$0xff] %v5305_v43  ;;  %7077 = vst [vmem:[#allocation106_spill] sm:$0xff] %v5308_v12 }
 0x54e   :  { %v1720_v6 = vpack.c.bf16 %v1718_v32, %v1718_v32  ;;  %7078 = vst [vmem:[#allocation107_spill] sm:$0xff] %v5311_v37  ;;  %v5314_v32 = vld [vmem:[#allocation2 + $0x168] sm:$0xff] }
 0x54f   :  { %7079 = vst [vmem:[#allocation108_spill] sm:$0xff] %v5314_v32 }
 0x550   :  { %1753 = vmatprep.mubr.bf16.mxu0 %v1720_v6  ;;  %1794 = vmatprep.mubr.bf16.mxu1 %v1720_v6 }
 0x551   :  { %1754 = vmatmul.mubr.bf16.vlgmr.msra.gmra.mrb[56].mxu0 %v5256_v35  ;;  %1795 = vmatmul.mubr.bf16.vlgmr.msra.gmra.mrb[56].mxu1 %v5256_v35 }
 0x552   :  { %1804 = vmatpush1.bf16.msra.mxu0 %v5260_v51  ;;  %1845 = vmatpush1.bf16.msra.mxu1 %v5263_v26 }
 0x553   :  { %1835 = vmatprep.mubr.bf16.mxu0 %v1720_v6  ;;  %1876 = vmatprep.mubr.bf16.mxu1 %v1720_v6  ;;  %v5317_v6 = vld [vmem:[#allocation2 + $0x178] sm:$0xff] }
 0x554   :  { %1805 = vmatprep.subr.bf16.mxu0 %v5266_v34  ;;  %1846 = vmatprep.subr.bf16.mxu1 %v5269_v21  ;;  %7080 = vst [vmem:[#allocation109_spill] sm:$0xff] %v5317_v6 }
 0x556   :  { %1806 = vmatpush1.bf16.msra.mxu0 %v5272_v25  ;;  %1847 = vmatpush1.bf16.msra.mxu1 %v5275_v63 }
 0x557   :  { %1807 = vmatprep.subr.bf16.mxu0 %v5278_v46  ;;  %1848 = vmatprep.subr.bf16.mxu1 %v5281_v30 }
 0x55a   :  { %1808 = vmatpush1.bf16.msra.mxu0 %v5284_v2  ;;  %1849 = vmatpush1.bf16.msra.mxu1 %v5287_v29 }
 0x55b   :  { %1809 = vmatprep.subr.bf16.mxu0 %v5290_v31  ;;  %1850 = vmatprep.subr.bf16.mxu1 %v5293_v38 }
 0x55e   :  { %1810 = vmatpush1.bf16.msra.mxu0 %v5296_v44  ;;  %1851 = vmatpush1.bf16.msra.mxu1 %v5299_v55 }
 0x55f   :  { %1811 = vmatprep.subr.bf16.mxu0 %v5302_v7  ;;  %1852 = vmatprep.subr.bf16.mxu1 %v5305_v43  ;;  %v5320_v7 = vld [vmem:[#allocation2 + $0x160] sm:$0xff]  ;;  %v5323_v43 = vld [vmem:[#allocation2 + $0x170] sm:$0xff] }
 0x560   :  { %7081 = vst [vmem:[#allocation110_spill] sm:$0xff] %v5320_v7  ;;  %7082 = vst [vmem:[#allocation111_spill] sm:$0xff] %v5323_v43 }
 0x562   :  { %1812 = vmatpush1.bf16.msra.mxu0 %v5308_v12  ;;  %1853 = vmatpush1.bf16.msra.mxu1 %v5311_v37  ;;  %v5326_v12 = vld [vmem:[#allocation2 + $0x1a8] sm:$0xff]  ;;  %v5329_v37 = vld [vmem:[#allocation2 + $0x1b8] sm:$0xff] }
 0x563   :  { %1813 = vmatprep.subr.bf16.mxu0 %v5314_v32  ;;  %1854 = vmatprep.subr.bf16.mxu1 %v5317_v6  ;;  %7083 = vst [vmem:[#allocation112_spill] sm:$0xff] %v5326_v12  ;;  %7084 = vst [vmem:[#allocation113_spill] sm:$0xff] %v5329_v37  ;;  %v5332_v32 = vld [vmem:[#allocation2 + $0x1a0] sm:$0xff]  ;;  %v5335_v6 = vld [vmem:[#allocation2 + $0x1b0] sm:$0xff] }
 0x564   :  { %7085 = vst [vmem:[#allocation114_spill] sm:$0xff] %v5332_v32  ;;  %7086 = vst [vmem:[#allocation115_spill] sm:$0xff] %v5335_v6 }
 0x566   :  { %1814 = vmatpush1.bf16.msra.mxu0 %v5320_v7  ;;  %1855 = vmatpush1.bf16.msra.mxu1 %v5323_v43  ;;  %v5338_v7 = vld [vmem:[#allocation2 + $0x1e8] sm:$0xff]  ;;  %v5341_v43 = vld [vmem:[#allocation2 + $0x1f8] sm:$0xff] }
 0x567   :  { %1815 = vmatprep.subr.bf16.mxu0 %v5326_v12  ;;  %1856 = vmatprep.subr.bf16.mxu1 %v5329_v37  ;;  %7087 = vst [vmem:[#allocation25_spill] sm:$0xff] %v5338_v7  ;;  %7088 = vst [vmem:[#allocation26_spill] sm:$0xff] %v5341_v43  ;;  %v5344_v12 = vld [vmem:[#allocation2 + $0x1e0] sm:$0xff]  ;;  %v5347_v37 = vld [vmem:[#allocation2 + $0x1f0] sm:$0xff] }
 0x568   :  { %7089 = vst [vmem:[#allocation27_spill] sm:$0xff] %v5344_v12  ;;  %7090 = vst [vmem:[#allocation28_spill] sm:$0xff] %v5347_v37 }
 0x56a   :  { %1816 = vmatpush1.bf16.msra.mxu0 %v5332_v32  ;;  %1857 = vmatpush1.bf16.msra.mxu1 %v5335_v6  ;;  %v5350_v32 = vld [vmem:[#allocation2 + $0x228] sm:$0xff]  ;;  %v5353_v6 = vld [vmem:[#allocation2 + $0x238] sm:$0xff] }
 0x56b   :  { %1817 = vmatprep.subr.bf16.mxu0 %v5338_v7  ;;  %1858 = vmatprep.subr.bf16.mxu1 %v5341_v43  ;;  %7091 = vst [vmem:[#allocation57_spill] sm:$0xff] %v5350_v32  ;;  %7092 = vst [vmem:[#allocation58_spill] sm:$0xff] %v5353_v6  ;;  %v5356_v7 = vld [vmem:[#allocation2 + $0x220] sm:$0xff]  ;;  %v5359_v43 = vld [vmem:[#allocation2 + $0x230] sm:$0xff] }
 0x56c   :  { %7093 = vst [vmem:[#allocation59_spill] sm:$0xff] %v5356_v7  ;;  %7094 = vst [vmem:[#allocation60_spill] sm:$0xff] %v5359_v43 }
 0x56e   :  { %1818 = vmatpush1.bf16.msra.mxu0 %v5344_v12  ;;  %1859 = vmatpush1.bf16.msra.mxu1 %v5347_v37  ;;  %v5362_v12 = vld [vmem:[#allocation2 + $0x268] sm:$0xff]  ;;  %v5365_v37 = vld [vmem:[#allocation2 + $0x278] sm:$0xff] }
 0x56f   :  { %1819 = vmatprep.subr.bf16.mxu0 %v5350_v32  ;;  %1860 = vmatprep.subr.bf16.mxu1 %v5353_v6  ;;  %7095 = vst [vmem:[#allocation123_spill] sm:$0xff] %v5362_v12  ;;  %7096 = vst [vmem:[#allocation124_spill] sm:$0xff] %v5365_v37  ;;  %v5368_v32 = vld [vmem:[#allocation2 + $0x260] sm:$0xff]  ;;  %v5371_v6 = vld [vmem:[#allocation2 + $0x270] sm:$0xff] }
 0x570   :  { %7097 = vst [vmem:[#allocation125_spill] sm:$0xff] %v5368_v32  ;;  %7098 = vst [vmem:[#allocation126_spill] sm:$0xff] %v5371_v6 }
 0x572   :  { %1820 = vmatpush1.bf16.msra.mxu0 %v5356_v7  ;;  %1861 = vmatpush1.bf16.msra.mxu1 %v5359_v43  ;;  %v5374_v7 = vld [vmem:[#allocation2 + $0x2a8] sm:$0xff]  ;;  %v5377_v43 = vld [vmem:[#allocation2 + $0x2b8] sm:$0xff] }
 0x573   :  { %1821 = vmatprep.subr.bf16.mxu0 %v5362_v12  ;;  %1862 = vmatprep.subr.bf16.mxu1 %v5365_v37  ;;  %7099 = vst [vmem:[#allocation127_spill] sm:$0xff] %v5374_v7  ;;  %7100 = vst [vmem:[#allocation128_spill] sm:$0xff] %v5377_v43  ;;  %v5380_v12 = vld [vmem:[#allocation2 + $0x2a0] sm:$0xff]  ;;  %v5383_v37 = vld [vmem:[#allocation2 + $0x2b0] sm:$0xff] }
 0x574   :  { %7101 = vst [vmem:[#allocation129_spill] sm:$0xff] %v5380_v12  ;;  %7102 = vst [vmem:[#allocation130_spill] sm:$0xff] %v5383_v37 }
 0x576   :  { %1822 = vmatpush1.bf16.msra.mxu0 %v5368_v32  ;;  %1863 = vmatpush1.bf16.msra.mxu1 %v5371_v6  ;;  %v5386_v32 = vld [vmem:[#allocation2 + $0x2e8] sm:$0xff]  ;;  %v5389_v6 = vld [vmem:[#allocation2 + $0x2f8] sm:$0xff] }
 0x577   :  { %1823 = vmatprep.subr.bf16.mxu0 %v5374_v7  ;;  %1864 = vmatprep.subr.bf16.mxu1 %v5377_v43  ;;  %7103 = vst [vmem:[#allocation131_spill] sm:$0xff] %v5386_v32  ;;  %7104 = vst [vmem:[#allocation132_spill] sm:$0xff] %v5389_v6  ;;  %v5392_v7 = vld [vmem:[#allocation2 + $0x2e0] sm:$0xff]  ;;  %v5395_v43 = vld [vmem:[#allocation2 + $0x2f0] sm:$0xff] }
 0x578   :  { %7105 = vst [vmem:[#allocation133_spill] sm:$0xff] %v5392_v7  ;;  %7106 = vst [vmem:[#allocation134_spill] sm:$0xff] %v5395_v43 }
 0x57a   :  { %1824 = vmatpush1.bf16.msra.mxu0 %v5380_v12  ;;  %1865 = vmatpush1.bf16.msra.mxu1 %v5383_v37  ;;  %v5398_v12 = vld [vmem:[#allocation2 + $0x328] sm:$0xff]  ;;  %v5401_v37 = vld [vmem:[#allocation2 + $0x338] sm:$0xff] }
 0x57b   :  { %1825 = vmatprep.subr.bf16.mxu0 %v5386_v32  ;;  %1866 = vmatprep.subr.bf16.mxu1 %v5389_v6  ;;  %7107 = vst [vmem:[#allocation135_spill] sm:$0xff] %v5398_v12  ;;  %7108 = vst [vmem:[#allocation136_spill] sm:$0xff] %v5401_v37  ;;  %v5404_v32 = vld [vmem:[#allocation2 + $0x320] sm:$0xff]  ;;  %v5407_v6 = vld [vmem:[#allocation2 + $0x330] sm:$0xff] }
 0x57c   :  { %7109 = vst [vmem:[#allocation137_spill] sm:$0xff] %v5404_v32  ;;  %7110 = vst [vmem:[#allocation138_spill] sm:$0xff] %v5407_v6 }
 0x57e   :  { %1826 = vmatpush1.bf16.msra.mxu0 %v5392_v7  ;;  %1867 = vmatpush1.bf16.msra.mxu1 %v5395_v43  ;;  %v5410_v7 = vld [vmem:[#allocation2 + $0x368] sm:$0xff]  ;;  %v5413_v43 = vld [vmem:[#allocation2 + $0x378] sm:$0xff] }
 0x57f   :  { %1827 = vmatprep.subr.bf16.mxu0 %v5398_v12  ;;  %1868 = vmatprep.subr.bf16.mxu1 %v5401_v37  ;;  %7111 = vst [vmem:[#allocation139_spill] sm:$0xff] %v5410_v7  ;;  %7112 = vst [vmem:[#allocation140_spill] sm:$0xff] %v5413_v43  ;;  %v5416_v12 = vld [vmem:[#allocation2 + $0x360] sm:$0xff]  ;;  %v5419_v37 = vld [vmem:[#allocation2 + $0x370] sm:$0xff] }
 0x580   :  { %7113 = vst [vmem:[#allocation141_spill] sm:$0xff] %v5416_v12  ;;  %7114 = vst [vmem:[#allocation142_spill] sm:$0xff] %v5419_v37 }
 0x582   :  { %1828 = vmatpush1.bf16.msra.mxu0 %v5404_v32  ;;  %1869 = vmatpush1.bf16.msra.mxu1 %v5407_v6  ;;  %v5422_v32 = vld [vmem:[#allocation2 + $0x3a8] sm:$0xff]  ;;  %v5425_v6 = vld [vmem:[#allocation2 + $0x3b8] sm:$0xff] }
 0x583   :  { %1829 = vmatprep.subr.bf16.mxu0 %v5410_v7  ;;  %1870 = vmatprep.subr.bf16.mxu1 %v5413_v43  ;;  %7115 = vst [vmem:[#allocation143_spill] sm:$0xff] %v5422_v32  ;;  %7116 = vst [vmem:[#allocation144_spill] sm:$0xff] %v5425_v6  ;;  %v5428_v7 = vld [vmem:[#allocation2 + $0x3a0] sm:$0xff]  ;;  %v5431_v43 = vld [vmem:[#allocation2 + $0x3b0] sm:$0xff] }
 0x586   :  { %1830 = vmatpush1.bf16.msra.mxu0 %v5416_v12  ;;  %1871 = vmatpush1.bf16.msra.mxu1 %v5419_v37  ;;  %v5434_v12 = vld [vmem:[#allocation2 + $0x3e8] sm:$0xff]  ;;  %v5437_v37 = vld [vmem:[#allocation2 + $0x3f8] sm:$0xff] }
 0x587   :  { %1831 = vmatprep.subr.bf16.mxu0 %v5422_v32  ;;  %1872 = vmatprep.subr.bf16.mxu1 %v5425_v6  ;;  %v5440_v32 = vld [vmem:[#allocation2 + $0x3e0] sm:$0xff]  ;;  %v5443_v6 = vld [vmem:[#allocation2 + $0x3f0] sm:$0xff] }
 0x58a   :  { %1832 = vmatpush1.bf16.msra.mxu0 %v5428_v7  ;;  %1873 = vmatpush1.bf16.msra.mxu1 %v5431_v43 }
 0x58b   :  { %1833 = vmatprep.subr.bf16.mxu0 %v5434_v12  ;;  %1874 = vmatprep.subr.bf16.mxu1 %v5437_v37 }
 0x58e   :  { %1834 = vmatpush1.bf16.msra.mxu0 %v5440_v32  ;;  %1875 = vmatpush1.bf16.msra.mxu1 %v5443_v6 }
 0x58f   :  { %1943 = vmatprep.subr.bf16.mxu0 %v5040_v41  ;;  %1984 = vmatprep.subr.bf16.mxu1 %v5043_v53 }
 0x591   :  { %1836 = vmatmul.mubr.bf16.vlgmr.msra.gmra.mrb[60].mxu0 %v5256_v35  ;;  %1877 = vmatmul.mubr.bf16.vlgmr.msra.gmra.mrb[60].mxu1 %v5256_v35  ;;  %v7117_v35 = vld [vmem:[#allocation164_spill] sm:$0xff] }
 0x592   :  { %1944 = vmatpush1.bf16.msra.mxu0 %v5048_v60  ;;  %1985 = vmatpush1.bf16.msra.mxu1 %v5051_v57 }
 0x593   :  { %1945 = vmatprep.subr.bf16.mxu0 %v5054_v56  ;;  %1986 = vmatprep.subr.bf16.mxu1 %v5057_v18 }
 0x596   :  { %1946 = vmatpush1.bf16.msra.mxu0 %v5060_v24  ;;  %1987 = vmatpush1.bf16.msra.mxu1 %v5063_v27 }
 0x597   :  { %1947 = vmatprep.subr.bf16.mxu0 %v5066_v33  ;;  %1988 = vmatprep.subr.bf16.mxu1 %v5069_v20 }
 0x59a   :  { %1948 = vmatpush1.bf16.msra.mxu0 %v5072_v16  ;;  %1989 = vmatpush1.bf16.msra.mxu1 %v5075_v62 }
 0x59b   :  { %1949 = vmatprep.subr.bf16.mxu0 %v5078_v42  ;;  %1990 = vmatprep.subr.bf16.mxu1 %v5081_v5 }
 0x59e   :  { %1950 = vmatpush1.bf16.msra.mxu0 %v5084_v23  ;;  %1991 = vmatpush1.bf16.msra.mxu1 %v5087_v10 }
 0x59f   :  { %1951 = vmatprep.subr.bf16.mxu0 %v5090_v54  ;;  %1992 = vmatprep.subr.bf16.mxu1 %v5093_v11 }
 0x5a2   :  { %1952 = vmatpush1.bf16.msra.mxu0 %v5096_v61  ;;  %1993 = vmatpush1.bf16.msra.mxu1 %v5099_v17 }
 0x5a3   :  { %1953 = vmatprep.subr.bf16.mxu0 %v5102_v45  ;;  %1994 = vmatprep.subr.bf16.mxu1 %v5105_v22 }
 0x5a6   :  { %1954 = vmatpush1.bf16.msra.mxu0 %v5108_v48  ;;  %1995 = vmatpush1.bf16.msra.mxu1 %v5111_v36 }
 0x5a7   :  { %1955 = vmatprep.subr.bf16.mxu0 %v5114_v28  ;;  %1996 = vmatprep.subr.bf16.mxu1 %v5117_v39  ;;  %v7144_v39 = vld [vmem:[#allocation35_spill] sm:$0xff]  ;;  %v7145_v28 = vld [vmem:[#allocation36_spill] sm:$0xff] }
 0x5aa   :  { %1956 = vmatpush1.bf16.msra.mxu0 %v5120_v14  ;;  %1997 = vmatpush1.bf16.msra.mxu1 %v5123_v49  ;;  %v7142_v49 = vld [vmem:[#allocation33_spill] sm:$0xff]  ;;  %v7143_v14 = vld [vmem:[#allocation34_spill] sm:$0xff] }
 0x5ab   :  { %1957 = vmatprep.subr.bf16.mxu0 %v5126_v40  ;;  %1998 = vmatprep.subr.bf16.mxu1 %v5129_v8 }
 0x5ae   :  { %1958 = vmatpush1.bf16.msra.mxu0 %v5132_v13  ;;  %1999 = vmatpush1.bf16.msra.mxu1 %v5135_v50  ;;  %v7118_v50 = vld [vmem:[#allocation165_spill] sm:$0xff] }
 0x5af   :  { %1959 = vmatprep.subr.bf16.mxu0 %v5138_v9  ;;  %2000 = vmatprep.subr.bf16.mxu1 %v5141_v3  ;;  %v7119_v9 = vld [vmem:[#allocation166_spill] sm:$0xff]  ;;  %v7120_v3 = vld [vmem:[#allocation167_spill] sm:$0xff] }
 0x5b2   :  { %1960 = vmatpush1.bf16.msra.mxu0 %v5144_v1  ;;  %2001 = vmatpush1.bf16.msra.mxu1 %v5147_v0  ;;  %v7121_v1 = vld [vmem:[#allocation168_spill] sm:$0xff]  ;;  %v7122_v0 = vld [vmem:[#allocation169_spill] sm:$0xff] }
 0x5b3   :  { %1961 = vmatprep.subr.bf16.mxu0 %v5150_v19  ;;  %2002 = vmatprep.subr.bf16.mxu1 %v5153_v15  ;;  %v7123_v19 = vld [vmem:[#allocation85_spill] sm:$0xff]  ;;  %v7124_v15 = vld [vmem:[#allocation86_spill] sm:$0xff] }
 0x5b6   :  { %1962 = vmatpush1.bf16.msra.mxu0 %v5156_v52  ;;  %2003 = vmatpush1.bf16.msra.mxu1 %v5159_v47  ;;  %v7125_v52 = vld [vmem:[#allocation87_spill] sm:$0xff]  ;;  %v7126_v47 = vld [vmem:[#allocation88_spill] sm:$0xff] }
 0x5b7   :  { %1963 = vmatprep.subr.bf16.mxu0 %v5162_v58  ;;  %2004 = vmatprep.subr.bf16.mxu1 %v7117_v35  ;;  %v7127_v58 = vld [vmem:[#allocation89_spill] sm:$0xff]  ;;  %v7128_v35 = vld [vmem:[#allocation90_spill] sm:$0xff] }
 0x5ba   :  { %1964 = vmatpush1.bf16.msra.mxu0 %v7118_v50  ;;  %2005 = vmatpush1.bf16.msra.mxu1 %v7119_v9  ;;  %v7129_v50 = vld [vmem:[#allocation91_spill] sm:$0xff]  ;;  %v7130_v9 = vld [vmem:[#allocation92_spill] sm:$0xff] }
 0x5bb   :  { %1965 = vmatprep.subr.bf16.mxu0 %v7120_v3  ;;  %2006 = vmatprep.subr.bf16.mxu1 %v7121_v1  ;;  %v7131_v3 = vld [vmem:[#allocation93_spill] sm:$0xff]  ;;  %v7132_v1 = vld [vmem:[#allocation94_spill] sm:$0xff] }
 0x5be   :  { %1966 = vmatpush1.bf16.msra.mxu0 %v7122_v0  ;;  %2007 = vmatpush1.bf16.msra.mxu1 %v7123_v19  ;;  %v7133_v0 = vld [vmem:[#allocation95_spill] sm:$0xff]  ;;  %v7134_v19 = vld [vmem:[#allocation96_spill] sm:$0xff] }
 0x5bf   :  { %1967 = vmatprep.subr.bf16.mxu0 %v7124_v15  ;;  %2008 = vmatprep.subr.bf16.mxu1 %v7125_v52  ;;  %v7135_v15 = vld [vmem:[#allocation97_spill] sm:$0xff]  ;;  %v7136_v52 = vld [vmem:[#allocation98_spill] sm:$0xff] }
 0x5c2   :  { %1968 = vmatpush1.bf16.msra.mxu0 %v7126_v47  ;;  %2009 = vmatpush1.bf16.msra.mxu1 %v7127_v58  ;;  %v7137_v47 = vld [vmem:[#allocation99_spill] sm:$0xff]  ;;  %v7138_v58 = vld [vmem:[#allocation100_spill] sm:$0xff] }
 0x5c3   :  { %1969 = vmatprep.subr.bf16.mxu0 %v7128_v35  ;;  %2010 = vmatprep.subr.bf16.mxu1 %v7129_v50  ;;  %v7139_v35 = vld [vmem:[#allocation101_spill] sm:$0xff]  ;;  %v7140_v50 = vld [vmem:[#allocation102_spill] sm:$0xff] }
 0x5c6   :  { %1970 = vmatpush1.bf16.msra.mxu0 %v7130_v9  ;;  %2011 = vmatpush1.bf16.msra.mxu1 %v7131_v3  ;;  %v7141_v9 = vld [vmem:[#allocation103_spill] sm:$0xff] }
 0x5c7   :  { %1971 = vmatprep.subr.bf16.mxu0 %v7132_v1  ;;  %2012 = vmatprep.subr.bf16.mxu1 %v7133_v0 }
 0x5ca   :  { %1972 = vmatpush1.bf16.msra.mxu0 %v7134_v19  ;;  %2013 = vmatpush1.bf16.msra.mxu1 %v7135_v15 }
 0x5cb   :  { %1973 = vmatprep.subr.bf16.mxu0 %v7136_v52  ;;  %2014 = vmatprep.subr.bf16.mxu1 %v7137_v47 }
 0x5ce   :  { %1974 = vmatpush1.bf16.msra.mxu0 %v7138_v58  ;;  %2015 = vmatpush1.bf16.msra.mxu1 %v7139_v35 }
 0x5cf   :  { %2025 = vmatprep.subr.bf16.mxu0 %v7140_v50  ;;  %2066 = vmatprep.subr.bf16.mxu1 %v7141_v9 }
 0x624   :  { %v1755_v3 = vpop.f32.mrb[56].mxu0  ;;  %v1796_v1 = vpop.f32.mrb[56].mxu1 }
 0x625   :  { %v1757_v13 = vpop.f32.mrb[57].mxu0  ;;  %v1798_v0 = vpop.f32.mrb[57].mxu1  ;;  %v1885_v52 = vadd.f32 %v1755_v3, %v7142_v49  ;;  %v1887_v47 = vadd.f32 %v1796_v1, %v7143_v14 }
 0x626   :  { %v1759_v8 = vpop.f32.mrb[58].mxu0  ;;  %v1800_v19 = vpop.f32.mrb[58].mxu1  ;;  %v1886_v58 = vadd.f32 %v1757_v13, %v7144_v39  ;;  %v1888_v35 = vadd.f32 %v1798_v0, %v7145_v28  ;;  %v7146_v13 = vld [vmem:[#allocation65_spill] sm:$0xff]  ;;  %v7147_v0 = vld [vmem:[#allocation66_spill] sm:$0xff] }
 0x627   :  { %v1760_v40 = vpop.f32.mrb[59].mxu0  ;;  %v1801_v15 = vpop.f32.mrb[59].mxu1  ;;  %v3269_v36 = vmul.f32 -1.442695, %v1885_v52  ;;  %v3271_v50 = vmul.f32 -1.442695, %v1887_v47 }
 0x628   :  { %v3270_v48 = vmul.f32 -1.442695, %v1886_v58  ;;  %v3272_v9 = vmul.f32 -1.442695, %v1888_v35  ;;  %v7149_v47 = vld [vmem:[#allocation68_spill] sm:$0xff] }
 0x629   :  { %3461 = vpow2.f32 %v3269_v36 }
 0x62a   :  { %3463 = vpow2.f32 %v3271_v50 }
 0x62b   :  { %3465 = vpow2.f32 %v3270_v48 }
 0x62c   :  { %3467 = vpow2.f32 %v3272_v9  ;;  %v7148_v9 = vld [vmem:[#allocation67_spill] sm:$0xff] }
 0x633   :  { %v3462_v8 = vpop.eup %3461 }
 0x634   :  { %v3464_v19 = vpop.eup %3463  ;;  %v1911_v22 = vadd.f32 1.0, %v3462_v8 }
 0x635   :  { %v3466_v40 = vpop.eup %3465  ;;  %v1913_v49 = vadd.f32 1.0, %v3464_v19 }
 0x636   :  { %v3468_v15 = vpop.eup %3467  ;;  %v1912_v3 = vadd.f32 1.0, %v3466_v40  ;;  %3469 = vrcp.f32 %v1911_v22 }
 0x637   :  { %v1914_v14 = vadd.f32 1.0, %v3468_v15  ;;  %3471 = vrcp.f32 %v1913_v49 }
 0x638   :  { %3473 = vrcp.f32 %v1912_v3 }
 0x639   :  { %3475 = vrcp.f32 %v1914_v14 }
 0x640   :  { %v3470_v49 = vpop.eup %3469 }
 0x641   :  { %v3472_v3 = vpop.eup %3471 }
 0x664   :  { %v1837_v39 = vpop.f32.mrb[60].mxu0  ;;  %v1878_v28 = vpop.f32.mrb[60].mxu1 }
 0x665   :  { %v1889_v1 = vadd.f32 %v1837_v39, %v7146_v13  ;;  %v1891_v36 = vadd.f32 %v1878_v28, %v7147_v0  ;;  %v1839_v50 = vpop.f32.mrb[61].mxu0  ;;  %v1880_v48 = vpop.f32.mrb[61].mxu1  ;;  %v1931_v0 = vmul.f32 %v3472_v3, %v5250_v4  ;;  %v7150_v3 = vld [vmem:[#allocation104_spill] sm:$0xff] }
 0x666   :  { %v1890_v52 = vadd.f32 %v1839_v50, %v7148_v9  ;;  %v1892_v58 = vadd.f32 %v1880_v48, %v7149_v47  ;;  %v1841_v35 = vpop.f32.mrb[62].mxu0  ;;  %v1882_v8 = vpop.f32.mrb[62].mxu1 }
 0x667   :  { %v3273_v19 = vmul.f32 -1.442695, %v1889_v1  ;;  %3477 = vtanh.f32 %v1891_v36  ;;  %v1842_v22 = vpop.f32.mrb[63].mxu0  ;;  %v1883_v40 = vpop.f32.mrb[63].mxu1 }
 0x668   :  { %v3274_v15 = vmul.f32 -1.442695, %v1890_v52  ;;  %3479 = vtanh.f32 %v1892_v58  ;;  %v3474_v39 = vpop.eup %3473 }
 0x669   :  { %3481 = vpow2.f32 %v3273_v19  ;;  %v3476_v28 = vpop.eup %3475 }
 0x66a   :  { %3483 = vpow2.f32 %v3274_v15  ;;  %v1932_v9 = vmul.f32 %v3476_v28, %v5252_v59  ;;  %v7152_v28 = vld [vmem:[#allocation106_spill] sm:$0xff] }
 0x671   :  { %v3478_v13 = vpop.eup %3477 }
 0x672   :  { %v3480_v14 = vpop.eup %3479  ;;  %v1933_v50 = vmul.f32 %v3478_v13, %v3470_v49  ;;  %v7153_v13 = vld [vmem:[#allocation107_spill] sm:$0xff] }
 0x673   :  { %v3482_v48 = vpop.eup %3481  ;;  %v1934_v1 = vmul.f32 %v3480_v14, %v3474_v39  ;;  %v7151_v39 = vld [vmem:[#allocation105_spill] sm:$0xff]  ;;  %v7154_v14 = vld [vmem:[#allocation108_spill] sm:$0xff] }
 0x674   :  { %v3484_v36 = vpop.eup %3483  ;;  %v1915_v47 = vadd.f32 1.0, %v3482_v48  ;;  %v5524_v35 = vadd.f32 %v1933_v50, %v1931_v0  ;;  %v7155_v0 = vld [vmem:[#allocation109_spill] sm:$0xff]  ;;  %v7156_v50 = vld [vmem:[#allocation110_spill] sm:$0xff]  ;;  %v7157_v48 = vld [vmem:[#allocation111_spill] sm:$0xff] }
 0x675   :  { %v1916_v52 = vadd.f32 1.0, %v3484_v36  ;;  %v5526_v58 = vadd.f32 %v1934_v1, %v1932_v9  ;;  %v7158_v9 = vld [vmem:[#allocation112_spill] sm:$0xff]  ;;  %v7159_v1 = vld [vmem:[#allocation113_spill] sm:$0xff]  ;;  %v7160_v36 = vld [vmem:[#allocation114_spill] sm:$0xff] }
 0x676   :  { %3485 = vrcp.f32 %v1915_v47  ;;  %v7161_v47 = vld [vmem:[#allocation115_spill] sm:$0xff] }
 0x677   :  { %3487 = vtanh.f32 %v5524_v35 }
 0x678   :  { %3489 = vrcp.f32 %v1916_v52  ;;  %v7162_v52 = vld [vmem:[#allocation25_spill] sm:$0xff] }
 0x679   :  { %3491 = vtanh.f32 %v5526_v58 }
 0x680   :  { %v3486_v8 = vpop.eup %3485 }
 0x681   :  { %v3488_v4 = vpop.eup %3487 }
 0x682   :  { %v3490_v19 = vpop.eup %3489  ;;  %v1939_v40 = vmul.f32 %v3488_v4, %v3486_v8  ;;  %v7163_v8 = vld [vmem:[#allocation26_spill] sm:$0xff]  ;;  %v7164_v4 = vld [vmem:[#allocation27_spill] sm:$0xff] }
 0x683   :  { %v3492_v22 = vpop.eup %3491 }
 0x684   :  { %v1940_v59 = vmul.f32 %v3492_v22, %v3490_v19  ;;  %v5530_v49 = vpack.c.bf16 %v1939_v40, %v1939_v40  ;;  %v7165_v19 = vld [vmem:[#allocation28_spill] sm:$0xff]  ;;  %v7166_v22 = vld [vmem:[#allocation57_spill] sm:$0xff]  ;;  %v7167_v40 = vld [vmem:[#allocation58_spill] sm:$0xff] }
 0x686   :  { %v1942_v15 = vpack.c.bf16 %v1940_v59, %v1940_v59  ;;  %v7168_v59 = vld [vmem:[#allocation59_spill] sm:$0xff] }
 0x688   :  { %1975 = vmatprep.mubr.bf16.mxu0 %v1942_v15  ;;  %2016 = vmatprep.mubr.bf16.mxu1 %v1942_v15 }
 0x689   :  { %1976 = vmatmul.mubr.bf16.vlgmr.msra.gmra.mrb[64].mxu0 %v5530_v49  ;;  %2017 = vmatmul.mubr.bf16.vlgmr.msra.gmra.mrb[64].mxu1 %v5530_v49 }
 0x68a   :  { %2026 = vmatpush1.bf16.msra.mxu0 %v5260_v51  ;;  %2067 = vmatpush1.bf16.msra.mxu1 %v5263_v26 }
 0x68b   :  { %2057 = vmatprep.mubr.bf16.mxu0 %v1942_v15  ;;  %2098 = vmatprep.mubr.bf16.mxu1 %v1942_v15  ;;  %v7169_v15 = vld [vmem:[#allocation60_spill] sm:$0xff] }
 0x68c   :  { %2027 = vmatprep.subr.bf16.mxu0 %v5266_v34  ;;  %2068 = vmatprep.subr.bf16.mxu1 %v5269_v21 }
 0x68e   :  { %2028 = vmatpush1.bf16.msra.mxu0 %v5272_v25  ;;  %2069 = vmatpush1.bf16.msra.mxu1 %v5275_v63 }
 0x68f   :  { %2029 = vmatprep.subr.bf16.mxu0 %v5278_v46  ;;  %2070 = vmatprep.subr.bf16.mxu1 %v5281_v30 }
 0x692   :  { %2030 = vmatpush1.bf16.msra.mxu0 %v5284_v2  ;;  %2071 = vmatpush1.bf16.msra.mxu1 %v5287_v29 }
 0x693   :  { %2031 = vmatprep.subr.bf16.mxu0 %v5290_v31  ;;  %2072 = vmatprep.subr.bf16.mxu1 %v5293_v38 }
 0x696   :  { %2032 = vmatpush1.bf16.msra.mxu0 %v5296_v44  ;;  %2073 = vmatpush1.bf16.msra.mxu1 %v5299_v55 }
 0x697   :  { %2033 = vmatprep.subr.bf16.mxu0 %v7150_v3  ;;  %2074 = vmatprep.subr.bf16.mxu1 %v7151_v39 }
 0x69a   :  { %2034 = vmatpush1.bf16.msra.mxu0 %v7152_v28  ;;  %2075 = vmatpush1.bf16.msra.mxu1 %v7153_v13 }
 0x69b   :  { %2035 = vmatprep.subr.bf16.mxu0 %v7154_v14  ;;  %2076 = vmatprep.subr.bf16.mxu1 %v7155_v0 }
 0x69e   :  { %2036 = vmatpush1.bf16.msra.mxu0 %v7156_v50  ;;  %2077 = vmatpush1.bf16.msra.mxu1 %v7157_v48 }
 0x69f   :  { %2037 = vmatprep.subr.bf16.mxu0 %v7158_v9  ;;  %2078 = vmatprep.subr.bf16.mxu1 %v7159_v1  ;;  %v7170_v1 = vld [vmem:[#allocation123_spill] sm:$0xff] }
 0x6a2   :  { %2038 = vmatpush1.bf16.msra.mxu0 %v7160_v36  ;;  %2079 = vmatpush1.bf16.msra.mxu1 %v7161_v47  ;;  %v7171_v36 = vld [vmem:[#allocation124_spill] sm:$0xff]  ;;  %v7172_v47 = vld [vmem:[#allocation125_spill] sm:$0xff] }
 0x6a3   :  { %2039 = vmatprep.subr.bf16.mxu0 %v7162_v52  ;;  %2080 = vmatprep.subr.bf16.mxu1 %v7163_v8  ;;  %v7173_v52 = vld [vmem:[#allocation126_spill] sm:$0xff]  ;;  %v7174_v8 = vld [vmem:[#allocation127_spill] sm:$0xff] }
 0x6a6   :  { %2040 = vmatpush1.bf16.msra.mxu0 %v7164_v4  ;;  %2081 = vmatpush1.bf16.msra.mxu1 %v7165_v19  ;;  %v7175_v4 = vld [vmem:[#allocation128_spill] sm:$0xff]  ;;  %v7176_v19 = vld [vmem:[#allocation129_spill] sm:$0xff] }
 0x6a7   :  { %2041 = vmatprep.subr.bf16.mxu0 %v7166_v22  ;;  %2082 = vmatprep.subr.bf16.mxu1 %v7167_v40  ;;  %v7177_v22 = vld [vmem:[#allocation130_spill] sm:$0xff]  ;;  %v7178_v40 = vld [vmem:[#allocation131_spill] sm:$0xff] }
 0x6aa   :  { %2042 = vmatpush1.bf16.msra.mxu0 %v7168_v59  ;;  %2083 = vmatpush1.bf16.msra.mxu1 %v7169_v15  ;;  %v7179_v59 = vld [vmem:[#allocation132_spill] sm:$0xff]  ;;  %v7180_v15 = vld [vmem:[#allocation133_spill] sm:$0xff] }
 0x6ab   :  { %2043 = vmatprep.subr.bf16.mxu0 %v7170_v1  ;;  %2084 = vmatprep.subr.bf16.mxu1 %v7171_v36  ;;  %v7181_v1 = vld [vmem:[#allocation134_spill] sm:$0xff]  ;;  %v7182_v36 = vld [vmem:[#allocation135_spill] sm:$0xff] }
 0x6ae   :  { %2044 = vmatpush1.bf16.msra.mxu0 %v7172_v47  ;;  %2085 = vmatpush1.bf16.msra.mxu1 %v7173_v52  ;;  %v7183_v47 = vld [vmem:[#allocation136_spill] sm:$0xff]  ;;  %v7184_v52 = vld [vmem:[#allocation137_spill] sm:$0xff] }
 0x6af   :  { %2045 = vmatprep.subr.bf16.mxu0 %v7174_v8  ;;  %2086 = vmatprep.subr.bf16.mxu1 %v7175_v4  ;;  %v7185_v8 = vld [vmem:[#allocation138_spill] sm:$0xff]  ;;  %v7186_v4 = vld [vmem:[#allocation139_spill] sm:$0xff] }
 0x6b2   :  { %2046 = vmatpush1.bf16.msra.mxu0 %v7176_v19  ;;  %2087 = vmatpush1.bf16.msra.mxu1 %v7177_v22  ;;  %v7187_v19 = vld [vmem:[#allocation140_spill] sm:$0xff]  ;;  %v7188_v22 = vld [vmem:[#allocation141_spill] sm:$0xff] }
 0x6b3   :  { %2047 = vmatprep.subr.bf16.mxu0 %v7178_v40  ;;  %2088 = vmatprep.subr.bf16.mxu1 %v7179_v59  ;;  %v7189_v40 = vld [vmem:[#allocation142_spill] sm:$0xff]  ;;  %v7190_v59 = vld [vmem:[#allocation143_spill] sm:$0xff] }
 0x6b6   :  { %2048 = vmatpush1.bf16.msra.mxu0 %v7180_v15  ;;  %2089 = vmatpush1.bf16.msra.mxu1 %v7181_v1  ;;  %v7191_v15 = vld [vmem:[#allocation144_spill] sm:$0xff] }
 0x6b7   :  { %2049 = vmatprep.subr.bf16.mxu0 %v7182_v36  ;;  %2090 = vmatprep.subr.bf16.mxu1 %v7183_v47 }
 0x6ba   :  { %2050 = vmatpush1.bf16.msra.mxu0 %v7184_v52  ;;  %2091 = vmatpush1.bf16.msra.mxu1 %v7185_v8 }
 0x6bb   :  { %2051 = vmatprep.subr.bf16.mxu0 %v7186_v4  ;;  %2092 = vmatprep.subr.bf16.mxu1 %v7187_v19 }
 0x6be   :  { %2052 = vmatpush1.bf16.msra.mxu0 %v7188_v22  ;;  %2093 = vmatpush1.bf16.msra.mxu1 %v7189_v40 }
 0x6bf   :  { %2053 = vmatprep.subr.bf16.mxu0 %v7190_v59  ;;  %2094 = vmatprep.subr.bf16.mxu1 %v7191_v15 }
 0x6c2   :  { %2054 = vmatpush1.bf16.msra.mxu0 %v5428_v7  ;;  %2095 = vmatpush1.bf16.msra.mxu1 %v5431_v43 }
 0x6c3   :  { %2055 = vmatprep.subr.bf16.mxu0 %v5434_v12  ;;  %2096 = vmatprep.subr.bf16.mxu1 %v5437_v37 }
 0x6c6   :  { %2056 = vmatpush1.bf16.msra.mxu0 %v5440_v32  ;;  %2097 = vmatpush1.bf16.msra.mxu1 %v5443_v6 }
 0x6c7   :  { %2165 = vmatprep.subr.bf16.mxu0 %v5040_v41  ;;  %2206 = vmatprep.subr.bf16.mxu1 %v5043_v53  ;;  %v7192_v41 = vld [vmem:[#allocation21_spill] sm:$0xff]  ;;  %v7193_v53 = vld [vmem:[#allocation22_spill] sm:$0xff] }
 0x6c9   :  { %2058 = vmatmul.mubr.bf16.vlgmr.msra.gmra.mrb[68].mxu0 %v5530_v49  ;;  %2099 = vmatmul.mubr.bf16.vlgmr.msra.gmra.mrb[68].mxu1 %v5530_v49  ;;  %v7213_v49 = vld [vmem:[#allocation165_spill] sm:$0xff] }
 0x6ca   :  { %2166 = vmatpush1.bf16.msra.mxu0 %v5048_v60  ;;  %2207 = vmatpush1.bf16.msra.mxu1 %v5051_v57  ;;  %v7194_v60 = vld [vmem:[#allocation23_spill] sm:$0xff]  ;;  %v7195_v57 = vld [vmem:[#allocation24_spill] sm:$0xff] }
 0x6cb   :  { %2167 = vmatprep.subr.bf16.mxu0 %v5054_v56  ;;  %2208 = vmatprep.subr.bf16.mxu1 %v5057_v18  ;;  %v7196_v56 = vld [vmem:[#allocation53_spill] sm:$0xff]  ;;  %v7197_v18 = vld [vmem:[#allocation54_spill] sm:$0xff] }
 0x6ce   :  { %2168 = vmatpush1.bf16.msra.mxu0 %v5060_v24  ;;  %2209 = vmatpush1.bf16.msra.mxu1 %v5063_v27  ;;  %v7198_v24 = vld [vmem:[#allocation55_spill] sm:$0xff]  ;;  %v7199_v27 = vld [vmem:[#allocation56_spill] sm:$0xff] }
 0x6cf   :  { %2169 = vmatprep.subr.bf16.mxu0 %v5066_v33  ;;  %2210 = vmatprep.subr.bf16.mxu1 %v5069_v20  ;;  %v7200_v33 = vld [vmem:[#allocation116_spill] sm:$0xff]  ;;  %v7201_v20 = vld [vmem:[#allocation117_spill] sm:$0xff] }
 0x6d2   :  { %2170 = vmatpush1.bf16.msra.mxu0 %v5072_v16  ;;  %2211 = vmatpush1.bf16.msra.mxu1 %v5075_v62  ;;  %v7202_v16 = vld [vmem:[#allocation118_spill] sm:$0xff]  ;;  %v7203_v62 = vld [vmem:[#allocation119_spill] sm:$0xff] }
 0x6d3   :  { %2171 = vmatprep.subr.bf16.mxu0 %v5078_v42  ;;  %2212 = vmatprep.subr.bf16.mxu1 %v5081_v5  ;;  %v7204_v42 = vld [vmem:[#allocation120_spill] sm:$0xff]  ;;  %v7205_v5 = vld [vmem:[#allocation121_spill] sm:$0xff] }
 0x6d6   :  { %2172 = vmatpush1.bf16.msra.mxu0 %v5084_v23  ;;  %2213 = vmatpush1.bf16.msra.mxu1 %v5087_v10  ;;  %v7206_v23 = vld [vmem:[#allocation122_spill] sm:$0xff]  ;;  %v7207_v10 = vld [vmem:[#allocation157_spill] sm:$0xff] }
 0x6d7   :  { %2173 = vmatprep.subr.bf16.mxu0 %v5090_v54  ;;  %2214 = vmatprep.subr.bf16.mxu1 %v5093_v11  ;;  %v7208_v54 = vld [vmem:[#allocation160_spill] sm:$0xff]  ;;  %v7209_v11 = vld [vmem:[#allocation161_spill] sm:$0xff] }
 0x6da   :  { %2174 = vmatpush1.bf16.msra.mxu0 %v5096_v61  ;;  %2215 = vmatpush1.bf16.msra.mxu1 %v5099_v17  ;;  %v7210_v61 = vld [vmem:[#allocation162_spill] sm:$0xff]  ;;  %v7211_v17 = vld [vmem:[#allocation163_spill] sm:$0xff] }
 0x6db   :  { %2175 = vmatprep.subr.bf16.mxu0 %v5102_v45  ;;  %2216 = vmatprep.subr.bf16.mxu1 %v7192_v41  ;;  %v7212_v45 = vld [vmem:[#allocation164_spill] sm:$0xff]  ;;  %v7214_v41 = vld [vmem:[#allocation166_spill] sm:$0xff] }
 0x6de   :  { %2176 = vmatpush1.bf16.msra.mxu0 %v7193_v53  ;;  %2217 = vmatpush1.bf16.msra.mxu1 %v7194_v60  ;;  %v7215_v53 = vld [vmem:[#allocation167_spill] sm:$0xff]  ;;  %v7216_v60 = vld [vmem:[#allocation168_spill] sm:$0xff] }
 0x6df   :  { %2177 = vmatprep.subr.bf16.mxu0 %v7195_v57  ;;  %2218 = vmatprep.subr.bf16.mxu1 %v7196_v56  ;;  %v7217_v57 = vld [vmem:[#allocation169_spill] sm:$0xff] }
 0x6e0   :  { %v7218_v56 = vld [vmem:[#allocation85_spill] sm:$0xff] }
 0x6e2   :  { %2178 = vmatpush1.bf16.msra.mxu0 %v7197_v18  ;;  %2219 = vmatpush1.bf16.msra.mxu1 %v7198_v24  ;;  %v7219_v18 = vld [vmem:[#allocation86_spill] sm:$0xff]  ;;  %v7220_v24 = vld [vmem:[#allocation87_spill] sm:$0xff] }
 0x6e3   :  { %2179 = vmatprep.subr.bf16.mxu0 %v7199_v27  ;;  %2220 = vmatprep.subr.bf16.mxu1 %v7200_v33  ;;  %v7221_v27 = vld [vmem:[#allocation88_spill] sm:$0xff]  ;;  %v7222_v33 = vld [vmem:[#allocation89_spill] sm:$0xff] }
 0x6e6   :  { %2180 = vmatpush1.bf16.msra.mxu0 %v7201_v20  ;;  %2221 = vmatpush1.bf16.msra.mxu1 %v7202_v16  ;;  %v7223_v20 = vld [vmem:[#allocation90_spill] sm:$0xff]  ;;  %v7224_v16 = vld [vmem:[#allocation91_spill] sm:$0xff] }
 0x6e7   :  { %2181 = vmatprep.subr.bf16.mxu0 %v7203_v62  ;;  %2222 = vmatprep.subr.bf16.mxu1 %v7204_v42  ;;  %v7225_v62 = vld [vmem:[#allocation92_spill] sm:$0xff]  ;;  %v7226_v42 = vld [vmem:[#allocation93_spill] sm:$0xff] }
 0x6ea   :  { %2182 = vmatpush1.bf16.msra.mxu0 %v7205_v5  ;;  %2223 = vmatpush1.bf16.msra.mxu1 %v7206_v23  ;;  %v7227_v5 = vld [vmem:[#allocation94_spill] sm:$0xff]  ;;  %v7228_v23 = vld [vmem:[#allocation95_spill] sm:$0xff] }
 0x6eb   :  { %2183 = vmatprep.subr.bf16.mxu0 %v7207_v10  ;;  %2224 = vmatprep.subr.bf16.mxu1 %v7208_v54  ;;  %v7229_v10 = vld [vmem:[#allocation96_spill] sm:$0xff]  ;;  %v7230_v54 = vld [vmem:[#allocation97_spill] sm:$0xff] }
 0x6ee   :  { %2184 = vmatpush1.bf16.msra.mxu0 %v7209_v11  ;;  %2225 = vmatpush1.bf16.msra.mxu1 %v7210_v61  ;;  %v7231_v11 = vld [vmem:[#allocation98_spill] sm:$0xff]  ;;  %v7232_v61 = vld [vmem:[#allocation99_spill] sm:$0xff] }
 0x6ef   :  { %2185 = vmatprep.subr.bf16.mxu0 %v7211_v17  ;;  %2226 = vmatprep.subr.bf16.mxu1 %v7212_v45  ;;  %v7233_v17 = vld [vmem:[#allocation100_spill] sm:$0xff]  ;;  %v7234_v45 = vld [vmem:[#allocation101_spill] sm:$0xff] }
 0x6f2   :  { %2186 = vmatpush1.bf16.msra.mxu0 %v7213_v49  ;;  %2227 = vmatpush1.bf16.msra.mxu1 %v7214_v41  ;;  %v7235_v49 = vld [vmem:[#allocation102_spill] sm:$0xff]  ;;  %v7236_v41 = vld [vmem:[#allocation103_spill] sm:$0xff] }
 0x6f3   :  { %2187 = vmatprep.subr.bf16.mxu0 %v7215_v53  ;;  %2228 = vmatprep.subr.bf16.mxu1 %v7216_v60 }
 0x6f6   :  { %2188 = vmatpush1.bf16.msra.mxu0 %v7217_v57  ;;  %2229 = vmatpush1.bf16.msra.mxu1 %v7218_v56 }
 0x6f7   :  { %2189 = vmatprep.subr.bf16.mxu0 %v7219_v18  ;;  %2230 = vmatprep.subr.bf16.mxu1 %v7220_v24 }
 0x6fa   :  { %2190 = vmatpush1.bf16.msra.mxu0 %v7221_v27  ;;  %2231 = vmatpush1.bf16.msra.mxu1 %v7222_v33 }
 0x6fb   :  { %2191 = vmatprep.subr.bf16.mxu0 %v7223_v20  ;;  %2232 = vmatprep.subr.bf16.mxu1 %v7224_v16  ;;  %v7237_v20 = vld [vmem:[#allocation37_spill] sm:$0xff] }
 0x6fe   :  { %2192 = vmatpush1.bf16.msra.mxu0 %v7225_v62  ;;  %2233 = vmatpush1.bf16.msra.mxu1 %v7226_v42  ;;  %v7238_v62 = vld [vmem:[#allocation38_spill] sm:$0xff] }
 0x6ff   :  { %2193 = vmatprep.subr.bf16.mxu0 %v7227_v5  ;;  %2234 = vmatprep.subr.bf16.mxu1 %v7228_v23  ;;  %v7239_v5 = vld [vmem:[#allocation39_spill] sm:$0xff] }
 0x702   :  { %2194 = vmatpush1.bf16.msra.mxu0 %v7229_v10  ;;  %2235 = vmatpush1.bf16.msra.mxu1 %v7230_v54  ;;  %v7240_v10 = vld [vmem:[#allocation40_spill] sm:$0xff] }
 0x703   :  { %2195 = vmatprep.subr.bf16.mxu0 %v7231_v11  ;;  %2236 = vmatprep.subr.bf16.mxu1 %v7232_v61 }
 0x706   :  { %2196 = vmatpush1.bf16.msra.mxu0 %v7233_v17  ;;  %2237 = vmatpush1.bf16.msra.mxu1 %v7234_v45 }
 0x707   :  { %2247 = vmatprep.subr.bf16.mxu0 %v7235_v49  ;;  %2288 = vmatprep.subr.bf16.mxu1 %v7236_v41 }
 0x75c   :  { %v1977_v53 = vpop.f32.mrb[64].mxu0  ;;  %v2018_v60 = vpop.f32.mrb[64].mxu1 }
 0x75d   :  { %v1979_v57 = vpop.f32.mrb[65].mxu0  ;;  %v2020_v56 = vpop.f32.mrb[65].mxu1  ;;  %v2107_v16 = vadd.f32 %v1977_v53, %v7237_v20  ;;  %v2109_v42 = vadd.f32 %v2018_v60, %v7238_v62  ;;  %v7241_v20 = vld [vmem:[#allocation69_spill] sm:$0xff]  ;;  %v7242_v62 = vld [vmem:[#allocation70_spill] sm:$0xff] }
 0x75e   :  { %v1981_v18 = vpop.f32.mrb[66].mxu0  ;;  %v2022_v24 = vpop.f32.mrb[66].mxu1  ;;  %v2108_v23 = vadd.f32 %v1979_v57, %v7239_v5  ;;  %v2110_v54 = vadd.f32 %v2020_v56, %v7240_v10  ;;  %v7243_v10 = vld [vmem:[#allocation71_spill] sm:$0xff] }
 0x75f   :  { %v1982_v27 = vpop.f32.mrb[67].mxu0  ;;  %v2023_v33 = vpop.f32.mrb[67].mxu1  ;;  %v3275_v11 = vmul.f32 -1.442695, %v2107_v16  ;;  %v3277_v61 = vmul.f32 -1.442695, %v2109_v42 }
 0x760   :  { %v3276_v17 = vmul.f32 -1.442695, %v2108_v23  ;;  %v3278_v45 = vmul.f32 -1.442695, %v2110_v54 }
 0x761   :  { %3493 = vpow2.f32 %v3275_v11  ;;  %v7244_v11 = vld [vmem:[#allocation72_spill] sm:$0xff] }
 0x762   :  { %3495 = vpow2.f32 %v3277_v61 }
 0x763   :  { %3497 = vpow2.f32 %v3276_v17 }
 0x764   :  { %3499 = vpow2.f32 %v3278_v45 }
 0x76b   :  { %v3494_v49 = vpop.eup %3493 }
 0x76c   :  { %v3496_v41 = vpop.eup %3495  ;;  %v2133_v27 = vadd.f32 1.0, %v3494_v49 }
 0x76d   :  { %v3498_v18 = vpop.eup %3497  ;;  %v2135_v53 = vadd.f32 1.0, %v3496_v41 }
 0x76e   :  { %v3500_v24 = vpop.eup %3499  ;;  %v2134_v33 = vadd.f32 1.0, %v3498_v18  ;;  %3501 = vrcp.f32 %v2133_v27 }
 0x76f   :  { %v2136_v60 = vadd.f32 1.0, %v3500_v24  ;;  %3503 = vrcp.f32 %v2135_v53 }
 0x770   :  { %3505 = vrcp.f32 %v2134_v33 }
 0x771   :  { %3507 = vrcp.f32 %v2136_v60 }
 0x778   :  { %v3502_v27 = vpop.eup %3501 }
 0x779   :  { %v3504_v53 = vpop.eup %3503 }
 0x77a   :  { %v3506_v33 = vpop.eup %3505 }
 0x79c   :  { %v2059_v57 = vpop.f32.mrb[68].mxu0  ;;  %v2100_v56 = vpop.f32.mrb[68].mxu1 }
 0x79d   :  { %v2111_v16 = vadd.f32 %v2059_v57, %v7241_v20  ;;  %v2113_v42 = vadd.f32 %v2100_v56, %v7242_v62  ;;  %v2061_v5 = vpop.f32.mrb[69].mxu0  ;;  %v2102_v23 = vpop.f32.mrb[69].mxu1  ;;  %v2153_v20 = vmul.f32 %v3504_v53, %v5524_v35  ;;  %v5805_v53 = vld [vmem:[#allocation2 + $0x110] sm:$0xff] }
 0x79e   :  { %v2112_v54 = vadd.f32 %v2061_v5, %v7243_v10  ;;  %v2114_v61 = vadd.f32 %v2102_v23, %v7244_v11  ;;  %v2063_v17 = vpop.f32.mrb[70].mxu0  ;;  %v2104_v45 = vpop.f32.mrb[70].mxu1 }
 0x79f   :  { %v3279_v49 = vmul.f32 -1.442695, %v2111_v16  ;;  %3509 = vtanh.f32 %v2113_v42  ;;  %v2064_v41 = vpop.f32.mrb[71].mxu0  ;;  %v2105_v18 = vpop.f32.mrb[71].mxu1 }
 0x7a0   :  { %v3280_v24 = vmul.f32 -1.442695, %v2112_v54  ;;  %3511 = vtanh.f32 %v2114_v61  ;;  %v3508_v57 = vpop.eup %3507 }
 0x7a1   :  { %3513 = vpow2.f32 %v3279_v49  ;;  %v2154_v23 = vmul.f32 %v3508_v57, %v5526_v58  ;;  %v5811_v57 = vld [vmem:[#allocation2 + $0x158] sm:$0xff] }
 0x7a2   :  { %3515 = vpow2.f32 %v3280_v24 }
 0x7a9   :  { %v3510_v56 = vpop.eup %3509 }
 0x7aa   :  { %v3512_v60 = vpop.eup %3511  ;;  %v2155_v62 = vmul.f32 %v3510_v56, %v3502_v27  ;;  %v5802_v27 = vld [vmem:[#allocation2 + $0x100] sm:$0xff] }
 0x7ab   :  { %v3514_v5 = vpop.eup %3513  ;;  %v2156_v16 = vmul.f32 %v3512_v60, %v3506_v33  ;;  %v5808_v33 = vld [vmem:[#allocation2 + $0x148] sm:$0xff]  ;;  %v5814_v56 = vld [vmem:[#allocation2 + $0x140] sm:$0xff]  ;;  %v5817_v60 = vld [vmem:[#allocation2 + $0x150] sm:$0xff] }
 0x7ac   :  { %v3516_v42 = vpop.eup %3515  ;;  %v2137_v10 = vadd.f32 1.0, %v3514_v5  ;;  %v5674_v11 = vadd.f32 %v2155_v62, %v2153_v20  ;;  %v5820_v20 = vld [vmem:[#allocation2 + $0x188] sm:$0xff]  ;;  %v5823_v62 = vld [vmem:[#allocation2 + $0x198] sm:$0xff]  ;;  %v5826_v5 = vld [vmem:[#allocation2 + $0x180] sm:$0xff] }
 0x7ad   :  { %v2138_v54 = vadd.f32 1.0, %v3516_v42  ;;  %v5676_v61 = vadd.f32 %v2156_v16, %v2154_v23  ;;  %v5829_v23 = vld [vmem:[#allocation2 + $0x190] sm:$0xff]  ;;  %v5832_v16 = vld [vmem:[#allocation2 + $0x1c8] sm:$0xff]  ;;  %v5835_v42 = vld [vmem:[#allocation2 + $0x1d8] sm:$0xff] }
 0x7ae   :  { %3517 = vrcp.f32 %v2137_v10  ;;  %v5838_v10 = vld [vmem:[#allocation2 + $0x1c0] sm:$0xff] }
 0x7af   :  { %3519 = vtanh.f32 %v5674_v11 }
 0x7b0   :  { %3521 = vrcp.f32 %v2138_v54  ;;  %v5841_v54 = vld [vmem:[#allocation2 + $0x1d0] sm:$0xff] }
 0x7b1   :  { %3523 = vtanh.f32 %v5676_v61 }
 0x7b8   :  { %v3518_v17 = vpop.eup %3517 }
 0x7b9   :  { %v3520_v35 = vpop.eup %3519 }
 0x7ba   :  { %v3522_v45 = vpop.eup %3521  ;;  %v2161_v41 = vmul.f32 %v3520_v35, %v3518_v17  ;;  %v5844_v17 = vld [vmem:[#allocation2 + $0x208] sm:$0xff]  ;;  %v5847_v35 = vld [vmem:[#allocation2 + $0x218] sm:$0xff] }
 0x7bb   :  { %v3524_v49 = vpop.eup %3523 }
 0x7bc   :  { %v2162_v58 = vmul.f32 %v3524_v49, %v3522_v45  ;;  %v5680_v24 = vpack.c.bf16 %v2161_v41, %v2161_v41  ;;  %v5850_v45 = vld [vmem:[#allocation2 + $0x200] sm:$0xff]  ;;  %v5853_v49 = vld [vmem:[#allocation2 + $0x210] sm:$0xff]  ;;  %v5856_v41 = vld [vmem:[#allocation2 + $0x248] sm:$0xff] }
 0x7be   :  { %v2164_v18 = vpack.c.bf16 %v2162_v58, %v2162_v58  ;;  %v5859_v58 = vld [vmem:[#allocation2 + $0x258] sm:$0xff] }
 0x7c0   :  { %2197 = vmatprep.mubr.bf16.mxu0 %v2164_v18  ;;  %2238 = vmatprep.mubr.bf16.mxu1 %v2164_v18 }
 0x7c1   :  { %2198 = vmatmul.mubr.bf16.vlgmr.msra.gmra.mrb[72].mxu0 %v5680_v24  ;;  %2239 = vmatmul.mubr.bf16.vlgmr.msra.gmra.mrb[72].mxu1 %v5680_v24 }
 0x7c2   :  { %2248 = vmatpush1.bf16.msra.mxu0 %v5260_v51  ;;  %2289 = vmatpush1.bf16.msra.mxu1 %v5263_v26  ;;  %v7245_v51 = vld [vmem:[#allocation113_spill] sm:$0xff]  ;;  %v7246_v26 = vld [vmem:[#allocation114_spill] sm:$0xff] }
 0x7c3   :  { %2279 = vmatprep.mubr.bf16.mxu0 %v2164_v18  ;;  %2320 = vmatprep.mubr.bf16.mxu1 %v2164_v18  ;;  %v5862_v18 = vld [vmem:[#allocation2 + $0x240] sm:$0xff] }
 0x7c4   :  { %2249 = vmatprep.subr.bf16.mxu0 %v5266_v34  ;;  %2290 = vmatprep.subr.bf16.mxu1 %v5269_v21  ;;  %v7247_v34 = vld [vmem:[#allocation115_spill] sm:$0xff]  ;;  %v7248_v21 = vld [vmem:[#allocation25_spill] sm:$0xff] }
 0x7c6   :  { %2250 = vmatpush1.bf16.msra.mxu0 %v5272_v25  ;;  %2291 = vmatpush1.bf16.msra.mxu1 %v5275_v63  ;;  %v7249_v25 = vld [vmem:[#allocation26_spill] sm:$0xff]  ;;  %v7250_v63 = vld [vmem:[#allocation27_spill] sm:$0xff] }
 0x7c7   :  { %2251 = vmatprep.subr.bf16.mxu0 %v5278_v46  ;;  %2292 = vmatprep.subr.bf16.mxu1 %v5281_v30  ;;  %v7251_v46 = vld [vmem:[#allocation28_spill] sm:$0xff]  ;;  %v7252_v30 = vld [vmem:[#allocation57_spill] sm:$0xff] }
 0x7ca   :  { %2252 = vmatpush1.bf16.msra.mxu0 %v5284_v2  ;;  %2293 = vmatpush1.bf16.msra.mxu1 %v5287_v29  ;;  %v7253_v2 = vld [vmem:[#allocation58_spill] sm:$0xff]  ;;  %v7254_v29 = vld [vmem:[#allocation59_spill] sm:$0xff] }
 0x7cb   :  { %2253 = vmatprep.subr.bf16.mxu0 %v5290_v31  ;;  %2294 = vmatprep.subr.bf16.mxu1 %v5293_v38  ;;  %v7255_v31 = vld [vmem:[#allocation60_spill] sm:$0xff]  ;;  %v7256_v38 = vld [vmem:[#allocation123_spill] sm:$0xff] }
 0x7ce   :  { %2254 = vmatpush1.bf16.msra.mxu0 %v5296_v44  ;;  %2295 = vmatpush1.bf16.msra.mxu1 %v5299_v55  ;;  %v7257_v44 = vld [vmem:[#allocation124_spill] sm:$0xff]  ;;  %v7258_v55 = vld [vmem:[#allocation125_spill] sm:$0xff] }
 0x7cf   :  { %2255 = vmatprep.subr.bf16.mxu0 %v7150_v3  ;;  %2296 = vmatprep.subr.bf16.mxu1 %v7151_v39  ;;  %v7259_v3 = vld [vmem:[#allocation126_spill] sm:$0xff]  ;;  %v7260_v39 = vld [vmem:[#allocation127_spill] sm:$0xff] }
 0x7d2   :  { %2256 = vmatpush1.bf16.msra.mxu0 %v7152_v28  ;;  %2297 = vmatpush1.bf16.msra.mxu1 %v7153_v13  ;;  %v7261_v28 = vld [vmem:[#allocation128_spill] sm:$0xff]  ;;  %v7262_v13 = vld [vmem:[#allocation129_spill] sm:$0xff] }
 0x7d3   :  { %2257 = vmatprep.subr.bf16.mxu0 %v7154_v14  ;;  %2298 = vmatprep.subr.bf16.mxu1 %v7155_v0  ;;  %v7263_v14 = vld [vmem:[#allocation130_spill] sm:$0xff]  ;;  %v7264_v0 = vld [vmem:[#allocation131_spill] sm:$0xff] }
 0x7d6   :  { %2258 = vmatpush1.bf16.msra.mxu0 %v7156_v50  ;;  %2299 = vmatpush1.bf16.msra.mxu1 %v7157_v48  ;;  %v7265_v50 = vld [vmem:[#allocation132_spill] sm:$0xff]  ;;  %v7266_v48 = vld [vmem:[#allocation133_spill] sm:$0xff] }
 0x7d7   :  { %2259 = vmatprep.subr.bf16.mxu0 %v7158_v9  ;;  %2300 = vmatprep.subr.bf16.mxu1 %v7245_v51  ;;  %v5746_v9 = vld [vmem:[#allocation2 + $0x8] sm:$0xff] }
 0x7d8   :  { %v5868_v51 = vld [vmem:[#allocation2 + $0x288] sm:$0xff] }
 0x7da   :  { %2260 = vmatpush1.bf16.msra.mxu0 %v7246_v26  ;;  %2301 = vmatpush1.bf16.msra.mxu1 %v7247_v34  ;;  %v5871_v26 = vld [vmem:[#allocation2 + $0x298] sm:$0xff]  ;;  %v5874_v34 = vld [vmem:[#allocation2 + $0x280] sm:$0xff] }
 0x7db   :  { %2261 = vmatprep.subr.bf16.mxu0 %v7248_v21  ;;  %2302 = vmatprep.subr.bf16.mxu1 %v7249_v25  ;;  %7267 = vst [vmem:[#allocation145_spill] sm:$0xff] %v5871_v26  ;;  %7268 = vst [vmem:[#allocation146_spill] sm:$0xff] %v5874_v34  ;;  %v5877_v21 = vld [vmem:[#allocation2 + $0x290] sm:$0xff]  ;;  %v5880_v25 = vld [vmem:[#allocation2 + $0x2c8] sm:$0xff] }
 0x7dc   :  { %7269 = vst [vmem:[#allocation147_spill] sm:$0xff] %v5877_v21  ;;  %7270 = vst [vmem:[#allocation148_spill] sm:$0xff] %v5880_v25 }
 0x7de   :  { %2262 = vmatpush1.bf16.msra.mxu0 %v7250_v63  ;;  %2303 = vmatpush1.bf16.msra.mxu1 %v7251_v46  ;;  %v5883_v63 = vld [vmem:[#allocation2 + $0x2d8] sm:$0xff]  ;;  %v5886_v46 = vld [vmem:[#allocation2 + $0x2c0] sm:$0xff] }
 0x7df   :  { %2263 = vmatprep.subr.bf16.mxu0 %v7252_v30  ;;  %2304 = vmatprep.subr.bf16.mxu1 %v7253_v2  ;;  %7271 = vst [vmem:[#allocation149_spill] sm:$0xff] %v5883_v63  ;;  %7272 = vst [vmem:[#allocation150_spill] sm:$0xff] %v5886_v46  ;;  %v5889_v30 = vld [vmem:[#allocation2 + $0x2d0] sm:$0xff]  ;;  %v5892_v2 = vld [vmem:[#allocation2 + $0x308] sm:$0xff] }
 0x7e0   :  { %7273 = vst [vmem:[#allocation151_spill] sm:$0xff] %v5889_v30  ;;  %7274 = vst [vmem:[#allocation152_spill] sm:$0xff] %v5892_v2 }
 0x7e2   :  { %2264 = vmatpush1.bf16.msra.mxu0 %v7254_v29  ;;  %2305 = vmatpush1.bf16.msra.mxu1 %v7255_v31  ;;  %v5895_v29 = vld [vmem:[#allocation2 + $0x318] sm:$0xff]  ;;  %v5898_v31 = vld [vmem:[#allocation2 + $0x300] sm:$0xff] }
 0x7e3   :  { %2265 = vmatprep.subr.bf16.mxu0 %v7256_v38  ;;  %2306 = vmatprep.subr.bf16.mxu1 %v7257_v44  ;;  %7275 = vst [vmem:[#allocation153_spill] sm:$0xff] %v5895_v29  ;;  %7276 = vst [vmem:[#allocation154_spill] sm:$0xff] %v5898_v31  ;;  %v5901_v38 = vld [vmem:[#allocation2 + $0x310] sm:$0xff]  ;;  %v5904_v44 = vld [vmem:[#allocation2 + $0x348] sm:$0xff] }
 0x7e4   :  { %7277 = vst [vmem:[#allocation155_spill] sm:$0xff] %v5901_v38  ;;  %7278 = vst [vmem:[#allocation156_spill] sm:$0xff] %v5904_v44 }
 0x7e6   :  { %2266 = vmatpush1.bf16.msra.mxu0 %v7258_v55  ;;  %2307 = vmatpush1.bf16.msra.mxu1 %v7259_v3  ;;  %v5907_v55 = vld [vmem:[#allocation2 + $0x358] sm:$0xff]  ;;  %v5910_v3 = vld [vmem:[#allocation2 + $0x340] sm:$0xff] }
 0x7e7   :  { %2267 = vmatprep.subr.bf16.mxu0 %v7260_v39  ;;  %2308 = vmatprep.subr.bf16.mxu1 %v7261_v28  ;;  %7279 = vst [vmem:[#allocation158_spill] sm:$0xff] %v5907_v55  ;;  %7280 = vst [vmem:[#allocation159_spill] sm:$0xff] %v5910_v3  ;;  %v5913_v39 = vld [vmem:[#allocation2 + $0x350] sm:$0xff]  ;;  %v5916_v28 = vld [vmem:[#allocation2 + $0x388] sm:$0xff] }
 0x7e8   :  { %7281 = vst [vmem:[#allocation29_spill] sm:$0xff] %v5913_v39  ;;  %7282 = vst [vmem:[#allocation30_spill] sm:$0xff] %v5916_v28 }
 0x7ea   :  { %2268 = vmatpush1.bf16.msra.mxu0 %v7262_v13  ;;  %2309 = vmatpush1.bf16.msra.mxu1 %v7263_v14  ;;  %v5919_v13 = vld [vmem:[#allocation2 + $0x398] sm:$0xff]  ;;  %v5922_v14 = vld [vmem:[#allocation2 + $0x380] sm:$0xff] }
 0x7eb   :  { %2269 = vmatprep.subr.bf16.mxu0 %v7264_v0  ;;  %2310 = vmatprep.subr.bf16.mxu1 %v7265_v50  ;;  %7283 = vst [vmem:[#allocation31_spill] sm:$0xff] %v5919_v13  ;;  %7284 = vst [vmem:[#allocation32_spill] sm:$0xff] %v5922_v14  ;;  %v5925_v0 = vld [vmem:[#allocation2 + $0x390] sm:$0xff]  ;;  %v5928_v50 = vld [vmem:[#allocation2 + $0x3c8] sm:$0xff] }
 0x7ec   :  { %7285 = vst [vmem:[#allocation61_spill] sm:$0xff] %v5925_v0  ;;  %7286 = vst [vmem:[#allocation62_spill] sm:$0xff] %v5928_v50 }
 0x7ee   :  { %2270 = vmatpush1.bf16.msra.mxu0 %v7266_v48  ;;  %2311 = vmatpush1.bf16.msra.mxu1 %v7181_v1  ;;  %v5749_v1 = vld [vmem:[#allocation2 + $0x18] sm:$0xff] }
 0x7ef   :  { %2271 = vmatprep.subr.bf16.mxu0 %v7182_v36  ;;  %2312 = vmatprep.subr.bf16.mxu1 %v7183_v47  ;;  %v5772_v36 = vld [vmem:[#allocation2 + $0x88] sm:$0xff]  ;;  %v5775_v47 = vld [vmem:[#allocation2 + $0x98] sm:$0xff] }
 0x7f0   :  { %v5931_v48 = vld [vmem:[#allocation2 + $0x3d8] sm:$0xff] }
 0x7f1   :  { %7287 = vst [vmem:[#allocation63_spill] sm:$0xff] %v5931_v48 }
 0x7f2   :  { %2272 = vmatpush1.bf16.msra.mxu0 %v7184_v52  ;;  %2313 = vmatpush1.bf16.msra.mxu1 %v7185_v8  ;;  %v5778_v52 = vld [vmem:[#allocation2 + $0x80] sm:$0xff]  ;;  %v5781_v8 = vld [vmem:[#allocation2 + $0x90] sm:$0xff] }
 0x7f3   :  { %2273 = vmatprep.subr.bf16.mxu0 %v7186_v4  ;;  %2314 = vmatprep.subr.bf16.mxu1 %v7187_v19  ;;  %v5784_v4 = vld [vmem:[#allocation2 + $0xc8] sm:$0xff]  ;;  %v5787_v19 = vld [vmem:[#allocation2 + $0xd8] sm:$0xff] }
 0x7f6   :  { %2274 = vmatpush1.bf16.msra.mxu0 %v7188_v22  ;;  %2315 = vmatpush1.bf16.msra.mxu1 %v7189_v40  ;;  %v5790_v22 = vld [vmem:[#allocation2 + $0xc0] sm:$0xff]  ;;  %v5793_v40 = vld [vmem:[#allocation2 + $0xd0] sm:$0xff] }
 0x7f7   :  { %2275 = vmatprep.subr.bf16.mxu0 %v7190_v59  ;;  %2316 = vmatprep.subr.bf16.mxu1 %v7191_v15  ;;  %v5796_v59 = vld [vmem:[#allocation2 + $0x108] sm:$0xff]  ;;  %v5799_v15 = vld [vmem:[#allocation2 + $0x118] sm:$0xff] }
 0x7fa   :  { %2276 = vmatpush1.bf16.msra.mxu0 %v5428_v7  ;;  %2317 = vmatpush1.bf16.msra.mxu1 %v5431_v43  ;;  %v5754_v7 = vld [vmem:[#allocation2] sm:$0xff]  ;;  %v5757_v43 = vld [vmem:[#allocation2 + $0x10] sm:$0xff] }
 0x7fb   :  { %2277 = vmatprep.subr.bf16.mxu0 %v5434_v12  ;;  %2318 = vmatprep.subr.bf16.mxu1 %v5437_v37  ;;  %v5760_v12 = vld [vmem:[#allocation2 + $0x48] sm:$0xff]  ;;  %v5763_v37 = vld [vmem:[#allocation2 + $0x58] sm:$0xff] }
 0x7fe   :  { %2278 = vmatpush1.bf16.msra.mxu0 %v5440_v32  ;;  %2319 = vmatpush1.bf16.msra.mxu1 %v5443_v6  ;;  %v5766_v32 = vld [vmem:[#allocation2 + $0x40] sm:$0xff]  ;;  %v5769_v6 = vld [vmem:[#allocation2 + $0x50] sm:$0xff] }
 0x7ff   :  { %2387 = vmatprep.subr.bf16.mxu0 %v5746_v9  ;;  %2428 = vmatprep.subr.bf16.mxu1 %v5749_v1 }
 0x801   :  { %2280 = vmatmul.mubr.bf16.vlgmr.msra.gmra.mrb[76].mxu0 %v5680_v24  ;;  %2321 = vmatmul.mubr.bf16.vlgmr.msra.gmra.mrb[76].mxu1 %v5680_v24  ;;  %v5865_v24 = vld [vmem:[#allocation2 + $0x250] sm:$0xff] }
 0x802   :  { %2388 = vmatpush1.bf16.msra.mxu0 %v5754_v7  ;;  %2429 = vmatpush1.bf16.msra.mxu1 %v5757_v43 }
 0x803   :  { %2389 = vmatprep.subr.bf16.mxu0 %v5760_v12  ;;  %2430 = vmatprep.subr.bf16.mxu1 %v5763_v37 }
 0x806   :  { %2390 = vmatpush1.bf16.msra.mxu0 %v5766_v32  ;;  %2431 = vmatpush1.bf16.msra.mxu1 %v5769_v6 }
 0x807   :  { %2391 = vmatprep.subr.bf16.mxu0 %v5772_v36  ;;  %2432 = vmatprep.subr.bf16.mxu1 %v5775_v47 }
 0x80a   :  { %2392 = vmatpush1.bf16.msra.mxu0 %v5778_v52  ;;  %2433 = vmatpush1.bf16.msra.mxu1 %v5781_v8 }
 0x80b   :  { %2393 = vmatprep.subr.bf16.mxu0 %v5784_v4  ;;  %2434 = vmatprep.subr.bf16.mxu1 %v5787_v19 }
 0x80e   :  { %2394 = vmatpush1.bf16.msra.mxu0 %v5790_v22  ;;  %2435 = vmatpush1.bf16.msra.mxu1 %v5793_v40 }
 0x80f   :  { %2395 = vmatprep.subr.bf16.mxu0 %v5796_v59  ;;  %2436 = vmatprep.subr.bf16.mxu1 %v5799_v15 }
 0x812   :  { %2396 = vmatpush1.bf16.msra.mxu0 %v5802_v27  ;;  %2437 = vmatpush1.bf16.msra.mxu1 %v5805_v53 }
 0x813   :  { %2397 = vmatprep.subr.bf16.mxu0 %v5808_v33  ;;  %2438 = vmatprep.subr.bf16.mxu1 %v5811_v57 }
 0x816   :  { %2398 = vmatpush1.bf16.msra.mxu0 %v5814_v56  ;;  %2439 = vmatpush1.bf16.msra.mxu1 %v5817_v60 }
 0x817   :  { %2399 = vmatprep.subr.bf16.mxu0 %v5820_v20  ;;  %2440 = vmatprep.subr.bf16.mxu1 %v5823_v62 }
 0x81a   :  { %2400 = vmatpush1.bf16.msra.mxu0 %v5826_v5  ;;  %2441 = vmatpush1.bf16.msra.mxu1 %v5829_v23 }
 0x81b   :  { %2401 = vmatprep.subr.bf16.mxu0 %v5832_v16  ;;  %2442 = vmatprep.subr.bf16.mxu1 %v5835_v42 }
 0x81e   :  { %2402 = vmatpush1.bf16.msra.mxu0 %v5838_v10  ;;  %2443 = vmatpush1.bf16.msra.mxu1 %v5841_v54 }
 0x81f   :  { %2403 = vmatprep.subr.bf16.mxu0 %v5844_v17  ;;  %2444 = vmatprep.subr.bf16.mxu1 %v5847_v35 }
 0x822   :  { %2404 = vmatpush1.bf16.msra.mxu0 %v5850_v45  ;;  %2445 = vmatpush1.bf16.msra.mxu1 %v5853_v49 }
 0x823   :  { %2405 = vmatprep.subr.bf16.mxu0 %v5856_v41  ;;  %2446 = vmatprep.subr.bf16.mxu1 %v5859_v58 }
 0x826   :  { %2406 = vmatpush1.bf16.msra.mxu0 %v5862_v18  ;;  %2447 = vmatpush1.bf16.msra.mxu1 %v5865_v24 }
 0x827   :  { %2407 = vmatprep.subr.bf16.mxu0 %v5868_v51  ;;  %2448 = vmatprep.subr.bf16.mxu1 %v5871_v26 }
 0x82a   :  { %2408 = vmatpush1.bf16.msra.mxu0 %v5874_v34  ;;  %2449 = vmatpush1.bf16.msra.mxu1 %v5877_v21 }
 0x82b   :  { %2409 = vmatprep.subr.bf16.mxu0 %v5880_v25  ;;  %2450 = vmatprep.subr.bf16.mxu1 %v5883_v63  ;;  %v7295_v63 = vld [vmem:[#allocation44_spill] sm:$0xff] }
 0x82e   :  { %2410 = vmatpush1.bf16.msra.mxu0 %v5886_v46  ;;  %2451 = vmatpush1.bf16.msra.mxu1 %v5889_v30  ;;  %v7294_v30 = vld [vmem:[#allocation43_spill] sm:$0xff] }
 0x82f   :  { %2411 = vmatprep.subr.bf16.mxu0 %v5892_v2  ;;  %2452 = vmatprep.subr.bf16.mxu1 %v5895_v29  ;;  %v7293_v2 = vld [vmem:[#allocation42_spill] sm:$0xff] }
 0x832   :  { %2412 = vmatpush1.bf16.msra.mxu0 %v5898_v31  ;;  %2453 = vmatpush1.bf16.msra.mxu1 %v5901_v38  ;;  %v7292_v31 = vld [vmem:[#allocation41_spill] sm:$0xff] }
 0x833   :  { %2413 = vmatprep.subr.bf16.mxu0 %v5904_v44  ;;  %2454 = vmatprep.subr.bf16.mxu1 %v5907_v55 }
 0x836   :  { %2414 = vmatpush1.bf16.msra.mxu0 %v5910_v3  ;;  %2455 = vmatpush1.bf16.msra.mxu1 %v5913_v39 }
 0x837   :  { %2415 = vmatprep.subr.bf16.mxu0 %v5916_v28  ;;  %2456 = vmatprep.subr.bf16.mxu1 %v5919_v13  ;;  %v5934_v28 = vld [vmem:[#allocation2 + $0x3c0] sm:$0xff]  ;;  %v5937_v13 = vld [vmem:[#allocation2 + $0x3d0] sm:$0xff] }
 0x838   :  { %7288 = vst [vmem:[#allocation64_spill] sm:$0xff] %v5934_v28  ;;  %7289 = vst [vmem:[#allocation33_spill] sm:$0xff] %v5937_v13 }
 0x83a   :  { %2416 = vmatpush1.bf16.msra.mxu0 %v5922_v14  ;;  %2457 = vmatpush1.bf16.msra.mxu1 %v5925_v0  ;;  %v5940_v14 = vld [vmem:[#allocation2 + $0x28] sm:$0xff]  ;;  %v5943_v0 = vld [vmem:[#allocation2 + $0x38] sm:$0xff] }
 0x83b   :  { %2417 = vmatprep.subr.bf16.mxu0 %v5928_v50  ;;  %2458 = vmatprep.subr.bf16.mxu1 %v5931_v48  ;;  %7290 = vst [vmem:[#allocation34_spill] sm:$0xff] %v5940_v14  ;;  %7291 = vst [vmem:[#allocation35_spill] sm:$0xff] %v5943_v0 }
 0x83e   :  { %2418 = vmatpush1.bf16.msra.mxu0 %v5934_v28  ;;  %2459 = vmatpush1.bf16.msra.mxu1 %v5937_v13 }
 0x83f   :  { %2469 = vmatprep.subr.bf16.mxu0 %v5940_v14  ;;  %2510 = vmatprep.subr.bf16.mxu1 %v5943_v0 }
 0x894   :  { %v2199_v50 = vpop.f32.mrb[72].mxu0  ;;  %v2240_v39 = vpop.f32.mrb[72].mxu1 }
 0x895   :  { %v2201_v3 = vpop.f32.mrb[73].mxu0  ;;  %v2242_v48 = vpop.f32.mrb[73].mxu1  ;;  %v2329_v29 = vadd.f32 %v2199_v50, %v7292_v31  ;;  %v2331_v13 = vadd.f32 %v2240_v39, %v7293_v2  ;;  %v7298_v39 = vld [vmem:[#allocation75_spill] sm:$0xff] }
 0x896   :  { %v2203_v55 = vpop.f32.mrb[74].mxu0  ;;  %v2244_v44 = vpop.f32.mrb[74].mxu1  ;;  %v2330_v46 = vadd.f32 %v2201_v3, %v7294_v30  ;;  %v2332_v14 = vadd.f32 %v2242_v48, %v7295_v63  ;;  %v7297_v3 = vld [vmem:[#allocation74_spill] sm:$0xff] }
 0x897   :  { %v2204_v38 = vpop.f32.mrb[75].mxu0  ;;  %v2245_v28 = vpop.f32.mrb[75].mxu1  ;;  %v3281_v25 = vmul.f32 -1.442695, %v2329_v29  ;;  %v3283_v21 = vmul.f32 -1.442695, %v2331_v13 }
 0x898   :  { %v3282_v34 = vmul.f32 -1.442695, %v2330_v46  ;;  %v3284_v0 = vmul.f32 -1.442695, %v2332_v14  ;;  %v7296_v29 = vld [vmem:[#allocation73_spill] sm:$0xff]  ;;  %v7299_v14 = vld [vmem:[#allocation76_spill] sm:$0xff] }
 0x899   :  { %3525 = vpow2.f32 %v3281_v25 }
 0x89a   :  { %3527 = vpow2.f32 %v3283_v21 }
 0x89b   :  { %3529 = vpow2.f32 %v3282_v34 }
 0x89c   :  { %3531 = vpow2.f32 %v3284_v0 }
 0x8a3   :  { %v3526_v55 = vpop.eup %3525 }
 0x8a4   :  { %v3528_v44 = vpop.eup %3527  ;;  %v2355_v26 = vadd.f32 1.0, %v3526_v55 }
 0x8a5   :  { %v3530_v38 = vpop.eup %3529  ;;  %v2357_v31 = vadd.f32 1.0, %v3528_v44 }
 0x8a6   :  { %v3532_v28 = vpop.eup %3531  ;;  %v2356_v50 = vadd.f32 1.0, %v3530_v38  ;;  %3533 = vrcp.f32 %v2355_v26 }
 0x8a7   :  { %v2358_v2 = vadd.f32 1.0, %v3532_v28  ;;  %3535 = vrcp.f32 %v2357_v31 }
 0x8a8   :  { %3537 = vrcp.f32 %v2356_v50 }
 0x8a9   :  { %3539 = vrcp.f32 %v2358_v2 }
 0x8b0   :  { %v3534_v31 = vpop.eup %3533 }
 0x8b1   :  { %v3536_v50 = vpop.eup %3535 }
 0x8d4   :  { %v2281_v30 = vpop.f32.mrb[76].mxu0  ;;  %v2322_v63 = vpop.f32.mrb[76].mxu1 }
 0x8d5   :  { %v2333_v46 = vadd.f32 %v2281_v30, %v7296_v29  ;;  %v2335_v25 = vadd.f32 %v2322_v63, %v7297_v3  ;;  %v2283_v21 = vpop.f32.mrb[77].mxu0  ;;  %v2324_v34 = vpop.f32.mrb[77].mxu1  ;;  %v2375_v3 = vmul.f32 %v3536_v50, %v5674_v11  ;;  %v5966_v50 = vld [vmem:[#allocation2 + $0x20] sm:$0xff] }
 0x8d6   :  { %v2334_v13 = vadd.f32 %v2283_v21, %v7298_v39  ;;  %v2336_v0 = vadd.f32 %v2324_v34, %v7299_v14  ;;  %v2285_v48 = vpop.f32.mrb[78].mxu0  ;;  %v2326_v55 = vpop.f32.mrb[78].mxu1 }
 0x8d7   :  { %v3285_v44 = vmul.f32 -1.442695, %v2333_v46  ;;  %3541 = vtanh.f32 %v2335_v25  ;;  %v2286_v26 = vpop.f32.mrb[79].mxu0  ;;  %v2327_v38 = vpop.f32.mrb[79].mxu1 }
 0x8d8   :  { %v3286_v28 = vmul.f32 -1.442695, %v2334_v13  ;;  %3543 = vtanh.f32 %v2336_v0  ;;  %v3538_v30 = vpop.eup %3537 }
 0x8d9   :  { %3545 = vpow2.f32 %v3285_v44  ;;  %v3540_v63 = vpop.eup %3539 }
 0x8da   :  { %3547 = vpow2.f32 %v3286_v28  ;;  %v2376_v39 = vmul.f32 %v3540_v63, %v5676_v61  ;;  %v5972_v63 = vld [vmem:[#allocation2 + $0x68] sm:$0xff] }
 0x8e1   :  { %v3542_v29 = vpop.eup %3541 }
 0x8e2   :  { %v3544_v2 = vpop.eup %3543  ;;  %v2377_v21 = vmul.f32 %v3542_v29, %v3534_v31  ;;  %v5975_v29 = vld [vmem:[#allocation2 + $0x78] sm:$0xff] }
 0x8e3   :  { %v3546_v34 = vpop.eup %3545  ;;  %v2378_v46 = vmul.f32 %v3544_v2, %v3538_v30  ;;  %v5969_v30 = vld [vmem:[#allocation2 + $0x30] sm:$0xff]  ;;  %v5978_v2 = vld [vmem:[#allocation2 + $0x60] sm:$0xff] }
 0x8e4   :  { %v3548_v25 = vpop.eup %3547  ;;  %v2359_v14 = vadd.f32 1.0, %v3546_v34  ;;  %v5956_v48 = vadd.f32 %v2377_v21, %v2375_v3  ;;  %v5981_v3 = vld [vmem:[#allocation2 + $0x70] sm:$0xff]  ;;  %v5984_v21 = vld [vmem:[#allocation2 + $0xa8] sm:$0xff]  ;;  %v5987_v34 = vld [vmem:[#allocation2 + $0xb8] sm:$0xff] }
 0x8e5   :  { %v2360_v13 = vadd.f32 1.0, %v3548_v25  ;;  %v5958_v0 = vadd.f32 %v2378_v46, %v2376_v39  ;;  %v5990_v39 = vld [vmem:[#allocation2 + $0xa0] sm:$0xff]  ;;  %v5993_v46 = vld [vmem:[#allocation2 + $0xb0] sm:$0xff]  ;;  %v5996_v25 = vld [vmem:[#allocation2 + $0xe8] sm:$0xff] }
 0x8e6   :  { %3549 = vrcp.f32 %v2359_v14  ;;  %v5999_v14 = vld [vmem:[#allocation2 + $0xf8] sm:$0xff] }
 0x8e7   :  { %3551 = vtanh.f32 %v5956_v48 }
 0x8e8   :  { %3553 = vrcp.f32 %v2360_v13  ;;  %v6002_v13 = vld [vmem:[#allocation2 + $0xe0] sm:$0xff] }
 0x8e9   :  { %3555 = vtanh.f32 %v5958_v0 }
 0x8f0   :  { %v3550_v55 = vpop.eup %3549 }
 0x8f1   :  { %v3552_v11 = vpop.eup %3551 }
 0x8f2   :  { %v3554_v44 = vpop.eup %3553  ;;  %v2383_v38 = vmul.f32 %v3552_v11, %v3550_v55  ;;  %v6005_v55 = vld [vmem:[#allocation2 + $0xf0] sm:$0xff]  ;;  %v6008_v11 = vld [vmem:[#allocation2 + $0x128] sm:$0xff] }
 0x8f3   :  { %v3556_v26 = vpop.eup %3555  ;;  %7300 = vst [vmem:[#allocation36_spill] sm:$0xff] %v6008_v11 }
 0x8f4   :  { %v2384_v61 = vmul.f32 %v3556_v26, %v3554_v44  ;;  %v5962_v31 = vpack.c.bf16 %v2383_v38, %v2383_v38  ;;  %v6011_v44 = vld [vmem:[#allocation2 + $0x138] sm:$0xff]  ;;  %v6014_v26 = vld [vmem:[#allocation2 + $0x120] sm:$0xff]  ;;  %v6017_v38 = vld [vmem:[#allocation2 + $0x130] sm:$0xff] }
 0x8f5   :  { %7301 = vst [vmem:[#allocation65_spill] sm:$0xff] %v6011_v44  ;;  %7302 = vst [vmem:[#allocation66_spill] sm:$0xff] %v6014_v26 }
 0x8f6   :  { %v2386_v28 = vpack.c.bf16 %v2384_v61, %v2384_v61  ;;  %7303 = vst [vmem:[#allocation67_spill] sm:$0xff] %v6017_v38  ;;  %v6020_v61 = vld [vmem:[#allocation2 + $0x168] sm:$0xff] }
 0x8f7   :  { %7304 = vst [vmem:[#allocation68_spill] sm:$0xff] %v6020_v61 }
 0x8f8   :  { %2419 = vmatprep.mubr.bf16.mxu0 %v2386_v28  ;;  %2460 = vmatprep.mubr.bf16.mxu1 %v2386_v28 }
 0x8f9   :  { %2420 = vmatmul.mubr.bf16.vlgmr.msra.gmra.mrb[80].mxu0 %v5962_v31  ;;  %2461 = vmatmul.mubr.bf16.vlgmr.msra.gmra.mrb[80].mxu1 %v5962_v31 }
 0x8fa   :  { %2470 = vmatpush1.bf16.msra.mxu0 %v5966_v50  ;;  %2511 = vmatpush1.bf16.msra.mxu1 %v5969_v30 }
 0x8fb   :  { %2501 = vmatprep.mubr.bf16.mxu0 %v2386_v28  ;;  %2542 = vmatprep.mubr.bf16.mxu1 %v2386_v28  ;;  %v6023_v28 = vld [vmem:[#allocation2 + $0x178] sm:$0xff] }
 0x8fc   :  { %2471 = vmatprep.subr.bf16.mxu0 %v5972_v63  ;;  %2512 = vmatprep.subr.bf16.mxu1 %v5975_v29  ;;  %7305 = vst [vmem:[#allocation104_spill] sm:$0xff] %v6023_v28 }
 0x8fe   :  { %2472 = vmatpush1.bf16.msra.mxu0 %v5978_v2  ;;  %2513 = vmatpush1.bf16.msra.mxu1 %v5981_v3 }
 0x8ff   :  { %2473 = vmatprep.subr.bf16.mxu0 %v5984_v21  ;;  %2514 = vmatprep.subr.bf16.mxu1 %v5987_v34 }
 0x902   :  { %2474 = vmatpush1.bf16.msra.mxu0 %v5990_v39  ;;  %2515 = vmatpush1.bf16.msra.mxu1 %v5993_v46 }
 0x903   :  { %2475 = vmatprep.subr.bf16.mxu0 %v5996_v25  ;;  %2516 = vmatprep.subr.bf16.mxu1 %v5999_v14 }
 0x906   :  { %2476 = vmatpush1.bf16.msra.mxu0 %v6002_v13  ;;  %2517 = vmatpush1.bf16.msra.mxu1 %v6005_v55 }
 0x907   :  { %2477 = vmatprep.subr.bf16.mxu0 %v6008_v11  ;;  %2518 = vmatprep.subr.bf16.mxu1 %v6011_v44  ;;  %v6026_v11 = vld [vmem:[#allocation2 + $0x160] sm:$0xff]  ;;  %v6029_v44 = vld [vmem:[#allocation2 + $0x170] sm:$0xff] }
 0x908   :  { %7306 = vst [vmem:[#allocation105_spill] sm:$0xff] %v6026_v11  ;;  %7307 = vst [vmem:[#allocation106_spill] sm:$0xff] %v6029_v44 }
 0x90a   :  { %2478 = vmatpush1.bf16.msra.mxu0 %v6014_v26  ;;  %2519 = vmatpush1.bf16.msra.mxu1 %v6017_v38  ;;  %v6032_v26 = vld [vmem:[#allocation2 + $0x1a8] sm:$0xff]  ;;  %v6035_v38 = vld [vmem:[#allocation2 + $0x1b8] sm:$0xff] }
 0x90b   :  { %2479 = vmatprep.subr.bf16.mxu0 %v6020_v61  ;;  %2520 = vmatprep.subr.bf16.mxu1 %v6023_v28  ;;  %7308 = vst [vmem:[#allocation107_spill] sm:$0xff] %v6032_v26  ;;  %7309 = vst [vmem:[#allocation108_spill] sm:$0xff] %v6035_v38  ;;  %v6038_v61 = vld [vmem:[#allocation2 + $0x1a0] sm:$0xff]  ;;  %v6041_v28 = vld [vmem:[#allocation2 + $0x1b0] sm:$0xff] }
 0x90c   :  { %7310 = vst [vmem:[#allocation109_spill] sm:$0xff] %v6038_v61  ;;  %7311 = vst [vmem:[#allocation110_spill] sm:$0xff] %v6041_v28 }
 0x90e   :  { %2480 = vmatpush1.bf16.msra.mxu0 %v6026_v11  ;;  %2521 = vmatpush1.bf16.msra.mxu1 %v6029_v44  ;;  %v6044_v11 = vld [vmem:[#allocation2 + $0x1e8] sm:$0xff]  ;;  %v6047_v44 = vld [vmem:[#allocation2 + $0x1f8] sm:$0xff] }
 0x90f   :  { %2481 = vmatprep.subr.bf16.mxu0 %v6032_v26  ;;  %2522 = vmatprep.subr.bf16.mxu1 %v6035_v38  ;;  %7312 = vst [vmem:[#allocation111_spill] sm:$0xff] %v6044_v11  ;;  %7313 = vst [vmem:[#allocation112_spill] sm:$0xff] %v6047_v44  ;;  %v6050_v26 = vld [vmem:[#allocation2 + $0x1e0] sm:$0xff]  ;;  %v6053_v38 = vld [vmem:[#allocation2 + $0x1f0] sm:$0xff] }
 0x910   :  { %7314 = vst [vmem:[#allocation134_spill] sm:$0xff] %v6050_v26  ;;  %7315 = vst [vmem:[#allocation135_spill] sm:$0xff] %v6053_v38 }
 0x912   :  { %2482 = vmatpush1.bf16.msra.mxu0 %v6038_v61  ;;  %2523 = vmatpush1.bf16.msra.mxu1 %v6041_v28  ;;  %v6056_v61 = vld [vmem:[#allocation2 + $0x228] sm:$0xff]  ;;  %v6059_v28 = vld [vmem:[#allocation2 + $0x238] sm:$0xff] }
 0x913   :  { %2483 = vmatprep.subr.bf16.mxu0 %v6044_v11  ;;  %2524 = vmatprep.subr.bf16.mxu1 %v6047_v44  ;;  %7316 = vst [vmem:[#allocation136_spill] sm:$0xff] %v6056_v61  ;;  %7317 = vst [vmem:[#allocation137_spill] sm:$0xff] %v6059_v28  ;;  %v6062_v11 = vld [vmem:[#allocation2 + $0x220] sm:$0xff]  ;;  %v6065_v44 = vld [vmem:[#allocation2 + $0x230] sm:$0xff] }
 0x914   :  { %7318 = vst [vmem:[#allocation138_spill] sm:$0xff] %v6062_v11  ;;  %7319 = vst [vmem:[#allocation139_spill] sm:$0xff] %v6065_v44 }
 0x916   :  { %2484 = vmatpush1.bf16.msra.mxu0 %v6050_v26  ;;  %2525 = vmatpush1.bf16.msra.mxu1 %v6053_v38  ;;  %v6068_v26 = vld [vmem:[#allocation2 + $0x268] sm:$0xff]  ;;  %v6071_v38 = vld [vmem:[#allocation2 + $0x278] sm:$0xff] }
 0x917   :  { %2485 = vmatprep.subr.bf16.mxu0 %v6056_v61  ;;  %2526 = vmatprep.subr.bf16.mxu1 %v6059_v28  ;;  %7320 = vst [vmem:[#allocation140_spill] sm:$0xff] %v6068_v26  ;;  %7321 = vst [vmem:[#allocation141_spill] sm:$0xff] %v6071_v38  ;;  %v6074_v61 = vld [vmem:[#allocation2 + $0x260] sm:$0xff]  ;;  %v6077_v28 = vld [vmem:[#allocation2 + $0x270] sm:$0xff] }
 0x918   :  { %7322 = vst [vmem:[#allocation142_spill] sm:$0xff] %v6074_v61  ;;  %7323 = vst [vmem:[#allocation143_spill] sm:$0xff] %v6077_v28 }
 0x91a   :  { %2486 = vmatpush1.bf16.msra.mxu0 %v6062_v11  ;;  %2527 = vmatpush1.bf16.msra.mxu1 %v6065_v44  ;;  %v6080_v11 = vld [vmem:[#allocation2 + $0x2a8] sm:$0xff]  ;;  %v6083_v44 = vld [vmem:[#allocation2 + $0x2b8] sm:$0xff] }
 0x91b   :  { %2487 = vmatprep.subr.bf16.mxu0 %v6068_v26  ;;  %2528 = vmatprep.subr.bf16.mxu1 %v6071_v38  ;;  %7324 = vst [vmem:[#allocation144_spill] sm:$0xff] %v6080_v11  ;;  %7325 = vst [vmem:[#allocation21_spill] sm:$0xff] %v6083_v44  ;;  %v6086_v26 = vld [vmem:[#allocation2 + $0x2a0] sm:$0xff]  ;;  %v6089_v38 = vld [vmem:[#allocation2 + $0x2b0] sm:$0xff] }
 0x91c   :  { %7326 = vst [vmem:[#allocation22_spill] sm:$0xff] %v6086_v26  ;;  %7327 = vst [vmem:[#allocation23_spill] sm:$0xff] %v6089_v38 }
 0x91e   :  { %2488 = vmatpush1.bf16.msra.mxu0 %v6074_v61  ;;  %2529 = vmatpush1.bf16.msra.mxu1 %v6077_v28  ;;  %v6092_v61 = vld [vmem:[#allocation2 + $0x2e8] sm:$0xff]  ;;  %v6095_v28 = vld [vmem:[#allocation2 + $0x2f8] sm:$0xff] }
 0x91f   :  { %2489 = vmatprep.subr.bf16.mxu0 %v6080_v11  ;;  %2530 = vmatprep.subr.bf16.mxu1 %v6083_v44  ;;  %7328 = vst [vmem:[#allocation24_spill] sm:$0xff] %v6092_v61  ;;  %7329 = vst [vmem:[#allocation53_spill] sm:$0xff] %v6095_v28  ;;  %v6098_v11 = vld [vmem:[#allocation2 + $0x2e0] sm:$0xff]  ;;  %v6101_v44 = vld [vmem:[#allocation2 + $0x2f0] sm:$0xff] }
 0x920   :  { %7330 = vst [vmem:[#allocation54_spill] sm:$0xff] %v6098_v11  ;;  %7331 = vst [vmem:[#allocation55_spill] sm:$0xff] %v6101_v44 }
 0x922   :  { %2490 = vmatpush1.bf16.msra.mxu0 %v6086_v26  ;;  %2531 = vmatpush1.bf16.msra.mxu1 %v6089_v38  ;;  %v6104_v26 = vld [vmem:[#allocation2 + $0x328] sm:$0xff]  ;;  %v6107_v38 = vld [vmem:[#allocation2 + $0x338] sm:$0xff] }
 0x923   :  { %2491 = vmatprep.subr.bf16.mxu0 %v6092_v61  ;;  %2532 = vmatprep.subr.bf16.mxu1 %v6095_v28  ;;  %7332 = vst [vmem:[#allocation56_spill] sm:$0xff] %v6104_v26  ;;  %7333 = vst [vmem:[#allocation116_spill] sm:$0xff] %v6107_v38  ;;  %v6110_v61 = vld [vmem:[#allocation2 + $0x320] sm:$0xff]  ;;  %v6113_v28 = vld [vmem:[#allocation2 + $0x330] sm:$0xff] }
 0x924   :  { %7334 = vst [vmem:[#allocation117_spill] sm:$0xff] %v6110_v61  ;;  %7335 = vst [vmem:[#allocation118_spill] sm:$0xff] %v6113_v28 }
 0x926   :  { %2492 = vmatpush1.bf16.msra.mxu0 %v6098_v11  ;;  %2533 = vmatpush1.bf16.msra.mxu1 %v6101_v44  ;;  %v6116_v11 = vld [vmem:[#allocation2 + $0x368] sm:$0xff]  ;;  %v6119_v44 = vld [vmem:[#allocation2 + $0x378] sm:$0xff] }
 0x927   :  { %2493 = vmatprep.subr.bf16.mxu0 %v6104_v26  ;;  %2534 = vmatprep.subr.bf16.mxu1 %v6107_v38  ;;  %7336 = vst [vmem:[#allocation119_spill] sm:$0xff] %v6116_v11  ;;  %7337 = vst [vmem:[#allocation120_spill] sm:$0xff] %v6119_v44  ;;  %v6122_v26 = vld [vmem:[#allocation2 + $0x360] sm:$0xff]  ;;  %v6125_v38 = vld [vmem:[#allocation2 + $0x370] sm:$0xff] }
 0x928   :  { %7338 = vst [vmem:[#allocation121_spill] sm:$0xff] %v6122_v26  ;;  %7339 = vst [vmem:[#allocation122_spill] sm:$0xff] %v6125_v38 }
 0x92a   :  { %2494 = vmatpush1.bf16.msra.mxu0 %v6110_v61  ;;  %2535 = vmatpush1.bf16.msra.mxu1 %v6113_v28  ;;  %v6128_v61 = vld [vmem:[#allocation2 + $0x3a8] sm:$0xff]  ;;  %v6131_v28 = vld [vmem:[#allocation2 + $0x3b8] sm:$0xff] }
 0x92b   :  { %2495 = vmatprep.subr.bf16.mxu0 %v6116_v11  ;;  %2536 = vmatprep.subr.bf16.mxu1 %v6119_v44  ;;  %7340 = vst [vmem:[#allocation157_spill] sm:$0xff] %v6128_v61  ;;  %7341 = vst [vmem:[#allocation160_spill] sm:$0xff] %v6131_v28  ;;  %v6134_v11 = vld [vmem:[#allocation2 + $0x3a0] sm:$0xff]  ;;  %v6137_v44 = vld [vmem:[#allocation2 + $0x3b0] sm:$0xff] }
 0x92e   :  { %2496 = vmatpush1.bf16.msra.mxu0 %v6122_v26  ;;  %2537 = vmatpush1.bf16.msra.mxu1 %v6125_v38  ;;  %v6140_v26 = vld [vmem:[#allocation2 + $0x3e8] sm:$0xff]  ;;  %v6143_v38 = vld [vmem:[#allocation2 + $0x3f8] sm:$0xff] }
 0x92f   :  { %2497 = vmatprep.subr.bf16.mxu0 %v6128_v61  ;;  %2538 = vmatprep.subr.bf16.mxu1 %v6131_v28  ;;  %v6146_v61 = vld [vmem:[#allocation2 + $0x3e0] sm:$0xff]  ;;  %v6149_v28 = vld [vmem:[#allocation2 + $0x3f0] sm:$0xff] }
 0x932   :  { %2498 = vmatpush1.bf16.msra.mxu0 %v6134_v11  ;;  %2539 = vmatpush1.bf16.msra.mxu1 %v6137_v44 }
 0x933   :  { %2499 = vmatprep.subr.bf16.mxu0 %v6140_v26  ;;  %2540 = vmatprep.subr.bf16.mxu1 %v6143_v38 }
 0x936   :  { %2500 = vmatpush1.bf16.msra.mxu0 %v6146_v61  ;;  %2541 = vmatpush1.bf16.msra.mxu1 %v6149_v28 }
 0x937   :  { %2609 = vmatprep.subr.bf16.mxu0 %v5746_v9  ;;  %2650 = vmatprep.subr.bf16.mxu1 %v5749_v1  ;;  %v7342_v9 = vld [vmem:[#allocation145_spill] sm:$0xff]  ;;  %v7343_v1 = vld [vmem:[#allocation146_spill] sm:$0xff] }
 0x939   :  { %2502 = vmatmul.mubr.bf16.vlgmr.msra.gmra.mrb[84].mxu0 %v5962_v31  ;;  %2543 = vmatmul.mubr.bf16.vlgmr.msra.gmra.mrb[84].mxu1 %v5962_v31 }
 0x93a   :  { %2610 = vmatpush1.bf16.msra.mxu0 %v5754_v7  ;;  %2651 = vmatpush1.bf16.msra.mxu1 %v5757_v43  ;;  %v7344_v7 = vld [vmem:[#allocation147_spill] sm:$0xff]  ;;  %v7345_v43 = vld [vmem:[#allocation148_spill] sm:$0xff] }
 0x93b   :  { %2611 = vmatprep.subr.bf16.mxu0 %v5760_v12  ;;  %2652 = vmatprep.subr.bf16.mxu1 %v5763_v37  ;;  %v7346_v12 = vld [vmem:[#allocation149_spill] sm:$0xff]  ;;  %v7347_v37 = vld [vmem:[#allocation150_spill] sm:$0xff] }
 0x93e   :  { %2612 = vmatpush1.bf16.msra.mxu0 %v5766_v32  ;;  %2653 = vmatpush1.bf16.msra.mxu1 %v5769_v6  ;;  %v7348_v32 = vld [vmem:[#allocation151_spill] sm:$0xff]  ;;  %v7349_v6 = vld [vmem:[#allocation152_spill] sm:$0xff] }
 0x93f   :  { %2613 = vmatprep.subr.bf16.mxu0 %v5772_v36  ;;  %2654 = vmatprep.subr.bf16.mxu1 %v5775_v47  ;;  %v7350_v36 = vld [vmem:[#allocation153_spill] sm:$0xff]  ;;  %v7351_v47 = vld [vmem:[#allocation154_spill] sm:$0xff] }
 0x942   :  { %2614 = vmatpush1.bf16.msra.mxu0 %v5778_v52  ;;  %2655 = vmatpush1.bf16.msra.mxu1 %v5781_v8  ;;  %v7352_v52 = vld [vmem:[#allocation155_spill] sm:$0xff]  ;;  %v7353_v8 = vld [vmem:[#allocation156_spill] sm:$0xff] }
 0x943   :  { %2615 = vmatprep.subr.bf16.mxu0 %v5784_v4  ;;  %2656 = vmatprep.subr.bf16.mxu1 %v5787_v19  ;;  %v7354_v4 = vld [vmem:[#allocation158_spill] sm:$0xff]  ;;  %v7355_v19 = vld [vmem:[#allocation159_spill] sm:$0xff] }
 0x946   :  { %2616 = vmatpush1.bf16.msra.mxu0 %v5790_v22  ;;  %2657 = vmatpush1.bf16.msra.mxu1 %v5793_v40  ;;  %v7356_v22 = vld [vmem:[#allocation29_spill] sm:$0xff]  ;;  %v7357_v40 = vld [vmem:[#allocation30_spill] sm:$0xff] }
 0x947   :  { %2617 = vmatprep.subr.bf16.mxu0 %v5796_v59  ;;  %2658 = vmatprep.subr.bf16.mxu1 %v5799_v15  ;;  %v7358_v59 = vld [vmem:[#allocation31_spill] sm:$0xff]  ;;  %v7359_v15 = vld [vmem:[#allocation32_spill] sm:$0xff] }
 0x94a   :  { %2618 = vmatpush1.bf16.msra.mxu0 %v5802_v27  ;;  %2659 = vmatpush1.bf16.msra.mxu1 %v5805_v53  ;;  %v7360_v27 = vld [vmem:[#allocation61_spill] sm:$0xff]  ;;  %v7361_v53 = vld [vmem:[#allocation62_spill] sm:$0xff] }
 0x94b   :  { %2619 = vmatprep.subr.bf16.mxu0 %v5808_v33  ;;  %2660 = vmatprep.subr.bf16.mxu1 %v5811_v57  ;;  %v7362_v33 = vld [vmem:[#allocation63_spill] sm:$0xff]  ;;  %v7363_v57 = vld [vmem:[#allocation64_spill] sm:$0xff] }
 0x94e   :  { %2620 = vmatpush1.bf16.msra.mxu0 %v5814_v56  ;;  %2661 = vmatpush1.bf16.msra.mxu1 %v5817_v60  ;;  %v7364_v56 = vld [vmem:[#allocation33_spill] sm:$0xff]  ;;  %v7365_v60 = vld [vmem:[#allocation34_spill] sm:$0xff] }
 0x94f   :  { %2621 = vmatprep.subr.bf16.mxu0 %v5820_v20  ;;  %2662 = vmatprep.subr.bf16.mxu1 %v5823_v62  ;;  %v7366_v20 = vld [vmem:[#allocation35_spill] sm:$0xff] }
 0x952   :  { %2622 = vmatpush1.bf16.msra.mxu0 %v5826_v5  ;;  %2663 = vmatpush1.bf16.msra.mxu1 %v5829_v23 }
 0x953   :  { %2623 = vmatprep.subr.bf16.mxu0 %v5832_v16  ;;  %2664 = vmatprep.subr.bf16.mxu1 %v5835_v42 }
 0x956   :  { %2624 = vmatpush1.bf16.msra.mxu0 %v5838_v10  ;;  %2665 = vmatpush1.bf16.msra.mxu1 %v5841_v54 }
 0x957   :  { %2625 = vmatprep.subr.bf16.mxu0 %v5844_v17  ;;  %2666 = vmatprep.subr.bf16.mxu1 %v5847_v35  ;;  %v7367_v35 = vld [vmem:[#allocation45_spill] sm:$0xff] }
 0x95a   :  { %2626 = vmatpush1.bf16.msra.mxu0 %v5850_v45  ;;  %2667 = vmatpush1.bf16.msra.mxu1 %v5853_v49  ;;  %v7368_v49 = vld [vmem:[#allocation46_spill] sm:$0xff] }
 0x95b   :  { %2627 = vmatprep.subr.bf16.mxu0 %v5856_v41  ;;  %2668 = vmatprep.subr.bf16.mxu1 %v5859_v58  ;;  %v7369_v58 = vld [vmem:[#allocation47_spill] sm:$0xff] }
 0x95e   :  { %2628 = vmatpush1.bf16.msra.mxu0 %v5862_v18  ;;  %2669 = vmatpush1.bf16.msra.mxu1 %v5865_v24  ;;  %v7370_v24 = vld [vmem:[#allocation48_spill] sm:$0xff] }
 0x95f   :  { %2629 = vmatprep.subr.bf16.mxu0 %v5868_v51  ;;  %2670 = vmatprep.subr.bf16.mxu1 %v7342_v9 }
 0x962   :  { %2630 = vmatpush1.bf16.msra.mxu0 %v7343_v1  ;;  %2671 = vmatpush1.bf16.msra.mxu1 %v7344_v7 }
 0x963   :  { %2631 = vmatprep.subr.bf16.mxu0 %v7345_v43  ;;  %2672 = vmatprep.subr.bf16.mxu1 %v7346_v12 }
 0x966   :  { %2632 = vmatpush1.bf16.msra.mxu0 %v7347_v37  ;;  %2673 = vmatpush1.bf16.msra.mxu1 %v7348_v32 }
 0x967   :  { %2633 = vmatprep.subr.bf16.mxu0 %v7349_v6  ;;  %2674 = vmatprep.subr.bf16.mxu1 %v7350_v36 }
 0x96a   :  { %2634 = vmatpush1.bf16.msra.mxu0 %v7351_v47  ;;  %2675 = vmatpush1.bf16.msra.mxu1 %v7352_v52 }
 0x96b   :  { %2635 = vmatprep.subr.bf16.mxu0 %v7353_v8  ;;  %2676 = vmatprep.subr.bf16.mxu1 %v7354_v4 }
 0x96e   :  { %2636 = vmatpush1.bf16.msra.mxu0 %v7355_v19  ;;  %2677 = vmatpush1.bf16.msra.mxu1 %v7356_v22  ;;  %v7371_v19 = vld [vmem:[#allocation77_spill] sm:$0xff] }
 0x96f   :  { %2637 = vmatprep.subr.bf16.mxu0 %v7357_v40  ;;  %2678 = vmatprep.subr.bf16.mxu1 %v7358_v59  ;;  %v7372_v40 = vld [vmem:[#allocation78_spill] sm:$0xff] }
 0x972   :  { %2638 = vmatpush1.bf16.msra.mxu0 %v7359_v15  ;;  %2679 = vmatpush1.bf16.msra.mxu1 %v7360_v27 }
 0x973   :  { %2639 = vmatprep.subr.bf16.mxu0 %v7361_v53  ;;  %2680 = vmatprep.subr.bf16.mxu1 %v7362_v33  ;;  %v7373_v53 = vld [vmem:[#allocation79_spill] sm:$0xff] }
 0x976   :  { %2640 = vmatpush1.bf16.msra.mxu0 %v7363_v57  ;;  %2681 = vmatpush1.bf16.msra.mxu1 %v7364_v56  ;;  %v7374_v57 = vld [vmem:[#allocation80_spill] sm:$0xff] }
 0x977   :  { %2691 = vmatprep.subr.bf16.mxu0 %v7365_v60  ;;  %2732 = vmatprep.subr.bf16.mxu1 %v7366_v20 }
 0x9cc   :  { %v2421_v62 = vpop.f32.mrb[80].mxu0  ;;  %v2462_v5 = vpop.f32.mrb[80].mxu1 }
 0x9cd   :  { %v2423_v23 = vpop.f32.mrb[81].mxu0  ;;  %v2464_v16 = vpop.f32.mrb[81].mxu1  ;;  %v2551_v45 = vadd.f32 %v2421_v62, %v7367_v35  ;;  %v2553_v41 = vadd.f32 %v2462_v5, %v7368_v49 }
 0x9ce   :  { %v2425_v42 = vpop.f32.mrb[82].mxu0  ;;  %v2466_v10 = vpop.f32.mrb[82].mxu1  ;;  %v2552_v18 = vadd.f32 %v2423_v23, %v7369_v58  ;;  %v2554_v51 = vadd.f32 %v2464_v16, %v7370_v24 }
 0x9cf   :  { %v2426_v54 = vpop.f32.mrb[83].mxu0  ;;  %v2467_v17 = vpop.f32.mrb[83].mxu1  ;;  %v3287_v31 = vmul.f32 -1.442695, %v2551_v45  ;;  %v3289_v9 = vmul.f32 -1.442695, %v2553_v41 }
 0x9d0   :  { %v3288_v1 = vmul.f32 -1.442695, %v2552_v18  ;;  %v3290_v7 = vmul.f32 -1.442695, %v2554_v51 }
 0x9d1   :  { %3557 = vpow2.f32 %v3287_v31 }
 0x9d2   :  { %3559 = vpow2.f32 %v3289_v9 }
 0x9d3   :  { %3561 = vpow2.f32 %v3288_v1 }
 0x9d4   :  { %3563 = vpow2.f32 %v3290_v7 }
 0x9db   :  { %v3558_v43 = vpop.eup %3557 }
 0x9dc   :  { %v3560_v12 = vpop.eup %3559  ;;  %v2577_v6 = vadd.f32 1.0, %v3558_v43 }
 0x9dd   :  { %v3562_v37 = vpop.eup %3561  ;;  %v2579_v36 = vadd.f32 1.0, %v3560_v12 }
 0x9de   :  { %v3564_v32 = vpop.eup %3563  ;;  %v2578_v47 = vadd.f32 1.0, %v3562_v37  ;;  %3565 = vrcp.f32 %v2577_v6 }
 0x9df   :  { %v2580_v52 = vadd.f32 1.0, %v3564_v32  ;;  %3567 = vrcp.f32 %v2579_v36 }
 0x9e0   :  { %3569 = vrcp.f32 %v2578_v47  ;;  %v7389_v47 = vld [vmem:[#allocation134_spill] sm:$0xff] }
 0x9e1   :  { %3571 = vrcp.f32 %v2580_v52  ;;  %v7390_v52 = vld [vmem:[#allocation135_spill] sm:$0xff] }
 0x9e8   :  { %v3566_v42 = vpop.eup %3565 }
 0x9e9   :  { %v3568_v10 = vpop.eup %3567 }
 0x9ea   :  { %v3570_v54 = vpop.eup %3569  ;;  %v2597_v49 = vmul.f32 %v3568_v10, %v5956_v48  ;;  %v7410_v10 = vld [vmem:[#allocation118_spill] sm:$0xff] }
 0x9eb   :  { %v3572_v17 = vpop.eup %3571 }
 0x9ec   :  { %v2598_v18 = vmul.f32 %v3572_v17, %v5958_v0  ;;  %v7412_v17 = vld [vmem:[#allocation120_spill] sm:$0xff] }
 0xa0c   :  { %v2503_v8 = vpop.f32.mrb[84].mxu0  ;;  %v2544_v4 = vpop.f32.mrb[84].mxu1 }
 0xa0d   :  { %v2555_v22 = vadd.f32 %v2503_v8, %v7371_v19  ;;  %v2557_v59 = vadd.f32 %v2544_v4, %v7372_v40  ;;  %v2505_v15 = vpop.f32.mrb[85].mxu0  ;;  %v2546_v27 = vpop.f32.mrb[85].mxu1  ;;  %v7391_v8 = vld [vmem:[#allocation136_spill] sm:$0xff]  ;;  %v7392_v4 = vld [vmem:[#allocation137_spill] sm:$0xff]  ;;  %v7393_v19 = vld [vmem:[#allocation138_spill] sm:$0xff] }
 0xa0e   :  { %v2556_v33 = vadd.f32 %v2505_v15, %v7373_v53  ;;  %v2558_v56 = vadd.f32 %v2546_v27, %v7374_v57  ;;  %v2507_v60 = vpop.f32.mrb[86].mxu0  ;;  %v2548_v20 = vpop.f32.mrb[86].mxu1  ;;  %v7395_v40 = vld [vmem:[#allocation140_spill] sm:$0xff]  ;;  %v7397_v15 = vld [vmem:[#allocation142_spill] sm:$0xff]  ;;  %v7398_v27 = vld [vmem:[#allocation143_spill] sm:$0xff] }
 0xa0f   :  { %v3291_v62 = vmul.f32 -1.442695, %v2555_v22  ;;  %3573 = vtanh.f32 %v2557_v59  ;;  %v2508_v5 = vpop.f32.mrb[87].mxu0  ;;  %v2549_v23 = vpop.f32.mrb[87].mxu1  ;;  %v7394_v22 = vld [vmem:[#allocation139_spill] sm:$0xff]  ;;  %v7396_v59 = vld [vmem:[#allocation141_spill] sm:$0xff] }
 0xa10   :  { %v3292_v16 = vmul.f32 -1.442695, %v2556_v33  ;;  %3575 = vtanh.f32 %v2558_v56  ;;  %v7399_v53 = vld [vmem:[#allocation144_spill] sm:$0xff]  ;;  %v7400_v33 = vld [vmem:[#allocation21_spill] sm:$0xff]  ;;  %v7401_v57 = vld [vmem:[#allocation22_spill] sm:$0xff] }
 0xa11   :  { %3577 = vpow2.f32 %v3291_v62  ;;  %v7402_v56 = vld [vmem:[#allocation23_spill] sm:$0xff]  ;;  %v7403_v60 = vld [vmem:[#allocation24_spill] sm:$0xff]  ;;  %v7404_v20 = vld [vmem:[#allocation53_spill] sm:$0xff] }
 0xa12   :  { %3579 = vpow2.f32 %v3292_v16  ;;  %v7405_v62 = vld [vmem:[#allocation54_spill] sm:$0xff]  ;;  %v7406_v5 = vld [vmem:[#allocation55_spill] sm:$0xff]  ;;  %v7407_v23 = vld [vmem:[#allocation56_spill] sm:$0xff] }
 0xa13   :  { %v7408_v16 = vld [vmem:[#allocation116_spill] sm:$0xff] }
 0xa19   :  { %v3574_v35 = vpop.eup %3573 }
 0xa1a   :  { %v3576_v45 = vpop.eup %3575  ;;  %v2599_v41 = vmul.f32 %v3574_v35, %v3566_v42  ;;  %v7409_v42 = vld [vmem:[#allocation117_spill] sm:$0xff] }
 0xa1b   :  { %v3578_v58 = vpop.eup %3577  ;;  %v2600_v24 = vmul.f32 %v3576_v45, %v3570_v54  ;;  %v7411_v54 = vld [vmem:[#allocation119_spill] sm:$0xff]  ;;  %v7413_v35 = vld [vmem:[#allocation121_spill] sm:$0xff]  ;;  %v7414_v45 = vld [vmem:[#allocation122_spill] sm:$0xff] }
 0xa1c   :  { %v3580_v51 = vpop.eup %3579  ;;  %v2581_v31 = vadd.f32 1.0, %v3578_v58  ;;  %v6230_v9 = vadd.f32 %v2599_v41, %v2597_v49  ;;  %v7415_v49 = vld [vmem:[#allocation157_spill] sm:$0xff]  ;;  %v7416_v41 = vld [vmem:[#allocation160_spill] sm:$0xff] }
 0xa1d   :  { %v2582_v1 = vadd.f32 1.0, %v3580_v51  ;;  %v6232_v7 = vadd.f32 %v2600_v24, %v2598_v18 }
 0xa1e   :  { %3581 = vrcp.f32 %v2581_v31 }
 0xa1f   :  { %3583 = vtanh.f32 %v6230_v9 }
 0xa20   :  { %3585 = vrcp.f32 %v2582_v1 }
 0xa21   :  { %3587 = vtanh.f32 %v6232_v7 }
 0xa28   :  { %v3582_v43 = vpop.eup %3581 }
 0xa29   :  { %v3584_v48 = vpop.eup %3583 }
 0xa2a   :  { %v3586_v12 = vpop.eup %3585  ;;  %v2605_v32 = vmul.f32 %v3584_v48, %v3582_v43  ;;  %v7417_v43 = vld [vmem:[#allocation49_spill] sm:$0xff]  ;;  %v7418_v48 = vld [vmem:[#allocation50_spill] sm:$0xff] }
 0xa2b   :  { %v3588_v37 = vpop.eup %3587 }
 0xa2c   :  { %v2606_v0 = vmul.f32 %v3588_v37, %v3586_v12  ;;  %v6236_v36 = vpack.c.bf16 %v2605_v32, %v2605_v32  ;;  %v7419_v12 = vld [vmem:[#allocation51_spill] sm:$0xff]  ;;  %v7420_v37 = vld [vmem:[#allocation52_spill] sm:$0xff] }
 0xa2e   :  { %v2608_v6 = vpack.c.bf16 %v2606_v0, %v2606_v0 }
 0xa30   :  { %2641 = vmatprep.mubr.bf16.mxu0 %v2608_v6  ;;  %2682 = vmatprep.mubr.bf16.mxu1 %v2608_v6 }
 0xa31   :  { %2642 = vmatmul.mubr.bf16.vlgmr.msra.gmra.mrb[88].mxu0 %v6236_v36  ;;  %2683 = vmatmul.mubr.bf16.vlgmr.msra.gmra.mrb[88].mxu1 %v6236_v36 }
 0xa32   :  { %2692 = vmatpush1.bf16.msra.mxu0 %v5966_v50  ;;  %2733 = vmatpush1.bf16.msra.mxu1 %v5969_v30  ;;  %v7375_v50 = vld [vmem:[#allocation36_spill] sm:$0xff]  ;;  %v7376_v30 = vld [vmem:[#allocation65_spill] sm:$0xff] }
 0xa33   :  { %2723 = vmatprep.mubr.bf16.mxu0 %v2608_v6  ;;  %2764 = vmatprep.mubr.bf16.mxu1 %v2608_v6 }
 0xa34   :  { %2693 = vmatprep.subr.bf16.mxu0 %v5972_v63  ;;  %2734 = vmatprep.subr.bf16.mxu1 %v5975_v29  ;;  %v7377_v63 = vld [vmem:[#allocation66_spill] sm:$0xff]  ;;  %v7378_v29 = vld [vmem:[#allocation67_spill] sm:$0xff] }
 0xa36   :  { %2694 = vmatpush1.bf16.msra.mxu0 %v5978_v2  ;;  %2735 = vmatpush1.bf16.msra.mxu1 %v5981_v3  ;;  %v7379_v2 = vld [vmem:[#allocation68_spill] sm:$0xff] }
 0xa37   :  { %2695 = vmatprep.subr.bf16.mxu0 %v5984_v21  ;;  %2736 = vmatprep.subr.bf16.mxu1 %v5987_v34  ;;  %v7380_v3 = vld [vmem:[#allocation104_spill] sm:$0xff]  ;;  %v7381_v21 = vld [vmem:[#allocation105_spill] sm:$0xff]  ;;  %v7382_v34 = vld [vmem:[#allocation106_spill] sm:$0xff] }
 0xa3a   :  { %2696 = vmatpush1.bf16.msra.mxu0 %v5990_v39  ;;  %2737 = vmatpush1.bf16.msra.mxu1 %v5993_v46  ;;  %v7383_v39 = vld [vmem:[#allocation107_spill] sm:$0xff]  ;;  %v7384_v46 = vld [vmem:[#allocation108_spill] sm:$0xff] }
 0xa3b   :  { %2697 = vmatprep.subr.bf16.mxu0 %v5996_v25  ;;  %2738 = vmatprep.subr.bf16.mxu1 %v5999_v14  ;;  %v7385_v25 = vld [vmem:[#allocation109_spill] sm:$0xff]  ;;  %v7386_v14 = vld [vmem:[#allocation110_spill] sm:$0xff] }
 0xa3e   :  { %2698 = vmatpush1.bf16.msra.mxu0 %v6002_v13  ;;  %2739 = vmatpush1.bf16.msra.mxu1 %v6005_v55  ;;  %v7387_v13 = vld [vmem:[#allocation111_spill] sm:$0xff]  ;;  %v7388_v55 = vld [vmem:[#allocation112_spill] sm:$0xff] }
 0xa3f   :  { %2699 = vmatprep.subr.bf16.mxu0 %v7375_v50  ;;  %2740 = vmatprep.subr.bf16.mxu1 %v7376_v30 }
 0xa42   :  { %2700 = vmatpush1.bf16.msra.mxu0 %v7377_v63  ;;  %2741 = vmatpush1.bf16.msra.mxu1 %v7378_v29 }
 0xa43   :  { %2701 = vmatprep.subr.bf16.mxu0 %v7379_v2  ;;  %2742 = vmatprep.subr.bf16.mxu1 %v7380_v3 }
 0xa46   :  { %2702 = vmatpush1.bf16.msra.mxu0 %v7381_v21  ;;  %2743 = vmatpush1.bf16.msra.mxu1 %v7382_v34 }
 0xa47   :  { %2703 = vmatprep.subr.bf16.mxu0 %v7383_v39  ;;  %2744 = vmatprep.subr.bf16.mxu1 %v7384_v46 }
 0xa4a   :  { %2704 = vmatpush1.bf16.msra.mxu0 %v7385_v25  ;;  %2745 = vmatpush1.bf16.msra.mxu1 %v7386_v14  ;;  %v7421_v25 = vld [vmem:[#allocation81_spill] sm:$0xff] }
 0xa4b   :  { %2705 = vmatprep.subr.bf16.mxu0 %v7387_v13  ;;  %2746 = vmatprep.subr.bf16.mxu1 %v7388_v55  ;;  %v7422_v13 = vld [vmem:[#allocation82_spill] sm:$0xff] }
 0xa4e   :  { %2706 = vmatpush1.bf16.msra.mxu0 %v7389_v47  ;;  %2747 = vmatpush1.bf16.msra.mxu1 %v7390_v52 }
 0xa4f   :  { %2707 = vmatprep.subr.bf16.mxu0 %v7391_v8  ;;  %2748 = vmatprep.subr.bf16.mxu1 %v7392_v4  ;;  %v7423_v8 = vld [vmem:[#allocation83_spill] sm:$0xff] }
 0xa52   :  { %2708 = vmatpush1.bf16.msra.mxu0 %v7393_v19  ;;  %2749 = vmatpush1.bf16.msra.mxu1 %v7394_v22  ;;  %v7424_v19 = vld [vmem:[#allocation84_spill] sm:$0xff] }
 0xa53   :  { %2709 = vmatprep.subr.bf16.mxu0 %v7395_v40  ;;  %2750 = vmatprep.subr.bf16.mxu1 %v7396_v59 }
 0xa56   :  { %2710 = vmatpush1.bf16.msra.mxu0 %v7397_v15  ;;  %2751 = vmatpush1.bf16.msra.mxu1 %v7398_v27 }
 0xa57   :  { %2711 = vmatprep.subr.bf16.mxu0 %v7399_v53  ;;  %2752 = vmatprep.subr.bf16.mxu1 %v7400_v33 }
 0xa5a   :  { %2712 = vmatpush1.bf16.msra.mxu0 %v7401_v57  ;;  %2753 = vmatpush1.bf16.msra.mxu1 %v7402_v56 }
 0xa5b   :  { %2713 = vmatprep.subr.bf16.mxu0 %v7403_v60  ;;  %2754 = vmatprep.subr.bf16.mxu1 %v7404_v20 }
 0xa5e   :  { %2714 = vmatpush1.bf16.msra.mxu0 %v7405_v62  ;;  %2755 = vmatpush1.bf16.msra.mxu1 %v7406_v5 }
 0xa5f   :  { %2715 = vmatprep.subr.bf16.mxu0 %v7407_v23  ;;  %2756 = vmatprep.subr.bf16.mxu1 %v7408_v16 }
 0xa62   :  { %2716 = vmatpush1.bf16.msra.mxu0 %v7409_v42  ;;  %2757 = vmatpush1.bf16.msra.mxu1 %v7410_v10 }
 0xa63   :  { %2717 = vmatprep.subr.bf16.mxu0 %v7411_v54  ;;  %2758 = vmatprep.subr.bf16.mxu1 %v7412_v17 }
 0xa66   :  { %2718 = vmatpush1.bf16.msra.mxu0 %v7413_v35  ;;  %2759 = vmatpush1.bf16.msra.mxu1 %v7414_v45 }
 0xa67   :  { %2719 = vmatprep.subr.bf16.mxu0 %v7415_v49  ;;  %2760 = vmatprep.subr.bf16.mxu1 %v7416_v41 }
 0xa6a   :  { %2720 = vmatpush1.bf16.msra.mxu0 %v6134_v11  ;;  %2761 = vmatpush1.bf16.msra.mxu1 %v6137_v44 }
 0xa6b   :  { %2721 = vmatprep.subr.bf16.mxu0 %v6140_v26  ;;  %2762 = vmatprep.subr.bf16.mxu1 %v6143_v38 }
 0xa6e   :  { %2722 = vmatpush1.bf16.msra.mxu0 %v6146_v61  ;;  %2763 = vmatpush1.bf16.msra.mxu1 %v6149_v28 }
 0xa71   :  { %2724 = vmatmul.mubr.bf16.vlgmr.msra.gmra.mrb[92].mxu0 %v6236_v36  ;;  %2765 = vmatmul.mubr.bf16.vlgmr.msra.gmra.mrb[92].mxu1 %v6236_v36 }
 0xb04   :  { %v2643_v58 = vpop.f32.mrb[88].mxu0  ;;  %v2684_v18 = vpop.f32.mrb[88].mxu1 }
 0xb05   :  { %v2645_v24 = vpop.f32.mrb[89].mxu0  ;;  %v2686_v51 = vpop.f32.mrb[89].mxu1  ;;  %v2773_v26 = vadd.f32 %v2643_v58, %v7417_v43  ;;  %v2775_v38 = vadd.f32 %v2684_v18, %v7418_v48 }
 0xb06   :  { %v2647_v31 = vpop.f32.mrb[90].mxu0  ;;  %v2688_v11 = vpop.f32.mrb[90].mxu1  ;;  %v2774_v61 = vadd.f32 %v2645_v24, %v7419_v12  ;;  %v2776_v28 = vadd.f32 %v2686_v51, %v7420_v37 }
 0xb07   :  { %v2648_v1 = vpop.f32.mrb[91].mxu0  ;;  %v2689_v44 = vpop.f32.mrb[91].mxu1  ;;  %v3293_v32 = vmul.f32 -1.442695, %v2773_v26  ;;  %v3295_v0 = vmul.f32 -1.442695, %v2775_v38 }
 0xb08   :  { %v3294_v6 = vmul.f32 -1.442695, %v2774_v61  ;;  %v3296_v36 = vmul.f32 -1.442695, %v2776_v28 }
 0xb09   :  { %3589 = vpow2.f32 %v3293_v32 }
 0xb0a   :  { %3591 = vpow2.f32 %v3295_v0 }
 0xb0b   :  { %3593 = vpow2.f32 %v3294_v6 }
 0xb0c   :  { %3595 = vpow2.f32 %v3296_v36 }
 0xb13   :  { %v3590_v50 = vpop.eup %3589 }
 0xb14   :  { %v3592_v30 = vpop.eup %3591  ;;  %v2799_v2 = vadd.f32 1.0, %v3590_v50 }
 0xb15   :  { %v3594_v63 = vpop.eup %3593  ;;  %v2801_v3 = vadd.f32 1.0, %v3592_v30 }
 0xb16   :  { %v3596_v29 = vpop.eup %3595  ;;  %v2800_v21 = vadd.f32 1.0, %v3594_v63  ;;  %3597 = vrcp.f32 %v2799_v2 }
 0xb17   :  { %v2802_v34 = vadd.f32 1.0, %v3596_v29  ;;  %3599 = vrcp.f32 %v2801_v3 }
 0xb18   :  { %3601 = vrcp.f32 %v2800_v21 }
 0xb19   :  { %3603 = vrcp.f32 %v2802_v34 }
 0xb20   :  { %v3598_v57 = vpop.eup %3597 }
 0xb21   :  { %v3600_v56 = vpop.eup %3599 }
 0xb22   :  { %v3602_v60 = vpop.eup %3601  ;;  %v2819_v23 = vmul.f32 %v3600_v56, %v6230_v9 }
 0xb23   :  { %v3604_v20 = vpop.eup %3603 }
 0xb24   :  { %v2820_v10 = vmul.f32 %v3604_v20, %v6232_v7 }
 0xb44   :  { %v2725_v39 = vpop.f32.mrb[92].mxu0  ;;  %v2766_v46 = vpop.f32.mrb[92].mxu1 }
 0xb45   :  { %v2777_v14 = vadd.f32 %v2725_v39, %v7421_v25  ;;  %v2779_v55 = vadd.f32 %v2766_v46, %v7422_v13  ;;  %v2727_v47 = vpop.f32.mrb[93].mxu0  ;;  %v2768_v52 = vpop.f32.mrb[93].mxu1 }
 0xb46   :  { %v2778_v4 = vadd.f32 %v2727_v47, %v7423_v8  ;;  %v2780_v22 = vadd.f32 %v2768_v52, %v7424_v19  ;;  %v2729_v40 = vpop.f32.mrb[94].mxu0  ;;  %v2770_v59 = vpop.f32.mrb[94].mxu1 }
 0xb47   :  { %v3297_v15 = vmul.f32 -1.442695, %v2777_v14  ;;  %3605 = vtanh.f32 %v2779_v55  ;;  %v2730_v27 = vpop.f32.mrb[95].mxu0  ;;  %v2771_v53 = vpop.f32.mrb[95].mxu1 }
 0xb48   :  { %v3298_v33 = vmul.f32 -1.442695, %v2778_v4  ;;  %3607 = vtanh.f32 %v2780_v22 }
 0xb49   :  { %3609 = vpow2.f32 %v3297_v15 }
 0xb4a   :  { %3611 = vpow2.f32 %v3298_v33 }
 0xb51   :  { %v3606_v62 = vpop.eup %3605 }
 0xb52   :  { %v3608_v5 = vpop.eup %3607  ;;  %v2821_v16 = vmul.f32 %v3606_v62, %v3598_v57 }
 0xb53   :  { %v3610_v42 = vpop.eup %3609  ;;  %v2822_v54 = vmul.f32 %v3608_v5, %v3602_v60 }
 0xb54   :  { %v3612_v17 = vpop.eup %3611  ;;  %v2803_v35 = vadd.f32 1.0, %v3610_v42  ;;  %v2823_v45 = vadd.f32 %v2821_v16, %v2819_v23 }
 0xb55   :  { %v2804_v49 = vadd.f32 1.0, %v3612_v17  ;;  %v2824_v41 = vadd.f32 %v2822_v54, %v2820_v10 }
 0xb56   :  { %3613 = vrcp.f32 %v2803_v35 }
 0xb57   :  { %3615 = vtanh.f32 %v2823_v45 }
 0xb58   :  { %3617 = vrcp.f32 %v2804_v49 }
 0xb59   :  { %3619 = vtanh.f32 %v2824_v41 }
 0xb60   :  { %v3614_v58 = vpop.eup %3613 }
 0xb61   :  { %v3616_v18 = vpop.eup %3615 }
 0xb62   :  { %v3618_v24 = vpop.eup %3617  ;;  %v6314_v51 = vmul.f32 %v3616_v18, %v3614_v58 }
 0xb63   :  { %v3620_v9 = vpop.eup %3619 }
 0xb64   :  { %v2828_v31 = vmul.f32 %v3620_v9, %v3618_v24 }
 0xb65   :  { %3925 = dma.done.wait [#allocation5 + $0x1], 8192 }
 0xb66   :  { %3926 = vsyncadd [#allocation5 + $0x1], 4294959104 }
 0xb67   :  { %3927 = dma.done.wait [#allocation5 + $0x2], 4096 }
 0xb68   :  { %3928 = vsyncadd [#allocation5 + $0x2], 4294963200  ;;  %v2837_v7 = vpack.c.bf16 %v2828_v31, %v2828_v31  ;;  %v2839_v11 = vld [vmem:[#allocation3 + $0x8] sm:$0xff]  ;;  %v2841_v1 = vld [vmem:[#allocation3 + $0x18] sm:$0xff] }
 0xb69   :  { %v2838_v44 = vld [vmem:[#allocation3] sm:$0xff]  ;;  %2924 = vmatprep.subr.bf16.mxu0 %v2839_v11  ;;  %2965 = vmatprep.subr.bf16.mxu1 %v2841_v1  ;;  %v2840_v43 = vld [vmem:[#allocation3 + $0x10] sm:$0xff]  ;;  %v2843_v26 = vld [vmem:[#allocation3 + $0x28] sm:$0xff] }
 0xb6a   :  { %2956 = vmatprep.mubr.bf16.mxu0 %v2837_v7  ;;  %2997 = vmatprep.mubr.bf16.mxu1 %v2837_v7  ;;  %v2845_v48 = vld [vmem:[#allocation3 + $0x38] sm:$0xff]  ;;  %v2842_v38 = vld [vmem:[#allocation3 + $0x20] sm:$0xff]  ;;  %v2844_v12 = vld [vmem:[#allocation3 + $0x30] sm:$0xff] }
 0xb6b   :  { %2925 = vmatpush1.bf16.msra.mxu0 %v2838_v44  ;;  %2966 = vmatpush1.bf16.msra.mxu1 %v2840_v43  ;;  %v2847_v61 = vld [vmem:[#allocation3 + $0x48] sm:$0xff]  ;;  %v2849_v37 = vld [vmem:[#allocation3 + $0x58] sm:$0xff]  ;;  %v2846_v28 = vld [vmem:[#allocation3 + $0x40] sm:$0xff]  ;;  %v2836_v43 = vpack.c.bf16 %v6314_v51, %v6314_v51 }
 0xb6c   :  { %2926 = vmatprep.subr.bf16.mxu0 %v2843_v26  ;;  %2967 = vmatprep.subr.bf16.mxu1 %v2845_v48  ;;  %v2848_v32 = vld [vmem:[#allocation3 + $0x50] sm:$0xff]  ;;  %v2851_v0 = vld [vmem:[#allocation3 + $0x68] sm:$0xff]  ;;  %v2853_v6 = vld [vmem:[#allocation3 + $0x78] sm:$0xff] }
 0xb6d   :  { %v2850_v36 = vld [vmem:[#allocation3 + $0x60] sm:$0xff]  ;;  %v2852_v50 = vld [vmem:[#allocation3 + $0x70] sm:$0xff]  ;;  %v2855_v30 = vld [vmem:[#allocation3 + $0x88] sm:$0xff] }
 0xb6e   :  { %v2857_v63 = vld [vmem:[#allocation3 + $0x98] sm:$0xff]  ;;  %v2854_v29 = vld [vmem:[#allocation3 + $0x80] sm:$0xff]  ;;  %v2856_v2 = vld [vmem:[#allocation3 + $0x90] sm:$0xff] }
 0xb6f   :  { %2927 = vmatpush1.bf16.msra.mxu0 %v2842_v38  ;;  %2968 = vmatpush1.bf16.msra.mxu1 %v2844_v12  ;;  %v2859_v3 = vld [vmem:[#allocation3 + $0xa8] sm:$0xff]  ;;  %v2861_v21 = vld [vmem:[#allocation3 + $0xb8] sm:$0xff]  ;;  %v2858_v34 = vld [vmem:[#allocation3 + $0xa0] sm:$0xff] }
 0xb70   :  { %2928 = vmatprep.subr.bf16.mxu0 %v2847_v61  ;;  %2969 = vmatprep.subr.bf16.mxu1 %v2849_v37  ;;  %v2860_v39 = vld [vmem:[#allocation3 + $0xb0] sm:$0xff]  ;;  %v2863_v46 = vld [vmem:[#allocation3 + $0xc8] sm:$0xff]  ;;  %v2865_v25 = vld [vmem:[#allocation3 + $0xd8] sm:$0xff] }
 0xb71   :  { %v2862_v14 = vld [vmem:[#allocation3 + $0xc0] sm:$0xff]  ;;  %v2864_v13 = vld [vmem:[#allocation3 + $0xd0] sm:$0xff]  ;;  %v2867_v55 = vld [vmem:[#allocation3 + $0xe8] sm:$0xff] }
 0xb72   :  { %v2869_v47 = vld [vmem:[#allocation3 + $0xf8] sm:$0xff]  ;;  %v2866_v52 = vld [vmem:[#allocation3 + $0xe0] sm:$0xff]  ;;  %v2868_v8 = vld [vmem:[#allocation3 + $0xf0] sm:$0xff] }
 0xb73   :  { %2929 = vmatpush1.bf16.msra.mxu0 %v2846_v28  ;;  %2970 = vmatpush1.bf16.msra.mxu1 %v2848_v32  ;;  %v2871_v4 = vld [vmem:[#allocation3 + $0x108] sm:$0xff]  ;;  %v2873_v19 = vld [vmem:[#allocation3 + $0x118] sm:$0xff]  ;;  %v2870_v22 = vld [vmem:[#allocation3 + $0x100] sm:$0xff] }
 0xb74   :  { %2930 = vmatprep.subr.bf16.mxu0 %v2851_v0  ;;  %2971 = vmatprep.subr.bf16.mxu1 %v2853_v6  ;;  %v2872_v40 = vld [vmem:[#allocation3 + $0x110] sm:$0xff]  ;;  %v2875_v59 = vld [vmem:[#allocation3 + $0x128] sm:$0xff]  ;;  %v2877_v15 = vld [vmem:[#allocation3 + $0x138] sm:$0xff] }
 0xb75   :  { %v2874_v27 = vld [vmem:[#allocation3 + $0x120] sm:$0xff]  ;;  %v2876_v53 = vld [vmem:[#allocation3 + $0x130] sm:$0xff]  ;;  %v2879_v33 = vld [vmem:[#allocation3 + $0x148] sm:$0xff] }
 0xb76   :  { %v2881_v57 = vld [vmem:[#allocation3 + $0x158] sm:$0xff]  ;;  %v2878_v56 = vld [vmem:[#allocation3 + $0x140] sm:$0xff]  ;;  %v2880_v60 = vld [vmem:[#allocation3 + $0x150] sm:$0xff] }
 0xb77   :  { %2931 = vmatpush1.bf16.msra.mxu0 %v2850_v36  ;;  %2972 = vmatpush1.bf16.msra.mxu1 %v2852_v50  ;;  %v2883_v20 = vld [vmem:[#allocation3 + $0x168] sm:$0xff]  ;;  %v2885_v62 = vld [vmem:[#allocation3 + $0x178] sm:$0xff]  ;;  %v2882_v5 = vld [vmem:[#allocation3 + $0x160] sm:$0xff] }
 0xb78   :  { %2932 = vmatprep.subr.bf16.mxu0 %v2855_v30  ;;  %2973 = vmatprep.subr.bf16.mxu1 %v2857_v63  ;;  %v2884_v23 = vld [vmem:[#allocation3 + $0x170] sm:$0xff]  ;;  %v2887_v16 = vld [vmem:[#allocation3 + $0x188] sm:$0xff]  ;;  %v2889_v42 = vld [vmem:[#allocation3 + $0x198] sm:$0xff] }
 0xb79   :  { %v2886_v10 = vld [vmem:[#allocation3 + $0x180] sm:$0xff]  ;;  %v2888_v54 = vld [vmem:[#allocation3 + $0x190] sm:$0xff]  ;;  %v2891_v17 = vld [vmem:[#allocation3 + $0x1a8] sm:$0xff] }
 0xb7a   :  { %v2893_v35 = vld [vmem:[#allocation3 + $0x1b8] sm:$0xff]  ;;  %v2890_v45 = vld [vmem:[#allocation3 + $0x1a0] sm:$0xff]  ;;  %v2892_v49 = vld [vmem:[#allocation3 + $0x1b0] sm:$0xff] }
 0xb7b   :  { %2933 = vmatpush1.bf16.msra.mxu0 %v2854_v29  ;;  %2974 = vmatpush1.bf16.msra.mxu1 %v2856_v2  ;;  %v2895_v41 = vld [vmem:[#allocation3 + $0x1c8] sm:$0xff]  ;;  %v2897_v58 = vld [vmem:[#allocation3 + $0x1d8] sm:$0xff]  ;;  %v2894_v18 = vld [vmem:[#allocation3 + $0x1c0] sm:$0xff] }
 0xb7c   :  { %2934 = vmatprep.subr.bf16.mxu0 %v2859_v3  ;;  %2975 = vmatprep.subr.bf16.mxu1 %v2861_v21  ;;  %v2896_v24 = vld [vmem:[#allocation3 + $0x1d0] sm:$0xff]  ;;  %v2899_v9 = vld [vmem:[#allocation3 + $0x1e8] sm:$0xff]  ;;  %v2901_v31 = vld [vmem:[#allocation3 + $0x1f8] sm:$0xff] }
 0xb7d   :  { %v2898_v7 = vld [vmem:[#allocation3 + $0x1e0] sm:$0xff]  ;;  %v2900_v11 = vld [vmem:[#allocation3 + $0x1f0] sm:$0xff]  ;;  %v3023_v38 = vld [vmem:[#allocation4 + $0x48] sm:$0xff] }
 0xb7e   :  { %v3022_v1 = vld [vmem:[#allocation4 + $0x40] sm:$0xff]  ;;  %v3039_v12 = vld [vmem:[#allocation4 + $0xc8] sm:$0xff]  ;;  %v3024_v28 = vld [vmem:[#allocation4 + $0x50] sm:$0xff] }
 0xb7f   :  { %2935 = vmatpush1.bf16.msra.mxu0 %v2858_v34  ;;  %2976 = vmatpush1.bf16.msra.mxu1 %v2860_v39  ;;  %v3038_v44 = vld [vmem:[#allocation4 + $0xc0] sm:$0xff]  ;;  %v3015_v61 = vld [vmem:[#allocation4 + $0x8] sm:$0xff]  ;;  %v3040_v32 = vld [vmem:[#allocation4 + $0xd0] sm:$0xff] }
 0xb80   :  { %2936 = vmatprep.subr.bf16.mxu0 %v2863_v46  ;;  %2977 = vmatprep.subr.bf16.mxu1 %v2865_v25  ;;  %v3014_v26 = vld [vmem:[#allocation4] sm:$0xff]  ;;  %v3031_v37 = vld [vmem:[#allocation4 + $0x88] sm:$0xff]  ;;  %v3016_v51 = vld [vmem:[#allocation4 + $0x10] sm:$0xff] }
 0xb81   :  { %v3030_v48 = vld [vmem:[#allocation4 + $0x80] sm:$0xff]  ;;  %v3032_v0 = vld [vmem:[#allocation4 + $0x90] sm:$0xff]  ;;  %v3025_v6 = vld [vmem:[#allocation4 + $0x58] sm:$0xff] }
 0xb82   :  { %v3041_v36 = vld [vmem:[#allocation4 + $0xd8] sm:$0xff]  ;;  %v3026_v63 = vld [vmem:[#allocation4 + $0x60] sm:$0xff]  ;;  %v3027_v21 = vld [vmem:[#allocation4 + $0x68] sm:$0xff] }
 0xb83   :  { %2937 = vmatpush1.bf16.msra.mxu0 %v2862_v14  ;;  %2978 = vmatpush1.bf16.msra.mxu1 %v2864_v13  ;;  %v3017_v50 = vld [vmem:[#allocation4 + $0x18] sm:$0xff]  ;;  %v3042_v29 = vld [vmem:[#allocation4 + $0xe0] sm:$0xff]  ;;  %v3043_v34 = vld [vmem:[#allocation4 + $0xe8] sm:$0xff] }
 0xb84   :  { %2938 = vmatprep.subr.bf16.mxu0 %v2867_v55  ;;  %2979 = vmatprep.subr.bf16.mxu1 %v2869_v47  ;;  %v3033_v30 = vld [vmem:[#allocation4 + $0x98] sm:$0xff]  ;;  %v3018_v2 = vld [vmem:[#allocation4 + $0x20] sm:$0xff]  ;;  %v3019_v39 = vld [vmem:[#allocation4 + $0x28] sm:$0xff] }
 0xb85   :  { %v3034_v3 = vld [vmem:[#allocation4 + $0xa0] sm:$0xff]  ;;  %v3035_v46 = vld [vmem:[#allocation4 + $0xa8] sm:$0xff]  ;;  %v3028_v25 = vld [vmem:[#allocation4 + $0x70] sm:$0xff] }
 0xb86   :  { %v3044_v14 = vld [vmem:[#allocation4 + $0xf0] sm:$0xff]  ;;  %v3029_v47 = vld [vmem:[#allocation4 + $0x78] sm:$0xff] }
 0xb87   :  { %2939 = vmatpush1.bf16.msra.mxu0 %v2866_v52  ;;  %2980 = vmatpush1.bf16.msra.mxu1 %v2868_v8  ;;  %v3020_v13 = vld [vmem:[#allocation4 + $0x30] sm:$0xff]  ;;  %v3045_v52 = vld [vmem:[#allocation4 + $0xf8] sm:$0xff] }
 0xb88   :  { %2940 = vmatprep.subr.bf16.mxu0 %v2871_v4  ;;  %2981 = vmatprep.subr.bf16.mxu1 %v2873_v19  ;;  %v3036_v55 = vld [vmem:[#allocation4 + $0xb0] sm:$0xff]  ;;  %v3021_v8 = vld [vmem:[#allocation4 + $0x38] sm:$0xff]  ;;  %v2902_v19 = vld [vmem:[%s6338_s3] sm:$0xf] }
 0xb89   :  { %v3037_v4 = vld [vmem:[#allocation4 + $0xb8] sm:$0xff] }
 0xb8b   :  { %2941 = vmatpush1.bf16.msra.mxu0 %v2870_v22  ;;  %2982 = vmatpush1.bf16.msra.mxu1 %v2872_v40  ;;  %v7425_v22 = vld [vmem:[#allocation20_spill] sm:$0xff] }
 0xb8c   :  { %2942 = vmatprep.subr.bf16.mxu0 %v2875_v59  ;;  %2983 = vmatprep.subr.bf16.mxu1 %v2877_v15  ;;  %v7426_v40 = vsub.s32 0, %v7425_v22  ;;  %v7427_v15 = vsub.s32 2, %v7425_v22 }
 0xb8e   :  { %v2907_v59 = vrot.slane %v2902_v19, %v7426_v40 }
 0xb8f   :  { %2943 = vmatpush1.bf16.msra.mxu0 %v2874_v27  ;;  %2984 = vmatpush1.bf16.msra.mxu1 %v2876_v53  ;;  %v2915_v27 = vrot.slane %v2902_v19, %v7427_v15  ;;  %v7428_v53 = vsub.s32 1, %v7425_v22 }
 0xb90   :  { %2944 = vmatprep.subr.bf16.mxu0 %v2879_v33  ;;  %2985 = vmatprep.subr.bf16.mxu1 %v2881_v57  ;;  %v7429_v57 = vsub.s32 3, %v7425_v22 }
 0xb91   :  { %v2911_v33 = vrot.slane %v2902_v19, %v7428_v53 }
 0xb93   :  { %2945 = vmatpush1.bf16.msra.mxu0 %v2878_v56  ;;  %2986 = vmatpush1.bf16.msra.mxu1 %v2880_v60  ;;  %v2919_v56 = vrot.slane %v2902_v19, %v7429_v57 }
 0xb94   :  { %2946 = vmatprep.subr.bf16.mxu0 %v2883_v20  ;;  %2987 = vmatprep.subr.bf16.mxu1 %v2885_v62 }
 0xb97   :  { %2947 = vmatpush1.bf16.msra.mxu0 %v2882_v5  ;;  %2988 = vmatpush1.bf16.msra.mxu1 %v2884_v23 }
 0xb98   :  { %2948 = vmatprep.subr.bf16.mxu0 %v2887_v16  ;;  %2989 = vmatprep.subr.bf16.mxu1 %v2889_v42 }
 0xb9b   :  { %2949 = vmatpush1.bf16.msra.mxu0 %v2886_v10  ;;  %2990 = vmatpush1.bf16.msra.mxu1 %v2888_v54 }
 0xb9c   :  { %2950 = vmatprep.subr.bf16.mxu0 %v2891_v17  ;;  %2991 = vmatprep.subr.bf16.mxu1 %v2893_v35 }
 0xb9f   :  { %2951 = vmatpush1.bf16.msra.mxu0 %v2890_v45  ;;  %2992 = vmatpush1.bf16.msra.mxu1 %v2892_v49 }
 0xba0   :  { %2952 = vmatprep.subr.bf16.mxu0 %v2895_v41  ;;  %2993 = vmatprep.subr.bf16.mxu1 %v2897_v58 }
 0xba3   :  { %2953 = vmatpush1.bf16.msra.mxu0 %v2894_v18  ;;  %2994 = vmatpush1.bf16.msra.mxu1 %v2896_v24 }
 0xba4   :  { %2954 = vmatprep.subr.bf16.mxu0 %v2899_v9  ;;  %2995 = vmatprep.subr.bf16.mxu1 %v2901_v31 }
 0xba7   :  { %2955 = vmatpush1.bf16.msra.mxu0 %v2898_v7  ;;  %2996 = vmatpush1.bf16.msra.mxu1 %v2900_v11 }
 0xba8   :  { %3303 = vmatprep.subr.bf16.mxu0 %v3022_v1  ;;  %3325 = vmatprep.subr.bf16.mxu1 %v3038_v44  ;;  %v3299_v44 = vld [vmem:[%s6339_s4] ss:$0 sm:$0xff] }
 0xbaa   :  { %2957 = vmatmul.mubr.bf16.vlgmr.msra.gmra.mrb[96].mxu0 %v2836_v43  ;;  %2998 = vmatmul.mubr.bf16.vlgmr.msra.gmra.mrb[96].mxu1 %v2836_v43 }
 0xbab   :  { %3304 = vmatpush3.bf16.msra.mxu0 %v3014_v26  ;;  %3326 = vmatpush3.bf16.msra.mxu1 %v3030_v48 }
 0xbac   :  { %3305 = vmatprep.subr.bf16.mxu0 %v3023_v38  ;;  %3327 = vmatprep.subr.bf16.mxu1 %v3039_v12 }
 0xbaf   :  { %3306 = vmatpush3.bf16.msra.mxu0 %v3015_v61  ;;  %3328 = vmatpush3.bf16.msra.mxu1 %v3031_v37 }
 0xbb0   :  { %3307 = vmatprep.subr.bf16.mxu0 %v3024_v28  ;;  %3329 = vmatprep.subr.bf16.mxu1 %v3040_v32 }
 0xbb3   :  { %3308 = vmatpush3.bf16.msra.mxu0 %v3016_v51  ;;  %3330 = vmatpush3.bf16.msra.mxu1 %v3032_v0 }
 0xbb4   :  { %3309 = vmatprep.subr.bf16.mxu0 %v3025_v6  ;;  %3331 = vmatprep.subr.bf16.mxu1 %v3041_v36 }
 0xbb7   :  { %3310 = vmatpush3.bf16.msra.mxu0 %v3017_v50  ;;  %3332 = vmatpush3.bf16.msra.mxu1 %v3033_v30 }
 0xbb8   :  { %3311 = vmatprep.subr.bf16.mxu0 %v3026_v63  ;;  %3333 = vmatprep.subr.bf16.mxu1 %v3042_v29 }
 0xbbb   :  { %3312 = vmatpush3.bf16.msra.mxu0 %v3018_v2  ;;  %3334 = vmatpush3.bf16.msra.mxu1 %v3034_v3 }
 0xbbc   :  { %3313 = vmatprep.subr.bf16.mxu0 %v3027_v21  ;;  %3335 = vmatprep.subr.bf16.mxu1 %v3043_v34 }
 0xbbf   :  { %3314 = vmatpush3.bf16.msra.mxu0 %v3019_v39  ;;  %3336 = vmatpush3.bf16.msra.mxu1 %v3035_v46 }
 0xbc0   :  { %3315 = vmatprep.subr.bf16.mxu0 %v3028_v25  ;;  %3337 = vmatprep.subr.bf16.mxu1 %v3044_v14 }
 0xbc3   :  { %3316 = vmatpush3.bf16.msra.mxu0 %v3020_v13  ;;  %3338 = vmatpush3.bf16.msra.mxu1 %v3036_v55 }
 0xbc4   :  { %3317 = vmatprep.subr.bf16.mxu0 %v3029_v47  ;;  %3339 = vmatprep.subr.bf16.mxu1 %v3045_v52 }
 0xbc7   :  { %3318 = vmatpush3.bf16.msra.mxu0 %v3021_v8  ;;  %3340 = vmatpush3.bf16.msra.mxu1 %v3037_v4 }
 0xc7d   :  { %v2958_v60 = vpop.f32.mrb[96].mxu0  ;;  %v2999_v20 = vpop.f32.mrb[96].mxu1 }
 0xc7e   :  { %v2959_v62 = vadd.f32 %v2958_v60, %v2907_v59  ;;  %v3000_v5 = vadd.f32 %v2999_v20, %v2915_v27  ;;  %v2960_v23 = vpop.f32.mrb[97].mxu0  ;;  %v3001_v16 = vpop.f32.mrb[97].mxu1 }
 0xc7f   :  { %v2961_v42 = vadd.f32 %v2960_v23, %v2911_v33  ;;  %v3002_v10 = vadd.f32 %v3001_v16, %v2919_v56  ;;  %v2962_v54 = vpop.f32.mrb[98].mxu0  ;;  %v3003_v17 = vpop.f32.mrb[98].mxu1 }
 0xc80   :  { %v3006_v35 = vmax.f32 %v2959_v62, 0.0  ;;  %v3008_v45 = vmax.f32 %v3000_v5, 0.0  ;;  %v2963_v49 = vpop.f32.mrb[99].mxu0  ;;  %v3004_v41 = vpop.f32.mrb[99].mxu1 }
 0xc81   :  { %v3007_v58 = vmax.f32 %v2961_v42, 0.0  ;;  %v3009_v18 = vmax.f32 %v3002_v10, 0.0 }
 0xc82   :  { %v3012_v24 = vpack.c.bf16 %v3008_v45, %v3008_v45  ;;  %v3010_v7 = vpack.c.bf16 %v3006_v35, %v3006_v35 }
 0xc83   :  { %v3011_v9 = vpack.c.bf16 %v3007_v58, %v3007_v58  ;;  %v3013_v31 = vpack.c.bf16 %v3009_v18, %v3009_v18 }
 0xc85   :  { %3085 = vmatprep.mubr.bf16.mxu0 %v3011_v9  ;;  %3125 = vmatprep.mubr.bf16.mxu1 %v3013_v31 }
 0xc86   :  { %3086 = vmatmul.mubr.bf16.vlgmr.msra.gmra.mrb[100].mxu0 %v3010_v7  ;;  %3126 = vmatmul.mubr.bf16.vlgmr.msra.gmra.mrb[100].mxu1 %v3012_v24 }
 0xd59   :  { %v3319_v11 = vpop.f32.mrb[100].mxu0  ;;  %v3341_v1 = vpop.f32.mrb[100].mxu1 }
 0xd5a   :  { %v3320_v43 = vpop.f32.mrb[101].mxu0  ;;  %v3342_v26 = vpop.f32.mrb[101].mxu1 }
 0xd5b   :  { %v3321_v48 = vadd.f32 %v3320_v43, %v3319_v11  ;;  %v3343_v38 = vadd.f32 %v3342_v26, %v3341_v1  ;;  %v3322_v12 = vpop.f32.mrb[102].mxu0  ;;  %v3344_v61 = vpop.f32.mrb[102].mxu1 }
 0xd5c   :  { %v3323_v37 = vpop.f32.mrb[103].mxu0  ;;  %v3345_v28 = vpop.f32.mrb[103].mxu1 }
 0xd5d   :  { %v3088_v32 = vadd.f32 %v3321_v48, %v3299_v44 }
 0xd5f   :  { %v3128_v51 = vadd.f32 %v3343_v38, %v3088_v32 }
 0xd61   :  { %3133 = vst [vmem:[%s6343_s8] sm:$0xff] %v3128_v51 }
 0xd62   :  { %3138 = vsyncpa [#allocation7], 1 }
 0xd63   :  { %3139 = vsyncmov [#allocation5] }
 0xd66   :  { %s3140_s17 = vpop.sfrf %3139 }
 0xd67   :  { %p3300_p2 = scmp.ne.s32.totalorder %s3140_s17, 0 }
 0xd69   :  { %3144 = shalt.err (%p3300_p2)  }
 0xd6a   :  { %3146 = vsyncmov [#allocation5 + $0x1] }
 0xd6d   :  { %s3147_s4 = vpop.sfrf %3146 }
 0xd6e   :  { %p3301_p3 = scmp.ne.s32.totalorder %s3147_s4, 0 }
 0xd70   :  { %3151 = shalt.err (%p3301_p3)  }
 0xd71   :  { %3153 = vsyncmov [#allocation5 + $0x2] }
 0xd74   :  { %s3154_s18 = vpop.sfrf %3153 }
 0xd75   :  { %p3302_p4 = scmp.ne.s32.totalorder %s3154_s18, 0 }
 0xd77   :  { %3158 = shalt.err (%p3302_p4)  }

</bundles_post_ra>
